<compile_context>
chip_gen: v7x
topology: tpu7x:2x2x1
jax: 0.10.0
libtpu: 0.0.40
codegen_flags: <defaults>
</compile_context>

<pallas_src>
import jax
import jax.numpy as jnp
import numpy as np
from jax.experimental import pallas as pl
from jax.experimental.pallas import tpu as pltpu


def decoder_kernel(emb_ref, hid_ref, h0_ref, c0_ref, enc_ref,
                   wihe_ref, wihs_ref, wihh_ref, whh_ref, b_ref,
                   u_ref, wht_ref, attnb_ref, v_ref, wct_ref,
                   woc_ref, woh_ref, wob_ref,
                   out_ref, loss_ref,
                   cells_sc, hsps_sc):
    # emb_ref : (T*B, E)   time-major flattened word embeddings (row = t*B + b)
    # enc_ref : (B, L, 2H) encoder hiddens
    # out_ref : (T*B, V)   log-softmax logits (reshaped/transposed to (B,T,V) in wrapper)
    # loss_ref: (B, L, 2H) converge (coverage) loss
    # cells_sc: (T*B, H)   scratch: per-step cell states
    # hsps_sc : (T*B, 2H)  scratch: per-step output attention contexts
    f32 = jnp.float32
    B, _ = hid_ref.shape
    TB, _ = emb_ref.shape
    T = TB // B
    _, L, H2 = enc_ref.shape
    H = H2 // 2

    enc = enc_ref[...]                       # (B, L, 2H)
    wihs = wihs_ref[...]                     # (2H, 4H)  W_ih block acting on hsp
    whh = whh_ref[...]                       # (H, 4H)
    u_t = u_ref[...]                         # (H, 2H)
    wct = wct_ref[...]                       # (B, 2H, 2H)

    # ---------- step-invariant prologue ----------
    # LSTM gate pieces: embeddings for all steps in one matmul; hidden + biases once.
    gates_emb = jnp.dot(emb_ref[...], wihe_ref[...], preferred_element_type=f32)   # (T*B, 4H)
    hid_bias = jnp.dot(hid_ref[...], wihh_ref[...], preferred_element_type=f32) + b_ref[...]  # (B, 4H)

    # W_h(encoder_hiddens) + attention bias once; V broadcast hoisted.
    wh_enc = (jnp.einsum('blh,bhk->blk', enc, wht_ref[...], preferred_element_type=f32)
              + attnb_ref[...].reshape(1, 1, H2))                                   # (B, L, 2H)
    v_full = jnp.broadcast_to(v_ref[...].reshape(1, 1, H2), (B, L, H2))

    def attention(cell, wc_term):
        u_term = jnp.dot(cell, u_t, preferred_element_type=f32)        # (B, 2H)
        e = wh_enc + u_term[:, None, :]
        if wc_term is not None:                                        # trace-time branch
            e = e + wc_term
        e = v_full * jnp.tanh(e)
        # softmax over the encoder-length axis (dim=1), per feature
        m = jnp.max(e, axis=1, keepdims=True)
        p = jnp.exp(e - m)
        a = p / jnp.sum(p, axis=1, keepdims=True)
        hsp = jnp.sum(enc * a, axis=1)                                  # (B, 2H)
        return a, hsp

    h = h0_ref[...]
    c = c0_ref[...]

    # Pre-loop attention (converge is None in the reference -> no W_c term).
    _, hsp = attention(c, None)

    converge = None
    loss = None
    for t in range(T):  # seq_len is a compile-time constant -> unrolled recurrence
        gates = (gates_emb[t * B:(t + 1) * B, :] + hid_bias
                 + jnp.dot(hsp, wihs, preferred_element_type=f32)
                 + jnp.dot(h, whh, preferred_element_type=f32))
        i_g = jax.nn.sigmoid(gates[:, 0 * H:1 * H])
        f_g = jax.nn.sigmoid(gates[:, 1 * H:2 * H])
        g_g = jnp.tanh(gates[:, 2 * H:3 * H])
        o_g = jax.nn.sigmoid(gates[:, 3 * H:4 * H])
        c = f_g * c + i_g * g_g
        h = o_g * jnp.tanh(c)
        cells_sc[pl.ds(t * B, B), :] = c

        if converge is None:                                            # step 0: no W_c
            a, hsp = attention(c, None)
            converge = a
            loss = a
        else:
            wc_term = jnp.einsum('blh,bhk->blk', converge, wct, preferred_element_type=f32)
            a, hsp = attention(c, wc_term)
            converge = converge + a
            loss = loss + jnp.minimum(converge, a)   # torch.where(converge < a, converge, a)

        if t >= 1:      # output_hiddens[1:]: slot t-1 gets the hsp produced at step t
            hsps_sc[pl.ds((t - 1) * B, B), :] = hsp

    # Post-loop attention with the fully accumulated converge.
    wc_term = jnp.einsum('blh,bhk->blk', converge, wct, preferred_element_type=f32)
    _, hsp_final = attention(c, wc_term)
    hsps_sc[pl.ds((T - 1) * B, B), :] = hsp_final

    # Batched final projection + log_softmax: two (T*B, .) @ (., V) matmuls, one slab store.
    logits = (jnp.dot(cells_sc[...], woc_ref[...], preferred_element_type=f32)
              + jnp.dot(hsps_sc[...], woh_ref[...], preferred_element_type=f32)
              + wob_ref[...])
    m = jnp.max(logits, axis=-1, keepdims=True)
    z = logits - m
    out_ref[...] = z - jnp.log(jnp.sum(jnp.exp(z), axis=-1, keepdims=True))
    loss_ref[...] = loss


def decoder_forward(params, seq, hidden, initial_values, encoder_hiddens):
    h0, c0 = initial_values
    # Embedding lookup (gather) is glue; the hot recurrent path runs in the kernel.
    emb = jnp.take(params["embedding"], seq, axis=0)                    # (B, T, E)
    B, T, E = emb.shape
    _, L, H2 = encoder_hiddens.shape
    H = H2 // 2
    V = params["wo_w"].shape[0]

    emb2d = jnp.transpose(emb, (1, 0, 2)).reshape(T * B, E)             # row = t*B + b

    w_ih = params["w_ih"]                                               # (4H, E + 2H + DH)
    w_ih_emb_t = w_ih[:, :E].T                                          # (E, 4H)
    w_ih_hsp_t = w_ih[:, E:E + H2].T                                    # (2H, 4H)
    w_ih_hid_t = w_ih[:, E + H2:].T                                     # (DH, 4H)
    b_sum = (params["b_ih"] + params["b_hh"]).reshape(1, -1)            # (1, 4H)
    wh_t_b = jnp.broadcast_to(params["w_h"].T[None], (B, H2, H2))
    wc_t_b = jnp.broadcast_to(params["w_c"].T[None], (B, H2, H2))
    wo_c_t = params["wo_w"][:, :H].T                                    # (H, V)
    wo_h_t = params["wo_w"][:, H:].T                                    # (2H, V)

    args = (
        emb2d, hidden, h0, c0, encoder_hiddens,
        w_ih_emb_t, w_ih_hsp_t, w_ih_hid_t, params["w_hh"].T, b_sum,
        params["u"].T, wh_t_b, params["attn_bias"], params["v"], wc_t_b,
        wo_c_t, wo_h_t, params["wo_b"].reshape(1, -1),
    )
    vmem = pl.BlockSpec(memory_space=pltpu.MemorySpace.VMEM)
    out2d, converge_loss = pl.pallas_call(
        decoder_kernel,
        out_shape=(jax.ShapeDtypeStruct((T * B, V), jnp.float32),
                   jax.ShapeDtypeStruct((B, L, H2), jnp.float32)),
        in_specs=[vmem] * len(args),
        out_specs=(vmem, vmem),
        scratch_shapes=[pltpu.VMEM((T * B, H), jnp.float32),
                        pltpu.VMEM((T * B, H2), jnp.float32)],
    )(*args)

    output = jnp.transpose(out2d.reshape(T, B, V), (1, 0, 2))           # (B, T, V)
    return output, converge_loss


if __name__ == "__main__":
    # Module hyper-params (small, consistent with the forward pass):
    E, H, VOCAB, DH = 16, 32, 64, 16           # emsize, hidden_size, token_num, extra hidden dim
    B, T, L = 2, 8, 8                          # batch, decode seq_len, encoder length
    LSTM_IN = E + 2 * H + DH                   # lstm_input_size = emsize + 2*hidden + hidden.shape[1]

    key = jax.random.PRNGKey(0)
    ks = jax.random.split(key, 12)
    s = 0.1
    params = dict(
        embedding=jax.random.normal(ks[0], (VOCAB, E), jnp.float32) * s,
        w_ih=jax.random.normal(ks[1], (4 * H, LSTM_IN), jnp.float32) * s,   # LSTMCell weight_ih
        w_hh=jax.random.normal(ks[2], (4 * H, H), jnp.float32) * s,         # LSTMCell weight_hh
        b_ih=jax.random.normal(ks[3], (4 * H,), jnp.float32) * s,
        b_hh=jax.random.normal(ks[4], (4 * H,), jnp.float32) * s,
        u=jax.random.normal(ks[5], (2 * H, H), jnp.float32) * s,            # U (no bias)
        w_h=jax.random.normal(ks[6], (2 * H, 2 * H), jnp.float32) * s,      # W_h (no bias)
        attn_bias=jnp.zeros((1, 2 * H), jnp.float32),                       # self.bias (zeros)
        v=jnp.ones((1, 2 * H), jnp.float32),                                # self.V (ones)
        w_c=jax.random.normal(ks[7], (2 * H, 2 * H), jnp.float32) * s,      # W_c (no bias)
        wo_w=jax.random.normal(ks[8], (VOCAB, 3 * H), jnp.float32) * s,     # Wo weight
        wo_b=jax.random.normal(ks[9], (VOCAB,), jnp.float32) * s,           # Wo bias
    )

    seq = jax.random.randint(ks[10], (B, T), 0, VOCAB)
    kh = jax.random.split(ks[11], 4)
    hidden = jax.random.normal(kh[0], (B, DH), jnp.float32)
    h0 = jax.random.normal(kh[1], (B, H), jnp.float32)
    c0 = jax.random.normal(kh[2], (B, H), jnp.float32)
    encoder_hiddens = jax.random.normal(kh[3], (B, L, 2 * H), jnp.float32)

    fwd = jax.jit(decoder_forward)
    output, converge_loss = fwd(params, seq, hidden, (h0, c0), encoder_hiddens)
    jax.block_until_ready((output, converge_loss))

    assert output.shape == (B, T, VOCAB)
    assert converge_loss.shape == (B, L, 2 * H)
    # log_softmax rows must exponentiate-sum to 1
    assert np.allclose(np.exp(np.asarray(output)).sum(-1), 1.0, atol=1e-3)
    assert np.all(np.isfinite(np.asarray(output)))
    assert np.all(np.isfinite(np.asarray(converge_loss)))
    print("KERNEL_OK")
</pallas_src>

<mosaic_0001>
module attributes {stable_mosaic.version = 11 : i64} {
  func.func @decoder_kernel(%arg0: memref<16x16xf32, #tpu.memory_space<vmem>>, %arg1: memref<2x16xf32, #tpu.memory_space<vmem>>, %arg2: memref<2x32xf32, #tpu.memory_space<vmem>>, %arg3: memref<2x32xf32, #tpu.memory_space<vmem>>, %arg4: memref<2x8x64xf32, #tpu.memory_space<vmem>>, %arg5: memref<16x128xf32, #tpu.memory_space<vmem>>, %arg6: memref<64x128xf32, #tpu.memory_space<vmem>>, %arg7: memref<16x128xf32, #tpu.memory_space<vmem>>, %arg8: memref<32x128xf32, #tpu.memory_space<vmem>>, %arg9: memref<1x128xf32, #tpu.memory_space<vmem>>, %arg10: memref<32x64xf32, #tpu.memory_space<vmem>>, %arg11: memref<2x64x64xf32, #tpu.memory_space<vmem>>, %arg12: memref<1x64xf32, #tpu.memory_space<vmem>>, %arg13: memref<1x64xf32, #tpu.memory_space<vmem>>, %arg14: memref<2x64x64xf32, #tpu.memory_space<vmem>>, %arg15: memref<32x64xf32, #tpu.memory_space<vmem>>, %arg16: memref<64x64xf32, #tpu.memory_space<vmem>>, %arg17: memref<1x64xf32, #tpu.memory_space<vmem>>, %arg18: memref<16x64xf32, #tpu.memory_space<vmem>>, %arg19: memref<2x8x64xf32, #tpu.memory_space<vmem>>, %arg20: memref<16x32xf32, #tpu.memory_space<vmem>>, %arg21: memref<16x64xf32, #tpu.memory_space<vmem>>) attributes {dimension_semantics = [], scalar_prefetch = 0 : i64, scratch_operands = 2 : i64, tpu.core_type = #tpu.core_type<tc>} {
    %c0 = arith.constant 0 : index
    %c0_0 = arith.constant 0 : index
    %c0_1 = arith.constant 0 : index
    %0 = vector.load %arg4[%c0, %c0_0, %c0_1] : memref<2x8x64xf32, #tpu.memory_space<vmem>>, vector<2x8x64xf32>
    %c0_2 = arith.constant 0 : index
    %c0_3 = arith.constant 0 : index
    %1 = vector.load %arg6[%c0_2, %c0_3] : memref<64x128xf32, #tpu.memory_space<vmem>>, vector<64x128xf32>
    %c0_4 = arith.constant 0 : index
    %c0_5 = arith.constant 0 : index
    %2 = vector.load %arg8[%c0_4, %c0_5] : memref<32x128xf32, #tpu.memory_space<vmem>>, vector<32x128xf32>
    %c0_6 = arith.constant 0 : index
    %c0_7 = arith.constant 0 : index
    %3 = vector.load %arg10[%c0_6, %c0_7] : memref<32x64xf32, #tpu.memory_space<vmem>>, vector<32x64xf32>
    %c0_8 = arith.constant 0 : index
    %c0_9 = arith.constant 0 : index
    %c0_10 = arith.constant 0 : index
    %4 = vector.load %arg14[%c0_8, %c0_9, %c0_10] : memref<2x64x64xf32, #tpu.memory_space<vmem>>, vector<2x64x64xf32>
    %c0_11 = arith.constant 0 : index
    %c0_12 = arith.constant 0 : index
    %5 = vector.load %arg0[%c0_11, %c0_12] : memref<16x16xf32, #tpu.memory_space<vmem>>, vector<16x16xf32>
    %c0_13 = arith.constant 0 : index
    %c0_14 = arith.constant 0 : index
    %6 = vector.load %arg5[%c0_13, %c0_14] : memref<16x128xf32, #tpu.memory_space<vmem>>, vector<16x128xf32>
    %cst = arith.constant dense<0.000000e+00> : vector<16x128xf32>
    %7 = tpu.matmul %5, %6, %cst {dimension_numbers = #tpu.dot_dimension_numbers<[1], [0], [0], [1], [0, 0, 1, 1], [], []>} : vector<16x16xf32>, vector<16x128xf32>, vector<16x128xf32> -> vector<16x128xf32>
    %c0_15 = arith.constant 0 : index
    %c0_16 = arith.constant 0 : index
    %8 = vector.load %arg1[%c0_15, %c0_16] : memref<2x16xf32, #tpu.memory_space<vmem>>, vector<2x16xf32>
    %c0_17 = arith.constant 0 : index
    %c0_18 = arith.constant 0 : index
    %9 = vector.load %arg7[%c0_17, %c0_18] : memref<16x128xf32, #tpu.memory_space<vmem>>, vector<16x128xf32>
    %cst_19 = arith.constant dense<0.000000e+00> : vector<2x128xf32>
    %10 = tpu.matmul %8, %9, %cst_19 {dimension_numbers = #tpu.dot_dimension_numbers<[1], [0], [0], [1], [0, 0, 1, 1], [], []>} : vector<2x16xf32>, vector<16x128xf32>, vector<2x128xf32> -> vector<2x128xf32>
    %c0_20 = arith.constant 0 : index
    %c0_21 = arith.constant 0 : index
    %11 = vector.load %arg9[%c0_20, %c0_21] : memref<1x128xf32, #tpu.memory_space<vmem>>, vector<1x128xf32>
    %12 = vector.broadcast %11 : vector<1x128xf32> to vector<2x128xf32>
    %13 = arith.addf %10, %12 : vector<2x128xf32>
    %c0_22 = arith.constant 0 : index
    %c0_23 = arith.constant 0 : index
    %c0_24 = arith.constant 0 : index
    %14 = vector.load %arg11[%c0_22, %c0_23, %c0_24] : memref<2x64x64xf32, #tpu.memory_space<vmem>>, vector<2x64x64xf32>
    "tpu.trace_start"() <{level = 10 : i32, message = "blh,bhk->blk"}> : () -> ()
    %cst_25 = arith.constant dense<0.000000e+00> : vector<2x8x64xf32>
    %15 = tpu.matmul %0, %14, %cst_25 {dimension_numbers = #tpu.dot_dimension_numbers<[2], [1], [1], [2], [0, 0, 0, 1, 1, 2], [0], [0]>} : vector<2x8x64xf32>, vector<2x64x64xf32>, vector<2x8x64xf32> -> vector<2x8x64xf32>
    "tpu.trace_stop"() : () -> ()
    %c0_26 = arith.constant 0 : index
    %c0_27 = arith.constant 0 : index
    %16 = vector.load %arg12[%c0_26, %c0_27] : memref<1x64xf32, #tpu.memory_space<vmem>>, vector<1x64xf32>
    %17 = vector.shape_cast %16 : vector<1x64xf32> to vector<1x1x64xf32>
    %18 = vector.broadcast %17 : vector<1x1x64xf32> to vector<2x8x64xf32>
    %19 = arith.addf %15, %18 : vector<2x8x64xf32>
    %c0_28 = arith.constant 0 : index
    %c0_29 = arith.constant 0 : index
    %20 = vector.load %arg13[%c0_28, %c0_29] : memref<1x64xf32, #tpu.memory_space<vmem>>, vector<1x64xf32>
    %21 = vector.shape_cast %20 : vector<1x64xf32> to vector<1x1x64xf32>
    %22 = vector.shape_cast %21 : vector<1x1x64xf32> to vector<1x1x64xf32>
    %23 = vector.broadcast %22 : vector<1x1x64xf32> to vector<2x8x64xf32>
    %c0_30 = arith.constant 0 : index
    %c0_31 = arith.constant 0 : index
    %24 = vector.load %arg2[%c0_30, %c0_31] : memref<2x32xf32, #tpu.memory_space<vmem>>, vector<2x32xf32>
    %c0_32 = arith.constant 0 : index
    %c0_33 = arith.constant 0 : index
    %25 = vector.load %arg3[%c0_32, %c0_33] : memref<2x32xf32, #tpu.memory_space<vmem>>, vector<2x32xf32>
    %cst_34 = arith.constant dense<0.000000e+00> : vector<2x64xf32>
    %26 = tpu.matmul %25, %3, %cst_34 {dimension_numbers = #tpu.dot_dimension_numbers<[1], [0], [0], [1], [0, 0, 1, 1], [], []>} : vector<2x32xf32>, vector<32x64xf32>, vector<2x64xf32> -> vector<2x64xf32>
    %27 = vector.shape_cast %26 : vector<2x64xf32> to vector<2x1x64xf32>
    %28 = vector.broadcast %27 : vector<2x1x64xf32> to vector<2x8x64xf32>
    %29 = arith.addf %19, %28 : vector<2x8x64xf32>
    %30 = math.tanh %29 : vector<2x8x64xf32>
    %31 = arith.mulf %23, %30 : vector<2x8x64xf32>
    %cst_35 = arith.constant dense<0xFF800000> : vector<2x64xf32>
    %32 = vector.multi_reduction <maximumf>, %31, %cst_35 [1] : vector<2x8x64xf32> to vector<2x64xf32>
    %33 = vector.shape_cast %32 : vector<2x64xf32> to vector<2x1x64xf32>
    %34 = vector.broadcast %33 : vector<2x1x64xf32> to vector<2x8x64xf32>
    %35 = arith.subf %31, %34 : vector<2x8x64xf32>
    %36 = math.exp %35 : vector<2x8x64xf32>
    %cst_36 = arith.constant dense<0.000000e+00> : vector<2x64xf32>
    %37 = vector.multi_reduction <add>, %36, %cst_36 [1] : vector<2x8x64xf32> to vector<2x64xf32>
    %38 = vector.shape_cast %37 : vector<2x64xf32> to vector<2x1x64xf32>
    %39 = vector.broadcast %38 : vector<2x1x64xf32> to vector<2x8x64xf32>
    %40 = arith.divf %36, %39 : vector<2x8x64xf32>
    %41 = arith.mulf %0, %40 : vector<2x8x64xf32>
    %cst_37 = arith.constant dense<0.000000e+00> : vector<2x64xf32>
    %42 = vector.multi_reduction <add>, %41, %cst_37 [1] : vector<2x8x64xf32> to vector<2x64xf32>
    %43 = vector.extract_strided_slice %7 {offsets = [0, 0], sizes = [2, 128], strides = [1, 1]} : vector<16x128xf32> to vector<2x128xf32>
    %44 = arith.addf %43, %13 : vector<2x128xf32>
    %cst_38 = arith.constant dense<0.000000e+00> : vector<2x128xf32>
    %45 = tpu.matmul %42, %1, %cst_38 {dimension_numbers = #tpu.dot_dimension_numbers<[1], [0], [0], [1], [0, 0, 1, 1], [], []>} : vector<2x64xf32>, vector<64x128xf32>, vector<2x128xf32> -> vector<2x128xf32>
    %46 = arith.addf %44, %45 : vector<2x128xf32>
    %cst_39 = arith.constant dense<0.000000e+00> : vector<2x128xf32>
    %47 = tpu.matmul %24, %2, %cst_39 {dimension_numbers = #tpu.dot_dimension_numbers<[1], [0], [0], [1], [0, 0, 1, 1], [], []>} : vector<2x32xf32>, vector<32x128xf32>, vector<2x128xf32> -> vector<2x128xf32>
    %48 = arith.addf %46, %47 : vector<2x128xf32>
    %49 = vector.extract_strided_slice %48 {offsets = [0, 0], sizes = [2, 32], strides = [1, 1]} : vector<2x128xf32> to vector<2x32xf32>
    %50 = arith.negf %49 : vector<2x32xf32>
    %51 = math.exp %50 : vector<2x32xf32>
    %cst_40 = arith.constant 1.000000e+00 : f32
    %52 = vector.broadcast %cst_40 : f32 to vector<2x32xf32>
    %53 = arith.addf %52, %51 : vector<2x32xf32>
    %54 = arith.divf %52, %53 : vector<2x32xf32>
    %55 = vector.extract_strided_slice %48 {offsets = [0, 32], sizes = [2, 32], strides = [1, 1]} : vector<2x128xf32> to vector<2x32xf32>
    %56 = arith.negf %55 : vector<2x32xf32>
    %57 = math.exp %56 : vector<2x32xf32>
    %cst_41 = arith.constant 1.000000e+00 : f32
    %58 = vector.broadcast %cst_41 : f32 to vector<2x32xf32>
    %59 = arith.addf %58, %57 : vector<2x32xf32>
    %60 = arith.divf %58, %59 : vector<2x32xf32>
    %61 = vector.extract_strided_slice %48 {offsets = [0, 64], sizes = [2, 32], strides = [1, 1]} : vector<2x128xf32> to vector<2x32xf32>
    %62 = math.tanh %61 : vector<2x32xf32>
    %63 = vector.extract_strided_slice %48 {offsets = [0, 96], sizes = [2, 32], strides = [1, 1]} : vector<2x128xf32> to vector<2x32xf32>
    %64 = arith.negf %63 : vector<2x32xf32>
    %65 = math.exp %64 : vector<2x32xf32>
    %cst_42 = arith.constant 1.000000e+00 : f32
    %66 = vector.broadcast %cst_42 : f32 to vector<2x32xf32>
    %67 = arith.addf %66, %65 : vector<2x32xf32>
    %68 = arith.divf %66, %67 : vector<2x32xf32>
    %69 = arith.mulf %60, %25 : vector<2x32xf32>
    %70 = arith.mulf %54, %62 : vector<2x32xf32>
    %71 = arith.addf %69, %70 : vector<2x32xf32>
    %72 = math.tanh %71 : vector<2x32xf32>
    %73 = arith.mulf %68, %72 : vector<2x32xf32>
    %c0_43 = arith.constant 0 : index
    %c0_44 = arith.constant 0 : index
    %74 = vector.load %arg20[%c0_43, %c0_44] : memref<16x32xf32, #tpu.memory_space<vmem>>, vector<2x32xf32>
    tpu.vector_store %arg20[%c0_43, %c0_44], %71 {strides = array<i32>} : memref<16x32xf32, #tpu.memory_space<vmem>>, vector<2x32xf32>,
    %cst_45 = arith.constant dense<0.000000e+00> : vector<2x64xf32>
    %75 = tpu.matmul %71, %3, %cst_45 {dimension_numbers = #tpu.dot_dimension_numbers<[1], [0], [0], [1], [0, 0, 1, 1], [], []>} : vector<2x32xf32>, vector<32x64xf32>, vector<2x64xf32> -> vector<2x64xf32>
    %76 = vector.shape_cast %75 : vector<2x64xf32> to vector<2x1x64xf32>
    %77 = vector.broadcast %76 : vector<2x1x64xf32> to vector<2x8x64xf32>
    %78 = arith.addf %19, %77 : vector<2x8x64xf32>
    %79 = math.tanh %78 : vector<2x8x64xf32>
    %80 = arith.mulf %23, %79 : vector<2x8x64xf32>
    %cst_46 = arith.constant dense<0xFF800000> : vector<2x64xf32>
    %81 = vector.multi_reduction <maximumf>, %80, %cst_46 [1] : vector<2x8x64xf32> to vector<2x64xf32>
    %82 = vector.shape_cast %81 : vector<2x64xf32> to vector<2x1x64xf32>
    %83 = vector.broadcast %82 : vector<2x1x64xf32> to vector<2x8x64xf32>
    %84 = arith.subf %80, %83 : vector<2x8x64xf32>
    %85 = math.exp %84 : vector<2x8x64xf32>
    %cst_47 = arith.constant dense<0.000000e+00> : vector<2x64xf32>
    %86 = vector.multi_reduction <add>, %85, %cst_47 [1] : vector<2x8x64xf32> to vector<2x64xf32>
    %87 = vector.shape_cast %86 : vector<2x64xf32> to vector<2x1x64xf32>
    %88 = vector.broadcast %87 : vector<2x1x64xf32> to vector<2x8x64xf32>
    %89 = arith.divf %85, %88 : vector<2x8x64xf32>
    %90 = arith.mulf %0, %89 : vector<2x8x64xf32>
    %cst_48 = arith.constant dense<0.000000e+00> : vector<2x64xf32>
    %91 = vector.multi_reduction <add>, %90, %cst_48 [1] : vector<2x8x64xf32> to vector<2x64xf32>
    %92 = vector.extract_strided_slice %7 {offsets = [2, 0], sizes = [2, 128], strides = [1, 1]} : vector<16x128xf32> to vector<2x128xf32>
    %93 = arith.addf %92, %13 : vector<2x128xf32>
    %cst_49 = arith.constant dense<0.000000e+00> : vector<2x128xf32>
    %94 = tpu.matmul %91, %1, %cst_49 {dimension_numbers = #tpu.dot_dimension_numbers<[1], [0], [0], [1], [0, 0, 1, 1], [], []>} : vector<2x64xf32>, vector<64x128xf32>, vector<2x128xf32> -> vector<2x128xf32>
    %95 = arith.addf %93, %94 : vector<2x128xf32>
    %cst_50 = arith.constant dense<0.000000e+00> : vector<2x128xf32>
    %96 = tpu.matmul %73, %2, %cst_50 {dimension_numbers = #tpu.dot_dimension_numbers<[1], [0], [0], [1], [0, 0, 1, 1], [], []>} : vector<2x32xf32>, vector<32x128xf32>, vector<2x128xf32> -> vector<2x128xf32>
    %97 = arith.addf %95, %96 : vector<2x128xf32>
    %98 = vector.extract_strided_slice %97 {offsets = [0, 0], sizes = [2, 32], strides = [1, 1]} : vector<2x128xf32> to vector<2x32xf32>
    %99 = arith.negf %98 : vector<2x32xf32>
    %100 = math.exp %99 : vector<2x32xf32>
    %cst_51 = arith.constant 1.000000e+00 : f32
    %101 = vector.broadcast %cst_51 : f32 to vector<2x32xf32>
    %102 = arith.addf %101, %100 : vector<2x32xf32>
    %103 = arith.divf %101, %102 : vector<2x32xf32>
    %104 = vector.extract_strided_slice %97 {offsets = [0, 32], sizes = [2, 32], strides = [1, 1]} : vector<2x128xf32> to vector<2x32xf32>
    %105 = arith.negf %104 : vector<2x32xf32>
    %106 = math.exp %105 : vector<2x32xf32>
    %cst_52 = arith.constant 1.000000e+00 : f32
    %107 = vector.broadcast %cst_52 : f32 to vector<2x32xf32>
    %108 = arith.addf %107, %106 : vector<2x32xf32>
    %109 = arith.divf %107, %108 : vector<2x32xf32>
    %110 = vector.extract_strided_slice %97 {offsets = [0, 64], sizes = [2, 32], strides = [1, 1]} : vector<2x128xf32> to vector<2x32xf32>
    %111 = math.tanh %110 : vector<2x32xf32>
    %112 = vector.extract_strided_slice %97 {offsets = [0, 96], sizes = [2, 32], strides = [1, 1]} : vector<2x128xf32> to vector<2x32xf32>
    %113 = arith.negf %112 : vector<2x32xf32>
    %114 = math.exp %113 : vector<2x32xf32>
    %cst_53 = arith.constant 1.000000e+00 : f32
    %115 = vector.broadcast %cst_53 : f32 to vector<2x32xf32>
    %116 = arith.addf %115, %114 : vector<2x32xf32>
    %117 = arith.divf %115, %116 : vector<2x32xf32>
    %118 = arith.mulf %109, %71 : vector<2x32xf32>
    %119 = arith.mulf %103, %111 : vector<2x32xf32>
    %120 = arith.addf %118, %119 : vector<2x32xf32>
    %121 = math.tanh %120 : vector<2x32xf32>
    %122 = arith.mulf %117, %121 : vector<2x32xf32>
    %c2 = arith.constant 2 : index
    %c0_54 = arith.constant 0 : index
    %123 = vector.load %arg20[%c2, %c0_54] : memref<16x32xf32, #tpu.memory_space<vmem>>, vector<2x32xf32>
    tpu.vector_store %arg20[%c2, %c0_54], %120 {strides = array<i32>} : memref<16x32xf32, #tpu.memory_space<vmem>>, vector<2x32xf32>,
    "tpu.trace_start"() <{level = 10 : i32, message = "blh,bhk->blk"}> : () -> ()
    %cst_55 = arith.constant dense<0.000000e+00> : vector<2x8x64xf32>
    %124 = tpu.matmul %89, %4, %cst_55 {dimension_numbers = #tpu.dot_dimension_numbers<[2], [1], [1], [2], [0, 0, 0, 1, 1, 2], [0], [0]>} : vector<2x8x64xf32>, vector<2x64x64xf32>, vector<2x8x64xf32> -> vector<2x8x64xf32>
    "tpu.trace_stop"() : () -> ()
    %cst_56 = arith.constant dense<0.000000e+00> : vector<2x64xf32>
    %125 = tpu.matmul %120, %3, %cst_56 {dimension_numbers = #tpu.dot_dimension_numbers<[1], [0], [0], [1], [0, 0, 1, 1], [], []>} : vector<2x32xf32>, vector<32x64xf32>, vector<2x64xf32> -> vector<2x64xf32>
    %126 = vector.shape_cast %125 : vector<2x64xf32> to vector<2x1x64xf32>
    %127 = vector.broadcast %126 : vector<2x1x64xf32> to vector<2x8x64xf32>
    %128 = arith.addf %19, %127 : vector<2x8x64xf32>
    %129 = arith.addf %128, %124 : vector<2x8x64xf32>
    %130 = math.tanh %129 : vector<2x8x64xf32>
    %131 = arith.mulf %23, %130 : vector<2x8x64xf32>
    %cst_57 = arith.constant dense<0xFF800000> : vector<2x64xf32>
    %132 = vector.multi_reduction <maximumf>, %131, %cst_57 [1] : vector<2x8x64xf32> to vector<2x64xf32>
    %133 = vector.shape_cast %132 : vector<2x64xf32> to vector<2x1x64xf32>
    %134 = vector.broadcast %133 : vector<2x1x64xf32> to vector<2x8x64xf32>
    %135 = arith.subf %131, %134 : vector<2x8x64xf32>
    %136 = math.exp %135 : vector<2x8x64xf32>
    %cst_58 = arith.constant dense<0.000000e+00> : vector<2x64xf32>
    %137 = vector.multi_reduction <add>, %136, %cst_58 [1] : vector<2x8x64xf32> to vector<2x64xf32>
    %138 = vector.shape_cast %137 : vector<2x64xf32> to vector<2x1x64xf32>
    %139 = vector.broadcast %138 : vector<2x1x64xf32> to vector<2x8x64xf32>
    %140 = arith.divf %136, %139 : vector<2x8x64xf32>
    %141 = arith.mulf %0, %140 : vector<2x8x64xf32>
    %cst_59 = arith.constant dense<0.000000e+00> : vector<2x64xf32>
    %142 = vector.multi_reduction <add>, %141, %cst_59 [1] : vector<2x8x64xf32> to vector<2x64xf32>
    %143 = arith.addf %89, %140 : vector<2x8x64xf32>
    %144 = arith.minimumf %143, %140 : vector<2x8x64xf32>
    %145 = arith.addf %89, %144 : vector<2x8x64xf32>
    %c0_60 = arith.constant 0 : index
    %c0_61 = arith.constant 0 : index
    %146 = vector.load %arg21[%c0_60, %c0_61] : memref<16x64xf32, #tpu.memory_space<vmem>>, vector<2x64xf32>
    tpu.vector_store %arg21[%c0_60, %c0_61], %142 {strides = array<i32>} : memref<16x64xf32, #tpu.memory_space<vmem>>, vector<2x64xf32>,
    %147 = vector.extract_strided_slice %7 {offsets = [4, 0], sizes = [2, 128], strides = [1, 1]} : vector<16x128xf32> to vector<2x128xf32>
    %148 = arith.addf %147, %13 : vector<2x128xf32>
    %cst_62 = arith.constant dense<0.000000e+00> : vector<2x128xf32>
    %149 = tpu.matmul %142, %1, %cst_62 {dimension_numbers = #tpu.dot_dimension_numbers<[1], [0], [0], [1], [0, 0, 1, 1], [], []>} : vector<2x64xf32>, vector<64x128xf32>, vector<2x128xf32> -> vector<2x128xf32>
    %150 = arith.addf %148, %149 : vector<2x128xf32>
    %cst_63 = arith.constant dense<0.000000e+00> : vector<2x128xf32>
    %151 = tpu.matmul %122, %2, %cst_63 {dimension_numbers = #tpu.dot_dimension_numbers<[1], [0], [0], [1], [0, 0, 1, 1], [], []>} : vector<2x32xf32>, vector<32x128xf32>, vector<2x128xf32> -> vector<2x128xf32>
    %152 = arith.addf %150, %151 : vector<2x128xf32>
    %153 = vector.extract_strided_slice %152 {offsets = [0, 0], sizes = [2, 32], strides = [1, 1]} : vector<2x128xf32> to vector<2x32xf32>
    %154 = arith.negf %153 : vector<2x32xf32>
    %155 = math.exp %154 : vector<2x32xf32>
    %cst_64 = arith.constant 1.000000e+00 : f32
    %156 = vector.broadcast %cst_64 : f32 to vector<2x32xf32>
    %157 = arith.addf %156, %155 : vector<2x32xf32>
    %158 = arith.divf %156, %157 : vector<2x32xf32>
    %159 = vector.extract_strided_slice %152 {offsets = [0, 32], sizes = [2, 32], strides = [1, 1]} : vector<2x128xf32> to vector<2x32xf32>
    %160 = arith.negf %159 : vector<2x32xf32>
    %161 = math.exp %160 : vector<2x32xf32>
    %cst_65 = arith.constant 1.000000e+00 : f32
    %162 = vector.broadcast %cst_65 : f32 to vector<2x32xf32>
    %163 = arith.addf %162, %161 : vector<2x32xf32>
    %164 = arith.divf %162, %163 : vector<2x32xf32>
    %165 = vector.extract_strided_slice %152 {offsets = [0, 64], sizes = [2, 32], strides = [1, 1]} : vector<2x128xf32> to vector<2x32xf32>
    %166 = math.tanh %165 : vector<2x32xf32>
    %167 = vector.extract_strided_slice %152 {offsets = [0, 96], sizes = [2, 32], strides = [1, 1]} : vector<2x128xf32> to vector<2x32xf32>
    %168 = arith.negf %167 : vector<2x32xf32>
    %169 = math.exp %168 : vector<2x32xf32>
    %cst_66 = arith.constant 1.000000e+00 : f32
    %170 = vector.broadcast %cst_66 : f32 to vector<2x32xf32>
    %171 = arith.addf %170, %169 : vector<2x32xf32>
    %172 = arith.divf %170, %171 : vector<2x32xf32>
    %173 = arith.mulf %164, %120 : vector<2x32xf32>
    %174 = arith.mulf %158, %166 : vector<2x32xf32>
    %175 = arith.addf %173, %174 : vector<2x32xf32>
    %176 = math.tanh %175 : vector<2x32xf32>
    %177 = arith.mulf %172, %176 : vector<2x32xf32>
    %c4 = arith.constant 4 : index
    %c0_67 = arith.constant 0 : index
    %178 = vector.load %arg20[%c4, %c0_67] : memref<16x32xf32, #tpu.memory_space<vmem>>, vector<2x32xf32>
    tpu.vector_store %arg20[%c4, %c0_67], %175 {strides = array<i32>} : memref<16x32xf32, #tpu.memory_space<vmem>>, vector<2x32xf32>,
    "tpu.trace_start"() <{level = 10 : i32, message = "blh,bhk->blk"}> : () -> ()
    %cst_68 = arith.constant dense<0.000000e+00> : vector<2x8x64xf32>
    %179 = tpu.matmul %143, %4, %cst_68 {dimension_numbers = #tpu.dot_dimension_numbers<[2], [1], [1], [2], [0, 0, 0, 1, 1, 2], [0], [0]>} : vector<2x8x64xf32>, vector<2x64x64xf32>, vector<2x8x64xf32> -> vector<2x8x64xf32>
    "tpu.trace_stop"() : () -> ()
    %cst_69 = arith.constant dense<0.000000e+00> : vector<2x64xf32>
    %180 = tpu.matmul %175, %3, %cst_69 {dimension_numbers = #tpu.dot_dimension_numbers<[1], [0], [0], [1], [0, 0, 1, 1], [], []>} : vector<2x32xf32>, vector<32x64xf32>, vector<2x64xf32> -> vector<2x64xf32>
    %181 = vector.shape_cast %180 : vector<2x64xf32> to vector<2x1x64xf32>
    %182 = vector.broadcast %181 : vector<2x1x64xf32> to vector<2x8x64xf32>
    %183 = arith.addf %19, %182 : vector<2x8x64xf32>
    %184 = arith.addf %183, %179 : vector<2x8x64xf32>
    %185 = math.tanh %184 : vector<2x8x64xf32>
    %186 = arith.mulf %23, %185 : vector<2x8x64xf32>
    %cst_70 = arith.constant dense<0xFF800000> : vector<2x64xf32>
    %187 = vector.multi_reduction <maximumf>, %186, %cst_70 [1] : vector<2x8x64xf32> to vector<2x64xf32>
    %188 = vector.shape_cast %187 : vector<2x64xf32> to vector<2x1x64xf32>
    %189 = vector.broadcast %188 : vector<2x1x64xf32> to vector<2x8x64xf32>
    %190 = arith.subf %186, %189 : vector<2x8x64xf32>
    %191 = math.exp %190 : vector<2x8x64xf32>
    %cst_71 = arith.constant dense<0.000000e+00> : vector<2x64xf32>
    %192 = vector.multi_reduction <add>, %191, %cst_71 [1] : vector<2x8x64xf32> to vector<2x64xf32>
    %193 = vector.shape_cast %192 : vector<2x64xf32> to vector<2x1x64xf32>
    %194 = vector.broadcast %193 : vector<2x1x64xf32> to vector<2x8x64xf32>
    %195 = arith.divf %191, %194 : vector<2x8x64xf32>
    %196 = arith.mulf %0, %195 : vector<2x8x64xf32>
    %cst_72 = arith.constant dense<0.000000e+00> : vector<2x64xf32>
    %197 = vector.multi_reduction <add>, %196, %cst_72 [1] : vector<2x8x64xf32> to vector<2x64xf32>
    %198 = arith.addf %143, %195 : vector<2x8x64xf32>
    %199 = arith.minimumf %198, %195 : vector<2x8x64xf32>
    %200 = arith.addf %145, %199 : vector<2x8x64xf32>
    %c2_73 = arith.constant 2 : index
    %c0_74 = arith.constant 0 : index
    %201 = vector.load %arg21[%c2_73, %c0_74] : memref<16x64xf32, #tpu.memory_space<vmem>>, vector<2x64xf32>
    tpu.vector_store %arg21[%c2_73, %c0_74], %197 {strides = array<i32>} : memref<16x64xf32, #tpu.memory_space<vmem>>, vector<2x64xf32>,
    %202 = vector.extract_strided_slice %7 {offsets = [6, 0], sizes = [2, 128], strides = [1, 1]} : vector<16x128xf32> to vector<2x128xf32>
    %203 = arith.addf %202, %13 : vector<2x128xf32>
    %cst_75 = arith.constant dense<0.000000e+00> : vector<2x128xf32>
    %204 = tpu.matmul %197, %1, %cst_75 {dimension_numbers = #tpu.dot_dimension_numbers<[1], [0], [0], [1], [0, 0, 1, 1], [], []>} : vector<2x64xf32>, vector<64x128xf32>, vector<2x128xf32> -> vector<2x128xf32>
    %205 = arith.addf %203, %204 : vector<2x128xf32>
    %cst_76 = arith.constant dense<0.000000e+00> : vector<2x128xf32>
    %206 = tpu.matmul %177, %2, %cst_76 {dimension_numbers = #tpu.dot_dimension_numbers<[1], [0], [0], [1], [0, 0, 1, 1], [], []>} : vector<2x32xf32>, vector<32x128xf32>, vector<2x128xf32> -> vector<2x128xf32>
    %207 = arith.addf %205, %206 : vector<2x128xf32>
    %208 = vector.extract_strided_slice %207 {offsets = [0, 0], sizes = [2, 32], strides = [1, 1]} : vector<2x128xf32> to vector<2x32xf32>
    %209 = arith.negf %208 : vector<2x32xf32>
    %210 = math.exp %209 : vector<2x32xf32>
    %cst_77 = arith.constant 1.000000e+00 : f32
    %211 = vector.broadcast %cst_77 : f32 to vector<2x32xf32>
    %212 = arith.addf %211, %210 : vector<2x32xf32>
    %213 = arith.divf %211, %212 : vector<2x32xf32>
    %214 = vector.extract_strided_slice %207 {offsets = [0, 32], sizes = [2, 32], strides = [1, 1]} : vector<2x128xf32> to vector<2x32xf32>
    %215 = arith.negf %214 : vector<2x32xf32>
    %216 = math.exp %215 : vector<2x32xf32>
    %cst_78 = arith.constant 1.000000e+00 : f32
    %217 = vector.broadcast %cst_78 : f32 to vector<2x32xf32>
    %218 = arith.addf %217, %216 : vector<2x32xf32>
    %219 = arith.divf %217, %218 : vector<2x32xf32>
    %220 = vector.extract_strided_slice %207 {offsets = [0, 64], sizes = [2, 32], strides = [1, 1]} : vector<2x128xf32> to vector<2x32xf32>
    %221 = math.tanh %220 : vector<2x32xf32>
    %222 = vector.extract_strided_slice %207 {offsets = [0, 96], sizes = [2, 32], strides = [1, 1]} : vector<2x128xf32> to vector<2x32xf32>
    %223 = arith.negf %222 : vector<2x32xf32>
    %224 = math.exp %223 : vector<2x32xf32>
    %cst_79 = arith.constant 1.000000e+00 : f32
    %225 = vector.broadcast %cst_79 : f32 to vector<2x32xf32>
    %226 = arith.addf %225, %224 : vector<2x32xf32>
    %227 = arith.divf %225, %226 : vector<2x32xf32>
    %228 = arith.mulf %219, %175 : vector<2x32xf32>
    %229 = arith.mulf %213, %221 : vector<2x32xf32>
    %230 = arith.addf %228, %229 : vector<2x32xf32>
    %231 = math.tanh %230 : vector<2x32xf32>
    %232 = arith.mulf %227, %231 : vector<2x32xf32>
    %c6 = arith.constant 6 : index
    %c0_80 = arith.constant 0 : index
    %233 = vector.load %arg20[%c6, %c0_80] : memref<16x32xf32, #tpu.memory_space<vmem>>, vector<2x32xf32>
    tpu.vector_store %arg20[%c6, %c0_80], %230 {strides = array<i32>} : memref<16x32xf32, #tpu.memory_space<vmem>>, vector<2x32xf32>,
    "tpu.trace_start"() <{level = 10 : i32, message = "blh,bhk->blk"}> : () -> ()
    %cst_81 = arith.constant dense<0.000000e+00> : vector<2x8x64xf32>
    %234 = tpu.matmul %198, %4, %cst_81 {dimension_numbers = #tpu.dot_dimension_numbers<[2], [1], [1], [2], [0, 0, 0, 1, 1, 2], [0], [0]>} : vector<2x8x64xf32>, vector<2x64x64xf32>, vector<2x8x64xf32> -> vector<2x8x64xf32>
    "tpu.trace_stop"() : () -> ()
    %cst_82 = arith.constant dense<0.000000e+00> : vector<2x64xf32>
    %235 = tpu.matmul %230, %3, %cst_82 {dimension_numbers = #tpu.dot_dimension_numbers<[1], [0], [0], [1], [0, 0, 1, 1], [], []>} : vector<2x32xf32>, vector<32x64xf32>, vector<2x64xf32> -> vector<2x64xf32>
    %236 = vector.shape_cast %235 : vector<2x64xf32> to vector<2x1x64xf32>
    %237 = vector.broadcast %236 : vector<2x1x64xf32> to vector<2x8x64xf32>
    %238 = arith.addf %19, %237 : vector<2x8x64xf32>
    %239 = arith.addf %238, %234 : vector<2x8x64xf32>
    %240 = math.tanh %239 : vector<2x8x64xf32>
    %241 = arith.mulf %23, %240 : vector<2x8x64xf32>
    %cst_83 = arith.constant dense<0xFF800000> : vector<2x64xf32>
    %242 = vector.multi_reduction <maximumf>, %241, %cst_83 [1] : vector<2x8x64xf32> to vector<2x64xf32>
    %243 = vector.shape_cast %242 : vector<2x64xf32> to vector<2x1x64xf32>
    %244 = vector.broadcast %243 : vector<2x1x64xf32> to vector<2x8x64xf32>
    %245 = arith.subf %241, %244 : vector<2x8x64xf32>
    %246 = math.exp %245 : vector<2x8x64xf32>
    %cst_84 = arith.constant dense<0.000000e+00> : vector<2x64xf32>
    %247 = vector.multi_reduction <add>, %246, %cst_84 [1] : vector<2x8x64xf32> to vector<2x64xf32>
    %248 = vector.shape_cast %247 : vector<2x64xf32> to vector<2x1x64xf32>
    %249 = vector.broadcast %248 : vector<2x1x64xf32> to vector<2x8x64xf32>
    %250 = arith.divf %246, %249 : vector<2x8x64xf32>
    %251 = arith.mulf %0, %250 : vector<2x8x64xf32>
    %cst_85 = arith.constant dense<0.000000e+00> : vector<2x64xf32>
    %252 = vector.multi_reduction <add>, %251, %cst_85 [1] : vector<2x8x64xf32> to vector<2x64xf32>
    %253 = arith.addf %198, %250 : vector<2x8x64xf32>
    %254 = arith.minimumf %253, %250 : vector<2x8x64xf32>
    %255 = arith.addf %200, %254 : vector<2x8x64xf32>
    %c4_86 = arith.constant 4 : index
    %c0_87 = arith.constant 0 : index
    %256 = vector.load %arg21[%c4_86, %c0_87] : memref<16x64xf32, #tpu.memory_space<vmem>>, vector<2x64xf32>
    tpu.vector_store %arg21[%c4_86, %c0_87], %252 {strides = array<i32>} : memref<16x64xf32, #tpu.memory_space<vmem>>, vector<2x64xf32>,
    %257 = vector.extract_strided_slice %7 {offsets = [8, 0], sizes = [2, 128], strides = [1, 1]} : vector<16x128xf32> to vector<2x128xf32>
    %258 = arith.addf %257, %13 : vector<2x128xf32>
    %cst_88 = arith.constant dense<0.000000e+00> : vector<2x128xf32>
    %259 = tpu.matmul %252, %1, %cst_88 {dimension_numbers = #tpu.dot_dimension_numbers<[1], [0], [0], [1], [0, 0, 1, 1], [], []>} : vector<2x64xf32>, vector<64x128xf32>, vector<2x128xf32> -> vector<2x128xf32>
    %260 = arith.addf %258, %259 : vector<2x128xf32>
    %cst_89 = arith.constant dense<0.000000e+00> : vector<2x128xf32>
    %261 = tpu.matmul %232, %2, %cst_89 {dimension_numbers = #tpu.dot_dimension_numbers<[1], [0], [0], [1], [0, 0, 1, 1], [], []>} : vector<2x32xf32>, vector<32x128xf32>, vector<2x128xf32> -> vector<2x128xf32>
    %262 = arith.addf %260, %261 : vector<2x128xf32>
    %263 = vector.extract_strided_slice %262 {offsets = [0, 0], sizes = [2, 32], strides = [1, 1]} : vector<2x128xf32> to vector<2x32xf32>
    %264 = arith.negf %263 : vector<2x32xf32>
    %265 = math.exp %264 : vector<2x32xf32>
    %cst_90 = arith.constant 1.000000e+00 : f32
    %266 = vector.broadcast %cst_90 : f32 to vector<2x32xf32>
    %267 = arith.addf %266, %265 : vector<2x32xf32>
    %268 = arith.divf %266, %267 : vector<2x32xf32>
    %269 = vector.extract_strided_slice %262 {offsets = [0, 32], sizes = [2, 32], strides = [1, 1]} : vector<2x128xf32> to vector<2x32xf32>
    %270 = arith.negf %269 : vector<2x32xf32>
    %271 = math.exp %270 : vector<2x32xf32>
    %cst_91 = arith.constant 1.000000e+00 : f32
    %272 = vector.broadcast %cst_91 : f32 to vector<2x32xf32>
    %273 = arith.addf %272, %271 : vector<2x32xf32>
    %274 = arith.divf %272, %273 : vector<2x32xf32>
    %275 = vector.extract_strided_slice %262 {offsets = [0, 64], sizes = [2, 32], strides = [1, 1]} : vector<2x128xf32> to vector<2x32xf32>
    %276 = math.tanh %275 : vector<2x32xf32>
    %277 = vector.extract_strided_slice %262 {offsets = [0, 96], sizes = [2, 32], strides = [1, 1]} : vector<2x128xf32> to vector<2x32xf32>
    %278 = arith.negf %277 : vector<2x32xf32>
    %279 = math.exp %278 : vector<2x32xf32>
    %cst_92 = arith.constant 1.000000e+00 : f32
    %280 = vector.broadcast %cst_92 : f32 to vector<2x32xf32>
    %281 = arith.addf %280, %279 : vector<2x32xf32>
    %282 = arith.divf %280, %281 : vector<2x32xf32>
    %283 = arith.mulf %274, %230 : vector<2x32xf32>
    %284 = arith.mulf %268, %276 : vector<2x32xf32>
    %285 = arith.addf %283, %284 : vector<2x32xf32>
    %286 = math.tanh %285 : vector<2x32xf32>
    %287 = arith.mulf %282, %286 : vector<2x32xf32>
    %c8 = arith.constant 8 : index
    %c0_93 = arith.constant 0 : index
    %288 = vector.load %arg20[%c8, %c0_93] : memref<16x32xf32, #tpu.memory_space<vmem>>, vector<2x32xf32>
    tpu.vector_store %arg20[%c8, %c0_93], %285 {strides = array<i32>} : memref<16x32xf32, #tpu.memory_space<vmem>>, vector<2x32xf32>,
    "tpu.trace_start"() <{level = 10 : i32, message = "blh,bhk->blk"}> : () -> ()
    %cst_94 = arith.constant dense<0.000000e+00> : vector<2x8x64xf32>
    %289 = tpu.matmul %253, %4, %cst_94 {dimension_numbers = #tpu.dot_dimension_numbers<[2], [1], [1], [2], [0, 0, 0, 1, 1, 2], [0], [0]>} : vector<2x8x64xf32>, vector<2x64x64xf32>, vector<2x8x64xf32> -> vector<2x8x64xf32>
    "tpu.trace_stop"() : () -> ()
    %cst_95 = arith.constant dense<0.000000e+00> : vector<2x64xf32>
    %290 = tpu.matmul %285, %3, %cst_95 {dimension_numbers = #tpu.dot_dimension_numbers<[1], [0], [0], [1], [0, 0, 1, 1], [], []>} : vector<2x32xf32>, vector<32x64xf32>, vector<2x64xf32> -> vector<2x64xf32>
    %291 = vector.shape_cast %290 : vector<2x64xf32> to vector<2x1x64xf32>
    %292 = vector.broadcast %291 : vector<2x1x64xf32> to vector<2x8x64xf32>
    %293 = arith.addf %19, %292 : vector<2x8x64xf32>
    %294 = arith.addf %293, %289 : vector<2x8x64xf32>
    %295 = math.tanh %294 : vector<2x8x64xf32>
    %296 = arith.mulf %23, %295 : vector<2x8x64xf32>
    %cst_96 = arith.constant dense<0xFF800000> : vector<2x64xf32>
    %297 = vector.multi_reduction <maximumf>, %296, %cst_96 [1] : vector<2x8x64xf32> to vector<2x64xf32>
    %298 = vector.shape_cast %297 : vector<2x64xf32> to vector<2x1x64xf32>
    %299 = vector.broadcast %298 : vector<2x1x64xf32> to vector<2x8x64xf32>
    %300 = arith.subf %296, %299 : vector<2x8x64xf32>
    %301 = math.exp %300 : vector<2x8x64xf32>
    %cst_97 = arith.constant dense<0.000000e+00> : vector<2x64xf32>
    %302 = vector.multi_reduction <add>, %301, %cst_97 [1] : vector<2x8x64xf32> to vector<2x64xf32>
    %303 = vector.shape_cast %302 : vector<2x64xf32> to vector<2x1x64xf32>
    %304 = vector.broadcast %303 : vector<2x1x64xf32> to vector<2x8x64xf32>
    %305 = arith.divf %301, %304 : vector<2x8x64xf32>
    %306 = arith.mulf %0, %305 : vector<2x8x64xf32>
    %cst_98 = arith.constant dense<0.000000e+00> : vector<2x64xf32>
    %307 = vector.multi_reduction <add>, %306, %cst_98 [1] : vector<2x8x64xf32> to vector<2x64xf32>
    %308 = arith.addf %253, %305 : vector<2x8x64xf32>
    %309 = arith.minimumf %308, %305 : vector<2x8x64xf32>
    %310 = arith.addf %255, %309 : vector<2x8x64xf32>
    %c6_99 = arith.constant 6 : index
    %c0_100 = arith.constant 0 : index
    %311 = vector.load %arg21[%c6_99, %c0_100] : memref<16x64xf32, #tpu.memory_space<vmem>>, vector<2x64xf32>
    tpu.vector_store %arg21[%c6_99, %c0_100], %307 {strides = array<i32>} : memref<16x64xf32, #tpu.memory_space<vmem>>, vector<2x64xf32>,
    %312 = vector.extract_strided_slice %7 {offsets = [10, 0], sizes = [2, 128], strides = [1, 1]} : vector<16x128xf32> to vector<2x128xf32>
    %313 = arith.addf %312, %13 : vector<2x128xf32>
    %cst_101 = arith.constant dense<0.000000e+00> : vector<2x128xf32>
    %314 = tpu.matmul %307, %1, %cst_101 {dimension_numbers = #tpu.dot_dimension_numbers<[1], [0], [0], [1], [0, 0, 1, 1], [], []>} : vector<2x64xf32>, vector<64x128xf32>, vector<2x128xf32> -> vector<2x128xf32>
    %315 = arith.addf %313, %314 : vector<2x128xf32>
    %cst_102 = arith.constant dense<0.000000e+00> : vector<2x128xf32>
    %316 = tpu.matmul %287, %2, %cst_102 {dimension_numbers = #tpu.dot_dimension_numbers<[1], [0], [0], [1], [0, 0, 1, 1], [], []>} : vector<2x32xf32>, vector<32x128xf32>, vector<2x128xf32> -> vector<2x128xf32>
    %317 = arith.addf %315, %316 : vector<2x128xf32>
    %318 = vector.extract_strided_slice %317 {offsets = [0, 0], sizes = [2, 32], strides = [1, 1]} : vector<2x128xf32> to vector<2x32xf32>
    %319 = arith.negf %318 : vector<2x32xf32>
    %320 = math.exp %319 : vector<2x32xf32>
    %cst_103 = arith.constant 1.000000e+00 : f32
    %321 = vector.broadcast %cst_103 : f32 to vector<2x32xf32>
    %322 = arith.addf %321, %320 : vector<2x32xf32>
    %323 = arith.divf %321, %322 : vector<2x32xf32>
    %324 = vector.extract_strided_slice %317 {offsets = [0, 32], sizes = [2, 32], strides = [1, 1]} : vector<2x128xf32> to vector<2x32xf32>
    %325 = arith.negf %324 : vector<2x32xf32>
    %326 = math.exp %325 : vector<2x32xf32>
    %cst_104 = arith.constant 1.000000e+00 : f32
    %327 = vector.broadcast %cst_104 : f32 to vector<2x32xf32>
    %328 = arith.addf %327, %326 : vector<2x32xf32>
    %329 = arith.divf %327, %328 : vector<2x32xf32>
    %330 = vector.extract_strided_slice %317 {offsets = [0, 64], sizes = [2, 32], strides = [1, 1]} : vector<2x128xf32> to vector<2x32xf32>
    %331 = math.tanh %330 : vector<2x32xf32>
    %332 = vector.extract_strided_slice %317 {offsets = [0, 96], sizes = [2, 32], strides = [1, 1]} : vector<2x128xf32> to vector<2x32xf32>
    %333 = arith.negf %332 : vector<2x32xf32>
    %334 = math.exp %333 : vector<2x32xf32>
    %cst_105 = arith.constant 1.000000e+00 : f32
    %335 = vector.broadcast %cst_105 : f32 to vector<2x32xf32>
    %336 = arith.addf %335, %334 : vector<2x32xf32>
    %337 = arith.divf %335, %336 : vector<2x32xf32>
    %338 = arith.mulf %329, %285 : vector<2x32xf32>
    %339 = arith.mulf %323, %331 : vector<2x32xf32>
    %340 = arith.addf %338, %339 : vector<2x32xf32>
    %341 = math.tanh %340 : vector<2x32xf32>
    %342 = arith.mulf %337, %341 : vector<2x32xf32>
    %c10 = arith.constant 10 : index
    %c0_106 = arith.constant 0 : index
    %343 = vector.load %arg20[%c10, %c0_106] : memref<16x32xf32, #tpu.memory_space<vmem>>, vector<2x32xf32>
    tpu.vector_store %arg20[%c10, %c0_106], %340 {strides = array<i32>} : memref<16x32xf32, #tpu.memory_space<vmem>>, vector<2x32xf32>,
    "tpu.trace_start"() <{level = 10 : i32, message = "blh,bhk->blk"}> : () -> ()
    %cst_107 = arith.constant dense<0.000000e+00> : vector<2x8x64xf32>
    %344 = tpu.matmul %308, %4, %cst_107 {dimension_numbers = #tpu.dot_dimension_numbers<[2], [1], [1], [2], [0, 0, 0, 1, 1, 2], [0], [0]>} : vector<2x8x64xf32>, vector<2x64x64xf32>, vector<2x8x64xf32> -> vector<2x8x64xf32>
    "tpu.trace_stop"() : () -> ()
    %cst_108 = arith.constant dense<0.000000e+00> : vector<2x64xf32>
    %345 = tpu.matmul %340, %3, %cst_108 {dimension_numbers = #tpu.dot_dimension_numbers<[1], [0], [0], [1], [0, 0, 1, 1], [], []>} : vector<2x32xf32>, vector<32x64xf32>, vector<2x64xf32> -> vector<2x64xf32>
    %346 = vector.shape_cast %345 : vector<2x64xf32> to vector<2x1x64xf32>
    %347 = vector.broadcast %346 : vector<2x1x64xf32> to vector<2x8x64xf32>
    %348 = arith.addf %19, %347 : vector<2x8x64xf32>
    %349 = arith.addf %348, %344 : vector<2x8x64xf32>
    %350 = math.tanh %349 : vector<2x8x64xf32>
    %351 = arith.mulf %23, %350 : vector<2x8x64xf32>
    %cst_109 = arith.constant dense<0xFF800000> : vector<2x64xf32>
    %352 = vector.multi_reduction <maximumf>, %351, %cst_109 [1] : vector<2x8x64xf32> to vector<2x64xf32>
    %353 = vector.shape_cast %352 : vector<2x64xf32> to vector<2x1x64xf32>
    %354 = vector.broadcast %353 : vector<2x1x64xf32> to vector<2x8x64xf32>
    %355 = arith.subf %351, %354 : vector<2x8x64xf32>
    %356 = math.exp %355 : vector<2x8x64xf32>
    %cst_110 = arith.constant dense<0.000000e+00> : vector<2x64xf32>
    %357 = vector.multi_reduction <add>, %356, %cst_110 [1] : vector<2x8x64xf32> to vector<2x64xf32>
    %358 = vector.shape_cast %357 : vector<2x64xf32> to vector<2x1x64xf32>
    %359 = vector.broadcast %358 : vector<2x1x64xf32> to vector<2x8x64xf32>
    %360 = arith.divf %356, %359 : vector<2x8x64xf32>
    %361 = arith.mulf %0, %360 : vector<2x8x64xf32>
    %cst_111 = arith.constant dense<0.000000e+00> : vector<2x64xf32>
    %362 = vector.multi_reduction <add>, %361, %cst_111 [1] : vector<2x8x64xf32> to vector<2x64xf32>
    %363 = arith.addf %308, %360 : vector<2x8x64xf32>
    %364 = arith.minimumf %363, %360 : vector<2x8x64xf32>
    %365 = arith.addf %310, %364 : vector<2x8x64xf32>
    %c8_112 = arith.constant 8 : index
    %c0_113 = arith.constant 0 : index
    %366 = vector.load %arg21[%c8_112, %c0_113] : memref<16x64xf32, #tpu.memory_space<vmem>>, vector<2x64xf32>
    tpu.vector_store %arg21[%c8_112, %c0_113], %362 {strides = array<i32>} : memref<16x64xf32, #tpu.memory_space<vmem>>, vector<2x64xf32>,
    %367 = vector.extract_strided_slice %7 {offsets = [12, 0], sizes = [2, 128], strides = [1, 1]} : vector<16x128xf32> to vector<2x128xf32>
    %368 = arith.addf %367, %13 : vector<2x128xf32>
    %cst_114 = arith.constant dense<0.000000e+00> : vector<2x128xf32>
    %369 = tpu.matmul %362, %1, %cst_114 {dimension_numbers = #tpu.dot_dimension_numbers<[1], [0], [0], [1], [0, 0, 1, 1], [], []>} : vector<2x64xf32>, vector<64x128xf32>, vector<2x128xf32> -> vector<2x128xf32>
    %370 = arith.addf %368, %369 : vector<2x128xf32>
    %cst_115 = arith.constant dense<0.000000e+00> : vector<2x128xf32>
    %371 = tpu.matmul %342, %2, %cst_115 {dimension_numbers = #tpu.dot_dimension_numbers<[1], [0], [0], [1], [0, 0, 1, 1], [], []>} : vector<2x32xf32>, vector<32x128xf32>, vector<2x128xf32> -> vector<2x128xf32>
    %372 = arith.addf %370, %371 : vector<2x128xf32>
    %373 = vector.extract_strided_slice %372 {offsets = [0, 0], sizes = [2, 32], strides = [1, 1]} : vector<2x128xf32> to vector<2x32xf32>
    %374 = arith.negf %373 : vector<2x32xf32>
    %375 = math.exp %374 : vector<2x32xf32>
    %cst_116 = arith.constant 1.000000e+00 : f32
    %376 = vector.broadcast %cst_116 : f32 to vector<2x32xf32>
    %377 = arith.addf %376, %375 : vector<2x32xf32>
    %378 = arith.divf %376, %377 : vector<2x32xf32>
    %379 = vector.extract_strided_slice %372 {offsets = [0, 32], sizes = [2, 32], strides = [1, 1]} : vector<2x128xf32> to vector<2x32xf32>
    %380 = arith.negf %379 : vector<2x32xf32>
    %381 = math.exp %380 : vector<2x32xf32>
    %cst_117 = arith.constant 1.000000e+00 : f32
    %382 = vector.broadcast %cst_117 : f32 to vector<2x32xf32>
    %383 = arith.addf %382, %381 : vector<2x32xf32>
    %384 = arith.divf %382, %383 : vector<2x32xf32>
    %385 = vector.extract_strided_slice %372 {offsets = [0, 64], sizes = [2, 32], strides = [1, 1]} : vector<2x128xf32> to vector<2x32xf32>
    %386 = math.tanh %385 : vector<2x32xf32>
    %387 = vector.extract_strided_slice %372 {offsets = [0, 96], sizes = [2, 32], strides = [1, 1]} : vector<2x128xf32> to vector<2x32xf32>
    %388 = arith.negf %387 : vector<2x32xf32>
    %389 = math.exp %388 : vector<2x32xf32>
    %cst_118 = arith.constant 1.000000e+00 : f32
    %390 = vector.broadcast %cst_118 : f32 to vector<2x32xf32>
    %391 = arith.addf %390, %389 : vector<2x32xf32>
    %392 = arith.divf %390, %391 : vector<2x32xf32>
    %393 = arith.mulf %384, %340 : vector<2x32xf32>
    %394 = arith.mulf %378, %386 : vector<2x32xf32>
    %395 = arith.addf %393, %394 : vector<2x32xf32>
    %396 = math.tanh %395 : vector<2x32xf32>
    %397 = arith.mulf %392, %396 : vector<2x32xf32>
    %c12 = arith.constant 12 : index
    %c0_119 = arith.constant 0 : index
    %398 = vector.load %arg20[%c12, %c0_119] : memref<16x32xf32, #tpu.memory_space<vmem>>, vector<2x32xf32>
    tpu.vector_store %arg20[%c12, %c0_119], %395 {strides = array<i32>} : memref<16x32xf32, #tpu.memory_space<vmem>>, vector<2x32xf32>,
    "tpu.trace_start"() <{level = 10 : i32, message = "blh,bhk->blk"}> : () -> ()
    %cst_120 = arith.constant dense<0.000000e+00> : vector<2x8x64xf32>
    %399 = tpu.matmul %363, %4, %cst_120 {dimension_numbers = #tpu.dot_dimension_numbers<[2], [1], [1], [2], [0, 0, 0, 1, 1, 2], [0], [0]>} : vector<2x8x64xf32>, vector<2x64x64xf32>, vector<2x8x64xf32> -> vector<2x8x64xf32>
    "tpu.trace_stop"() : () -> ()
    %cst_121 = arith.constant dense<0.000000e+00> : vector<2x64xf32>
    %400 = tpu.matmul %395, %3, %cst_121 {dimension_numbers = #tpu.dot_dimension_numbers<[1], [0], [0], [1], [0, 0, 1, 1], [], []>} : vector<2x32xf32>, vector<32x64xf32>, vector<2x64xf32> -> vector<2x64xf32>
    %401 = vector.shape_cast %400 : vector<2x64xf32> to vector<2x1x64xf32>
    %402 = vector.broadcast %401 : vector<2x1x64xf32> to vector<2x8x64xf32>
    %403 = arith.addf %19, %402 : vector<2x8x64xf32>
    %404 = arith.addf %403, %399 : vector<2x8x64xf32>
    %405 = math.tanh %404 : vector<2x8x64xf32>
    %406 = arith.mulf %23, %405 : vector<2x8x64xf32>
    %cst_122 = arith.constant dense<0xFF800000> : vector<2x64xf32>
    %407 = vector.multi_reduction <maximumf>, %406, %cst_122 [1] : vector<2x8x64xf32> to vector<2x64xf32>
    %408 = vector.shape_cast %407 : vector<2x64xf32> to vector<2x1x64xf32>
    %409 = vector.broadcast %408 : vector<2x1x64xf32> to vector<2x8x64xf32>
    %410 = arith.subf %406, %409 : vector<2x8x64xf32>
    %411 = math.exp %410 : vector<2x8x64xf32>
    %cst_123 = arith.constant dense<0.000000e+00> : vector<2x64xf32>
    %412 = vector.multi_reduction <add>, %411, %cst_123 [1] : vector<2x8x64xf32> to vector<2x64xf32>
    %413 = vector.shape_cast %412 : vector<2x64xf32> to vector<2x1x64xf32>
    %414 = vector.broadcast %413 : vector<2x1x64xf32> to vector<2x8x64xf32>
    %415 = arith.divf %411, %414 : vector<2x8x64xf32>
    %416 = arith.mulf %0, %415 : vector<2x8x64xf32>
    %cst_124 = arith.constant dense<0.000000e+00> : vector<2x64xf32>
    %417 = vector.multi_reduction <add>, %416, %cst_124 [1] : vector<2x8x64xf32> to vector<2x64xf32>
    %418 = arith.addf %363, %415 : vector<2x8x64xf32>
    %419 = arith.minimumf %418, %415 : vector<2x8x64xf32>
    %420 = arith.addf %365, %419 : vector<2x8x64xf32>
    %c10_125 = arith.constant 10 : index
    %c0_126 = arith.constant 0 : index
    %421 = vector.load %arg21[%c10_125, %c0_126] : memref<16x64xf32, #tpu.memory_space<vmem>>, vector<2x64xf32>
    tpu.vector_store %arg21[%c10_125, %c0_126], %417 {strides = array<i32>} : memref<16x64xf32, #tpu.memory_space<vmem>>, vector<2x64xf32>,
    %422 = vector.extract_strided_slice %7 {offsets = [14, 0], sizes = [2, 128], strides = [1, 1]} : vector<16x128xf32> to vector<2x128xf32>
    %423 = arith.addf %422, %13 : vector<2x128xf32>
    %cst_127 = arith.constant dense<0.000000e+00> : vector<2x128xf32>
    %424 = tpu.matmul %417, %1, %cst_127 {dimension_numbers = #tpu.dot_dimension_numbers<[1], [0], [0], [1], [0, 0, 1, 1], [], []>} : vector<2x64xf32>, vector<64x128xf32>, vector<2x128xf32> -> vector<2x128xf32>
    %425 = arith.addf %423, %424 : vector<2x128xf32>
    %cst_128 = arith.constant dense<0.000000e+00> : vector<2x128xf32>
    %426 = tpu.matmul %397, %2, %cst_128 {dimension_numbers = #tpu.dot_dimension_numbers<[1], [0], [0], [1], [0, 0, 1, 1], [], []>} : vector<2x32xf32>, vector<32x128xf32>, vector<2x128xf32> -> vector<2x128xf32>
    %427 = arith.addf %425, %426 : vector<2x128xf32>
    %428 = vector.extract_strided_slice %427 {offsets = [0, 0], sizes = [2, 32], strides = [1, 1]} : vector<2x128xf32> to vector<2x32xf32>
    %429 = arith.negf %428 : vector<2x32xf32>
    %430 = math.exp %429 : vector<2x32xf32>
    %cst_129 = arith.constant 1.000000e+00 : f32
    %431 = vector.broadcast %cst_129 : f32 to vector<2x32xf32>
    %432 = arith.addf %431, %430 : vector<2x32xf32>
    %433 = arith.divf %431, %432 : vector<2x32xf32>
    %434 = vector.extract_strided_slice %427 {offsets = [0, 32], sizes = [2, 32], strides = [1, 1]} : vector<2x128xf32> to vector<2x32xf32>
    %435 = arith.negf %434 : vector<2x32xf32>
    %436 = math.exp %435 : vector<2x32xf32>
    %cst_130 = arith.constant 1.000000e+00 : f32
    %437 = vector.broadcast %cst_130 : f32 to vector<2x32xf32>
    %438 = arith.addf %437, %436 : vector<2x32xf32>
    %439 = arith.divf %437, %438 : vector<2x32xf32>
    %440 = vector.extract_strided_slice %427 {offsets = [0, 64], sizes = [2, 32], strides = [1, 1]} : vector<2x128xf32> to vector<2x32xf32>
    %441 = math.tanh %440 : vector<2x32xf32>
    %442 = arith.mulf %439, %395 : vector<2x32xf32>
    %443 = arith.mulf %433, %441 : vector<2x32xf32>
    %444 = arith.addf %442, %443 : vector<2x32xf32>
    %c14 = arith.constant 14 : index
    %c0_131 = arith.constant 0 : index
    %445 = vector.load %arg20[%c14, %c0_131] : memref<16x32xf32, #tpu.memory_space<vmem>>, vector<2x32xf32>
    tpu.vector_store %arg20[%c14, %c0_131], %444 {strides = array<i32>} : memref<16x32xf32, #tpu.memory_space<vmem>>, vector<2x32xf32>,
    "tpu.trace_start"() <{level = 10 : i32, message = "blh,bhk->blk"}> : () -> ()
    %cst_132 = arith.constant dense<0.000000e+00> : vector<2x8x64xf32>
    %446 = tpu.matmul %418, %4, %cst_132 {dimension_numbers = #tpu.dot_dimension_numbers<[2], [1], [1], [2], [0, 0, 0, 1, 1, 2], [0], [0]>} : vector<2x8x64xf32>, vector<2x64x64xf32>, vector<2x8x64xf32> -> vector<2x8x64xf32>
    "tpu.trace_stop"() : () -> ()
    %cst_133 = arith.constant dense<0.000000e+00> : vector<2x64xf32>
    %447 = tpu.matmul %444, %3, %cst_133 {dimension_numbers = #tpu.dot_dimension_numbers<[1], [0], [0], [1], [0, 0, 1, 1], [], []>} : vector<2x32xf32>, vector<32x64xf32>, vector<2x64xf32> -> vector<2x64xf32>
    %448 = vector.shape_cast %447 : vector<2x64xf32> to vector<2x1x64xf32>
    %449 = vector.broadcast %448 : vector<2x1x64xf32> to vector<2x8x64xf32>
    %450 = arith.addf %19, %449 : vector<2x8x64xf32>
    %451 = arith.addf %450, %446 : vector<2x8x64xf32>
    %452 = math.tanh %451 : vector<2x8x64xf32>
    %453 = arith.mulf %23, %452 : vector<2x8x64xf32>
    %cst_134 = arith.constant dense<0xFF800000> : vector<2x64xf32>
    %454 = vector.multi_reduction <maximumf>, %453, %cst_134 [1] : vector<2x8x64xf32> to vector<2x64xf32>
    %455 = vector.shape_cast %454 : vector<2x64xf32> to vector<2x1x64xf32>
    %456 = vector.broadcast %455 : vector<2x1x64xf32> to vector<2x8x64xf32>
    %457 = arith.subf %453, %456 : vector<2x8x64xf32>
    %458 = math.exp %457 : vector<2x8x64xf32>
    %cst_135 = arith.constant dense<0.000000e+00> : vector<2x64xf32>
    %459 = vector.multi_reduction <add>, %458, %cst_135 [1] : vector<2x8x64xf32> to vector<2x64xf32>
    %460 = vector.shape_cast %459 : vector<2x64xf32> to vector<2x1x64xf32>
    %461 = vector.broadcast %460 : vector<2x1x64xf32> to vector<2x8x64xf32>
    %462 = arith.divf %458, %461 : vector<2x8x64xf32>
    %463 = arith.mulf %0, %462 : vector<2x8x64xf32>
    %cst_136 = arith.constant dense<0.000000e+00> : vector<2x64xf32>
    %464 = vector.multi_reduction <add>, %463, %cst_136 [1] : vector<2x8x64xf32> to vector<2x64xf32>
    %465 = arith.addf %418, %462 : vector<2x8x64xf32>
    %466 = arith.minimumf %465, %462 : vector<2x8x64xf32>
    %467 = arith.addf %420, %466 : vector<2x8x64xf32>
    %c12_137 = arith.constant 12 : index
    %c0_138 = arith.constant 0 : index
    %468 = vector.load %arg21[%c12_137, %c0_138] : memref<16x64xf32, #tpu.memory_space<vmem>>, vector<2x64xf32>
    tpu.vector_store %arg21[%c12_137, %c0_138], %464 {strides = array<i32>} : memref<16x64xf32, #tpu.memory_space<vmem>>, vector<2x64xf32>,
    "tpu.trace_start"() <{level = 10 : i32, message = "blh,bhk->blk"}> : () -> ()
    %cst_139 = arith.constant dense<0.000000e+00> : vector<2x8x64xf32>
    %469 = tpu.matmul %465, %4, %cst_139 {dimension_numbers = #tpu.dot_dimension_numbers<[2], [1], [1], [2], [0, 0, 0, 1, 1, 2], [0], [0]>} : vector<2x8x64xf32>, vector<2x64x64xf32>, vector<2x8x64xf32> -> vector<2x8x64xf32>
    "tpu.trace_stop"() : () -> ()
    %cst_140 = arith.constant dense<0.000000e+00> : vector<2x64xf32>
    %470 = tpu.matmul %444, %3, %cst_140 {dimension_numbers = #tpu.dot_dimension_numbers<[1], [0], [0], [1], [0, 0, 1, 1], [], []>} : vector<2x32xf32>, vector<32x64xf32>, vector<2x64xf32> -> vector<2x64xf32>
    %471 = vector.shape_cast %470 : vector<2x64xf32> to vector<2x1x64xf32>
    %472 = vector.broadcast %471 : vector<2x1x64xf32> to vector<2x8x64xf32>
    %473 = arith.addf %19, %472 : vector<2x8x64xf32>
    %474 = arith.addf %473, %469 : vector<2x8x64xf32>
    %475 = math.tanh %474 : vector<2x8x64xf32>
    %476 = arith.mulf %23, %475 : vector<2x8x64xf32>
    %cst_141 = arith.constant dense<0xFF800000> : vector<2x64xf32>
    %477 = vector.multi_reduction <maximumf>, %476, %cst_141 [1] : vector<2x8x64xf32> to vector<2x64xf32>
    %478 = vector.shape_cast %477 : vector<2x64xf32> to vector<2x1x64xf32>
    %479 = vector.broadcast %478 : vector<2x1x64xf32> to vector<2x8x64xf32>
    %480 = arith.subf %476, %479 : vector<2x8x64xf32>
    %481 = math.exp %480 : vector<2x8x64xf32>
    %cst_142 = arith.constant dense<0.000000e+00> : vector<2x64xf32>
    %482 = vector.multi_reduction <add>, %481, %cst_142 [1] : vector<2x8x64xf32> to vector<2x64xf32>
    %483 = vector.shape_cast %482 : vector<2x64xf32> to vector<2x1x64xf32>
    %484 = vector.broadcast %483 : vector<2x1x64xf32> to vector<2x8x64xf32>
    %485 = arith.divf %481, %484 : vector<2x8x64xf32>
    %486 = arith.mulf %0, %485 : vector<2x8x64xf32>
    %cst_143 = arith.constant dense<0.000000e+00> : vector<2x64xf32>
    %487 = vector.multi_reduction <add>, %486, %cst_143 [1] : vector<2x8x64xf32> to vector<2x64xf32>
    %c14_144 = arith.constant 14 : index
    %c0_145 = arith.constant 0 : index
    %488 = vector.load %arg21[%c14_144, %c0_145] : memref<16x64xf32, #tpu.memory_space<vmem>>, vector<2x64xf32>
    tpu.vector_store %arg21[%c14_144, %c0_145], %487 {strides = array<i32>} : memref<16x64xf32, #tpu.memory_space<vmem>>, vector<2x64xf32>,
    %c0_146 = arith.constant 0 : index
    %c0_147 = arith.constant 0 : index
    %489 = vector.load %arg20[%c0_146, %c0_147] : memref<16x32xf32, #tpu.memory_space<vmem>>, vector<16x32xf32>
    %c0_148 = arith.constant 0 : index
    %c0_149 = arith.constant 0 : index
    %490 = vector.load %arg15[%c0_148, %c0_149] : memref<32x64xf32, #tpu.memory_space<vmem>>, vector<32x64xf32>
    %cst_150 = arith.constant dense<0.000000e+00> : vector<16x64xf32>
    %491 = tpu.matmul %489, %490, %cst_150 {dimension_numbers = #tpu.dot_dimension_numbers<[1], [0], [0], [1], [0, 0, 1, 1], [], []>} : vector<16x32xf32>, vector<32x64xf32>, vector<16x64xf32> -> vector<16x64xf32>
    %c0_151 = arith.constant 0 : index
    %c0_152 = arith.constant 0 : index
    %492 = vector.load %arg21[%c0_151, %c0_152] : memref<16x64xf32, #tpu.memory_space<vmem>>, vector<16x64xf32>
    %c0_153 = arith.constant 0 : index
    %c0_154 = arith.constant 0 : index
    %493 = vector.load %arg16[%c0_153, %c0_154] : memref<64x64xf32, #tpu.memory_space<vmem>>, vector<64x64xf32>
    %cst_155 = arith.constant dense<0.000000e+00> : vector<16x64xf32>
    %494 = tpu.matmul %492, %493, %cst_155 {dimension_numbers = #tpu.dot_dimension_numbers<[1], [0], [0], [1], [0, 0, 1, 1], [], []>} : vector<16x64xf32>, vector<64x64xf32>, vector<16x64xf32> -> vector<16x64xf32>
    %495 = arith.addf %491, %494 : vector<16x64xf32>
    %c0_156 = arith.constant 0 : index
    %c0_157 = arith.constant 0 : index
    %496 = vector.load %arg17[%c0_156, %c0_157] : memref<1x64xf32, #tpu.memory_space<vmem>>, vector<1x64xf32>
    %497 = vector.broadcast %496 : vector<1x64xf32> to vector<16x64xf32>
    %498 = arith.addf %495, %497 : vector<16x64xf32>
    %cst_158 = arith.constant dense<0xFF800000> : vector<16xf32>
    %499 = vector.multi_reduction <maximumf>, %498, %cst_158 [1] : vector<16x64xf32> to vector<16xf32>
    %500 = vector.shape_cast %499 : vector<16xf32> to vector<16x1xf32>
    %501 = vector.broadcast %500 : vector<16x1xf32> to vector<16x64xf32>
    %502 = arith.subf %498, %501 : vector<16x64xf32>
    %503 = math.exp %502 : vector<16x64xf32>
    %cst_159 = arith.constant dense<0.000000e+00> : vector<16xf32>
    %504 = vector.multi_reduction <add>, %503, %cst_159 [1] : vector<16x64xf32> to vector<16xf32>
    %505 = vector.shape_cast %504 : vector<16xf32> to vector<16x1xf32>
    %506 = math.log %505 : vector<16x1xf32>
    %507 = vector.broadcast %506 : vector<16x1xf32> to vector<16x64xf32>
    %508 = arith.subf %502, %507 : vector<16x64xf32>
    %c0_160 = arith.constant 0 : index
    %c0_161 = arith.constant 0 : index
    %509 = vector.load %arg18[%c0_160, %c0_161] : memref<16x64xf32, #tpu.memory_space<vmem>>, vector<16x64xf32>
    tpu.vector_store %arg18[%c0_160, %c0_161], %508 {strides = array<i32>} : memref<16x64xf32, #tpu.memory_space<vmem>>, vector<16x64xf32>,
    %c0_162 = arith.constant 0 : index
    %c0_163 = arith.constant 0 : index
    %c0_164 = arith.constant 0 : index
    %510 = vector.load %arg19[%c0_162, %c0_163, %c0_164] : memref<2x8x64xf32, #tpu.memory_space<vmem>>, vector<2x8x64xf32>
    tpu.vector_store %arg19[%c0_162, %c0_163, %c0_164], %467 {strides = array<i32>} : memref<2x8x64xf32, #tpu.memory_space<vmem>>, vector<2x8x64xf32>,
    return
  }
}

</mosaic_0001>

<bundles_post_ra>
// kernel: decoder_forward.1
= control target key start
LH: loop header
LB: loop body
LE: loop exit
PB: predicated region body
PF: predicated region fallthrough
CT: control target
= control target key end

     0   :  { %s8107_s0 = inlined_call_operand.vmem [shape: f32[16,16], index: 0, kind: input, shape index: {}]   ;;  %s8108_s1 = inlined_call_operand.vmem [shape: f32[2,16], index: 1, kind: input, shape index: {}]   ;;  %s8109_s2 = inlined_call_operand.vmem [shape: f32[2,32], index: 2, kind: input, shape index: {}]   ;;  %s8110_s3 = inlined_call_operand.vmem [shape: f32[2,32], index: 3, kind: input, shape index: {}]   ;;  %s8111_s4 = inlined_call_operand.vmem [shape: f32[2,8,64], index: 4, kind: input, shape index: {}]   ;;  %s8112_s5 = inlined_call_operand.vmem [shape: f32[16,128], index: 5, kind: input, shape index: {}]   ;;  %s8113_s6 = inlined_call_operand.vmem [shape: f32[64,128], index: 6, kind: input, shape index: {}]   ;;  %s8114_s7 = inlined_call_operand.vmem [shape: f32[16,128], index: 7, kind: input, shape index: {}]   ;;  %s8115_s8 = inlined_call_operand.vmem [shape: f32[32,128], index: 8, kind: input, shape index: {}]   ;;  %s8116_s9 = inlined_call_operand.vmem [shape: f32[1,128], index: 9, kind: input, shape index: {}]   ;;  %s8117_s10 = inlined_call_operand.vmem [shape: f32[32,64], index: 10, kind: input, shape index: {}]   ;;  %s8118_s11 = inlined_call_operand.vmem [shape: f32[2,64,64], index: 11, kind: input, shape index: {}]   ;;  %s8119_s12 = inlined_call_operand.vmem [shape: f32[1,64], index: 12, kind: input, shape index: {}]   ;;  %s8120_s13 = inlined_call_operand.vmem [shape: f32[1,64], index: 13, kind: input, shape index: {}]   ;;  %s8121_s14 = inlined_call_operand.vmem [shape: f32[2,64,64], index: 14, kind: input, shape index: {}]   ;;  %s8122_s15 = inlined_call_operand.vmem [shape: f32[32,64], index: 15, kind: input, shape index: {}]   ;;  %s8123_s16 = inlined_call_operand.vmem [shape: f32[64,64], index: 16, kind: input, shape index: {}]   ;;  %s8124_s17 = inlined_call_operand.vmem [shape: f32[1,64], index: 17, kind: input, shape index: {}]   ;;  %s8125_s18 = inlined_call_operand.vmem [shape: f32[16,64], index: 18, kind: output, shape index: {0}]   ;;  %s8126_s19 = inlined_call_operand.hbm [shape: f32[2,8,64], index: 19, kind: output, shape index: {1}]  }
   0x1   :  { %8128 = sst [smem:[#allocation7_spill]] %s8107_s0 }
   0x2   :  { %8129 = sst [smem:[#allocation8_spill]] %s8108_s1 }
   0x3   :  { %8130 = sst [smem:[#allocation9_spill]] %s8109_s2 }
   0x4   :  { %8131 = sst [smem:[#allocation10_spill]] %s8110_s3 }
   0x5   :  { %v98_v0 = vld [vmem:[%s8112_s5] sm:$0xff]  ;;  %v99_v1 = vld [vmem:[%s8112_s5 + $0x8] sm:$0xff]  ;;  %v6819_v3 = vmov 0.0|0.0   ;;  %vm6820_vm0 = vmmov 0   ;;  %v6821_v6 = vmov 0.0   ;;  %s8132_s5 = sld [smem:[#allocation7_spill]] }
   0x6   :  { %v183_v2 = vld [vmem:[%s8114_s7] sm:$0xff]  ;;  %6141 = vmatprep.subr.bf16.mxu1 %v6819_v3  ;;  %v6137_v4 = vpack.c.bf16 %v99_v1, %v98_v0  ;;  %v184_v5 = vld [vmem:[%s8114_s7 + $0x8] sm:$0xff]  ;;  %5423 = vmatprep.mubr.msk.f32.mxu1 %vm6820_vm0, %v6821_v6  ;;  %vm100_vm1 = vcmask 130048   ;;  %s8133_s0 = sld [smem:[#allocation8_spill]]  ;;  %v267_v14 = vld [vmem:[%s8118_s11 + $0x10] sm:$0xff] }
   0x7   :  { %v6142_v8 = vpack.c.bf16 %v184_v5, %v183_v2  ;;  %v265_v9 = vld [vmem:[%s8118_s11] sm:$0xff]  ;;  %v266_v10 = vld [vmem:[%s8118_s11 + $0x8] sm:$0xff]  ;;  %v268_v15 = vld [vmem:[%s8118_s11 + $0x18] sm:$0xff] }
   0x8   :  { %6138 = vmatprep.subr.bf16.mxu0 %v6137_v4  ;;  %v6145_v13 = vpack.c.bf16 %v266_v10, %v265_v9  ;;  %v273_v16 = vld [vmem:[%s8118_s11 + $0x40] sm:$0xff]  ;;  %v274_v17 = vld [vmem:[%s8118_s11 + $0x48] sm:$0xff]  ;;  %v275_v19 = vld [vmem:[%s8118_s11 + $0x50] sm:$0xff]  ;;  %v6148_v21 = vpack.c.bf16 %v268_v15, %v267_v14 }
   0x9   :  { %6143 = vmatpush3.bf16.msra.mxu1 %v6142_v8  ;;  %6140 = vmatpush3.bf16.msra.mxu0 %v6137_v4  ;;  %v6157_v18 = vpack.c.bf16 %v274_v17, %v273_v16  ;;  %v276_v20 = vld [vmem:[%s8118_s11 + $0x58] sm:$0xff]  ;;  %v269_v22 = vld [vmem:[%s8118_s11 + $0x20] sm:$0xff]  ;;  %v270_v24 = vld [vmem:[%s8118_s11 + $0x28] sm:$0xff] }
   0xa   :  { %6144 = vmatprep.subr.bf16.mxu0 %v6819_v3  ;;  %6156 = vmatprep.subr.bf16.mxu1 %v6819_v3  ;;  %v6160_v23 = vpack.c.bf16 %v276_v20, %v275_v19  ;;  %v277_v25 = vld [vmem:[%s8118_s11 + $0x60] sm:$0xff]  ;;  %v278_v26 = vld [vmem:[%s8118_s11 + $0x68] sm:$0xff] }
   0xb   :  { %v96_v7 = vld [vmem:[%s8132_s5] sm:$0xff]  ;;  %v97_v12 = vld [vmem:[%s8132_s5 + $0x8] sm:$0xff] }
   0xc   :  { %5416 = vmatprep.mubr.msk.f32.mxu0 %vm100_vm1, %v96_v7  ;;  %v182_v11 = vld [vmem:[%s8133_s0] sm:$0x3] }
   0xd   :  { %5424 = vmatmul.mubr.msk.f32.vlgmr.msra.gmra.mrb[0].mxu1 %vm100_vm1, %v182_v11  ;;  %5417 = vmatmul.mubr.msk.f32.vlgmr.msra.gmra.mrb[0].mxu0 %vm100_vm1, %v97_v12 }
   0xe   :  { %6146 = vmatpush3.bf16.msra.mxu0 %v6145_v13  ;;  %6158 = vmatpush3.bf16.msra.mxu1 %v6157_v18 }
   0xf   :  { %6147 = vmatprep.subr.bf16.mxu0 %v6819_v3  ;;  %5442 = vmatprep.mubr.msk.f32.mxu0 %vm6820_vm0, %v6821_v6 }
  0x10   :  { %6159 = vmatprep.subr.bf16.mxu1 %v6819_v3  ;;  %5461 = vmatprep.mubr.msk.f32.mxu1 %vm6820_vm0, %v6821_v6 }
  0x11   :  { %25 = vsyncpa [#allocation5], 0  ;;  %v6151_v27 = vpack.c.bf16 %v270_v24, %v269_v22  ;;  %v271_v28 = vld [vmem:[%s8118_s11 + $0x30] sm:$0xff]  ;;  %v6163_v29 = vpack.c.bf16 %v278_v26, %v277_v25  ;;  %v272_v30 = vld [vmem:[%s8118_s11 + $0x38] sm:$0xff]  ;;  %vm288_vm2 = vcmask 523264   ;;  %s8134_s25 = sld [smem:[#allocation10_spill]]  ;;  %v522_v20 = vlaneseq }
  0x12   :  { %6149 = vmatpush3.bf16.msra.mxu0 %v6148_v21  ;;  %6161 = vmatpush3.bf16.msra.mxu1 %v6160_v23  ;;  %v279_v31 = vld [vmem:[%s8118_s11 + $0x70] sm:$0xff]  ;;  %v280_v32 = vld [vmem:[%s8118_s11 + $0x78] sm:$0xff]  ;;  %v6154_v33 = vpack.c.bf16 %v272_v30, %v271_v28  ;;  %v76_v35 = vld [vmem:[%s8117_s10] sm:$0xff]  ;;  %vm444_vm3 = vcmask 261120   ;;  %s8135_s29 = sld [smem:[#allocation9_spill]]  ;;  %vm614_vm4 = vcmask 1041409  }
  0x13   :  { %6150 = vmatprep.subr.bf16.mxu0 %v6819_v3  ;;  %6162 = vmatprep.subr.bf16.mxu1 %v6819_v3  ;;  %v6166_v34 = vpack.c.bf16 %v280_v32, %v279_v31  ;;  %v77_v36 = vld [vmem:[%s8117_s10 + $0x8] sm:$0xff]  ;;  %v7025_v37 = vld [vmem:[%s8111_s4] sm:$0xff]  ;;  %v78_v40 = vld [vmem:[%s8117_s10 + $0x10] sm:$0xff]  ;;  %v6822_v18 = vmov 1966171168   ;;  %v523_v25 = vshrl.u32 %v522_v20, 7 }
  0x14   :  { %v7027_v38 = vpack.c.bf16 %v77_v36, %v76_v35  ;;  %v7032_v39 = vld [vmem:[%s8111_s4 + $0x8] sm:$0xff]  ;;  %v79_v41 = vld [vmem:[%s8117_s10 + $0x18] sm:$0xff]  ;;  %v64_v44 = vld [vmem:[%s8113_s6] sm:$0xff]  ;;  %v520_v19 = vunpack.c.l.s4 %v6822_v18  ;;  %s6823_s11 = smov 64   ;;  %s6824_s21 = smov 32   ;;  %vm794_vm5 = vcmask 254976  }
  0x15   :  { %v7047_v42 = vpack.c.bf16 %v79_v41, %v78_v40  ;;  %v65_v45 = vld [vmem:[%s8113_s6 + $0x8] sm:$0xff]  ;;  %v66_v46 = vld [vmem:[%s8113_s6 + $0x10] sm:$0xff]  ;;  %v67_v48 = vld [vmem:[%s8113_s6 + $0x18] sm:$0xff]  ;;  %v7157_v30 = vsub.s32 0, %v523_v25  ;;  %s6825_s1 = smov 96   ;;  %vm1481_vm6 = vcmask 517120  }
  0x16   :  { %6152 = vmatpush3.bf16.msra.mxu0 %v6151_v27  ;;  %6164 = vmatpush3.bf16.msra.mxu1 %v6163_v29  ;;  %v7074_v47 = vpack.c.bf16 %v65_v45, %v64_v44  ;;  %v72_v49 = vld [vmem:[%s8115_s8] sm:$0xff]  ;;  %v73_v50 = vld [vmem:[%s8115_s8 + $0x8] sm:$0xff]  ;;  %v7086_v51 = vpack.c.bf16 %v67_v48, %v66_v46  ;;  %v74_v53 = vld [vmem:[%s8115_s8 + $0x10] sm:$0xff]  ;;  %v521_v24 = vunpack.c.0.s8 %v520_v19  ;;  %vm1153_vm7 = vcmask 257026  }
  0x17   :  { %6153 = vmatprep.subr.bf16.mxu0 %v6819_v3  ;;  %6165 = vmatprep.subr.bf16.mxu1 %v6819_v3  ;;  %v7058_v43 = vld [vmem:[%s8134_s25] sm:$0x3]  ;;  %v7088_v52 = vpack.c.bf16 %v73_v50, %v72_v49  ;;  %v75_v54 = vld [vmem:[%s8115_s8 + $0x18] sm:$0xff]  ;;  %v69_v56 = vld [vmem:[%s8113_s6 + $0x28] sm:$0xff]  ;;  %vm2190_vm8 = vcmask 261126   ;;  %vm1672_vm9 = vcmask 259076  }
  0x18   :  { %v68_v55 = vld [vmem:[%s8113_s6 + $0x20] sm:$0xff]  ;;  %v7104_v57 = vpack.c.bf16 %v75_v54, %v74_v53  ;;  %v70_v59 = vld [vmem:[%s8113_s6 + $0x30] sm:$0xff]  ;;  %v71_v60 = vld [vmem:[%s8113_s6 + $0x38] sm:$0xff]  ;;  %v7154_v27 = vsub.s32 %v521_v24, %v523_v25 }
  0x19   :  { %v7108_v58 = vpack.c.bf16 %v69_v56, %v68_v55  ;;  %v7120_v61 = vpack.c.bf16 %v71_v60, %v70_v59  ;;  %v442_v62 = vld [vmem:[%s8135_s29] sm:$0x3] }
  0x1a   :  { %6155 = vmatpush3.bf16.msra.mxu0 %v6154_v33  ;;  %6167 = vmatpush3.bf16.msra.mxu1 %v6166_v34  ;;  %v5010_v63 = vld [vmem:[%s8116_s9] ss:$0 sm:$0xff] }
  0x1b   :  { %6168 = vmatprep.subr.bf16.mxu0 %v6819_v3  ;;  %6174 = vmatprep.subr.bf16.mxu1 %v6819_v3  ;;  %v5012_v32 = vld [vmem:[%s8119_s12] ss:$0 sm:$0xff] }
  0x1c   :  { %v7175_v48 = vld [vmem:[%s8120_s13] ss:$0 sm:$0xff] }
  0x1d   :  { %5443 = vmatmul.mubr.msk.f32.vlgmr.msra.gmra.mrb[2].mxu0 %vm288_vm2, %v7025_v37  ;;  %5462 = vmatmul.mubr.msk.f32.vlgmr.msra.gmra.mrb[2].mxu1 %vm288_vm2, %v7032_v39 }
  0x1e   :  { %6170 = vmatpush3.bf16.msra.mxu0 %v7027_v38  ;;  %5472 = vmatprep.mubr.msk.f32.mxu0 %vm6820_vm0, %v6821_v6 }
  0x1f   :  { %6171 = vmatprep.subr.bf16.mxu0 %v6819_v3  ;;  %5491 = vmatprep.mubr.msk.f32.mxu1 %vm6820_vm0, %v6821_v6 }
  0x20   :  { %6176 = vmatpush3.bf16.msra.mxu1 %v7074_v47 }
  0x21   :  { %6177 = vmatprep.subr.bf16.mxu1 %v6819_v3 }
  0x22   :  { %6173 = vmatpush3.bf16.msra.mxu0 %v7047_v42 }
  0x23   :  { %6186 = vmatprep.subr.bf16.mxu0 %v6819_v3 }
  0x24   :  { %6179 = vmatpush3.bf16.msra.mxu1 %v7086_v51 }
  0x25   :  { %5473 = vmatmul.mubr.msk.f32.vlgmr.msra.gmra.mrb[4].mxu0 %vm444_vm3, %v7058_v43  ;;  %6180 = vmatprep.subr.bf16.mxu1 %v6819_v3 }
  0x26   :  { %5502 = vmatprep.mubr.msk.f32.mxu0 %vm6820_vm0, %v6821_v6  ;;  %6188 = vmatpush3.bf16.msra.mxu0 %v7088_v52 }
  0x27   :  { %6189 = vmatprep.subr.bf16.mxu0 %v6819_v3 }
  0x28   :  { %6182 = vmatpush3.bf16.msra.mxu1 %v7108_v58 }
  0x29   :  { %6183 = vmatprep.subr.bf16.mxu1 %v6819_v3 }
  0x2a   :  { %6191 = vmatpush3.bf16.msra.mxu0 %v7104_v57 }
  0x2b   :  { %6192 = vmatprep.subr.bf16.mxu0 %v6819_v3 }
  0x2c   :  { %6185 = vmatpush3.bf16.msra.mxu1 %v7120_v61 }
  0x2d   :  { %6210 = vmatprep.subr.bf16.mxu1 %v6819_v3  ;;  %5503 = vmatmul.mubr.msk.f32.vlgmr.msra.gmra.mrb[6].mxu0 %vm444_vm3, %v442_v62 }
  0x2e   :  { %6194 = vmatpush3.bf16.msra.mxu0 %v7027_v38  ;;  %5513 = vmatprep.mubr.msk.f32.mxu0 %vm6820_vm0, %v6821_v6 }
  0x2f   :  { %6195 = vmatprep.subr.bf16.mxu0 %v6819_v3 }
  0x32   :  { %6197 = vmatpush3.bf16.msra.mxu0 %v7047_v42 }
  0x33   :  { %6198 = vmatprep.subr.bf16.mxu0 %v6819_v3 }
  0xe0   :  { %v261_v0 = vpop.f32.mrb[0].mxu1  ;;  %v5418_v1 = vpop.f32.mrb[0].mxu0 }
  0xe1   :  { %v262_v2 = vadd.f32 %v5010_v63, %v261_v0  ;;  %v173_v4 = vpop.f32.mrb[1].mxu0  ;;  %v5425_v5 = vpop.f32.mrb[1].mxu1 }
  0xe3   :  { %v7138_v7 = vadd.f32 %v262_v2, %v173_v4  ;;  %v962_v8 = vrot.slane %v262_v2, 6  ;;  %v1483_v9 = vrot.slane %v262_v2, 4  ;;  %v2001_v10 = vrot.slane %v262_v2, 2 }
  0xe4   :  { %v7140_v11 = vadd.f32 %v5418_v1, %v262_v2 }
  0xe5   :  { %v7142_v12 = vadd.f32 %v962_v8, %v173_v4  ;;  %v7144_v13 = vadd.f32 %v1483_v9, %v173_v4  ;;  %v7146_v14 = vadd.f32 %v2001_v10, %v173_v4  ;;  %v7148_v15 = vadd.f32 %v5418_v1, %v962_v8 }
  0xe6   :  { %v7150_v16 = vadd.f32 %v5418_v1, %v1483_v9  ;;  %v7152_v17 = vadd.f32 %v5418_v1, %v2001_v10 }
  0xf0   :  { %v358_v21 = vpop.f32.mrb[2].mxu0  ;;  %v431_v22 = vpop.f32.mrb[2].mxu1 }
  0xf1   :  { %v5444_v23 = vpop.f32.mrb[3].mxu0  ;;  %v5463_v26 = vpop.f32.mrb[3].mxu1  ;;  %v7163_v35 = vadd.f32 %v5012_v32, %v358_v21  ;;  %v7167_v41 = vadd.f32 %v5012_v32, %v431_v22 }
  0xf8   :  { %v514_v28 = vpop.f32.mrb[4].mxu0 }
  0xf9   :  { %v525_v29 = vrot.slane %v514_v28, %v7154_v27  ;;  %v5474_v31 = vpop.f32.mrb[5].mxu0 }
  0xfb   :  { %v526_v33 = vcombine.high %v525_v29, %v525_v29  ;;  %v533_v34 = vrot.slane %v525_v29, %v7154_v27 }
  0xfd   :  { %v540_v36 = vrot.slane %v526_v33, %v7154_v27  ;;  %v544_v40 = vrot.slane %v533_v34, %v7157_v30 }
  0xff   :  { %v548_v44 = vrot.slane %v540_v36, %v7157_v30  ;;  %v551_v45 = vadd.f32 %v544_v40, %v7163_v35 }
 0x101   :  { %6599 = vtanh.f32 %v551_v45  ;;  %v552_v46 = vadd.f32 %v548_v44, %v7167_v41 }
 0x103   :  { %6601 = vtanh.f32 %v552_v46 }
 0x10b   :  { %v6600_v49 = vpop.eup %6599 }
 0x10c   :  { %v555_v50 = vmul.f32 %v6600_v49, %v7175_v48 }
 0x10d   :  { %v6602_v53 = vpop.eup %6601 }
 0x10e   :  { %v557_v54 = vsel %vm288_vm2, %v555_v50, -inf  ;;  %v556_v55 = vmul.f32 %v6602_v53, %v7175_v48 }
 0x10f   :  { %v558_v56 = vrot.slane %v557_v54, 4 }
 0x110   :  { %v564_v59 = vsel %vm288_vm2, %v556_v55, -inf }
 0x111   :  { %v559_v60 = vmax.f32 %v557_v54, %v558_v56  ;;  %v565_v62 = vrot.slane %v564_v59, 4 }
 0x113   :  { %v560_v63 = vrot.slane %v559_v60, 2  ;;  %v566_v0 = vmax.f32 %v564_v59, %v565_v62 }
 0x115   :  { %v561_v1 = vmax.f32 %v559_v60, %v560_v63  ;;  %v567_v2 = vrot.slane %v566_v0, 2 }
 0x117   :  { %v562_v4 = vrot.slane %v561_v1, 1  ;;  %v568_v5 = vmax.f32 %v566_v0, %v567_v2 }
 0x119   :  { %v563_v8 = vmax.f32 %v561_v1, %v562_v4  ;;  %v569_v9 = vrot.slane %v568_v5, 1 }
 0x11b   :  { %v571_v10 = vsub.f32 %v555_v50, %v563_v8  ;;  %v570_v18 = vmax.f32 %v568_v5, %v569_v9 }
 0x11d   :  { %v573_v19 = vmul.f32 1.442695, %v571_v10  ;;  %v572_v20 = vsub.f32 %v556_v55, %v570_v18 }
 0x11f   :  { %6603 = vpow2.f32 %v573_v19  ;;  %v575_v21 = vmul.f32 1.442695, %v572_v20 }
 0x121   :  { %6605 = vpow2.f32 %v575_v21  ;;  %v758_v21 = vpop.f32.mrb[6].mxu0 }
 0x129   :  { %v6604_v22 = vpop.eup %6603 }
 0x12a   :  { %v577_v23 = vsel %vm288_vm2, %v6604_v22, 0.0 }
 0x12b   :  { %v6606_v24 = vpop.eup %6605  ;;  %v578_v25 = vrot.slane %v577_v23, 4 }
 0x12c   :  { %v584_v26 = vsel %vm288_vm2, %v6606_v24, 0.0 }
 0x12d   :  { %v579_v28 = vadd.f32 %v578_v25, %v577_v23  ;;  %v585_v29 = vrot.slane %v584_v26, 4 }
 0x12f   :  { %v580_v31 = vrot.slane %v579_v28, 2  ;;  %v586_v32 = vadd.f32 %v585_v29, %v584_v26 }
 0x131   :  { %v581_v33 = vadd.f32 %v580_v31, %v579_v28  ;;  %v587_v34 = vrot.slane %v586_v32, 2 }
 0x133   :  { %v582_v36 = vrot.slane %v581_v33, 1  ;;  %v588_v40 = vadd.f32 %v587_v34, %v586_v32 }
 0x135   :  { %v583_v44 = vadd.f32 %v582_v36, %v581_v33  ;;  %v589_v45 = vrot.slane %v588_v40, 1 }
 0x137   :  { %v590_v46 = vadd.f32 %v589_v45, %v588_v40  ;;  %6607 = vrcp.f32 %v583_v44 }
 0x139   :  { %6609 = vrcp.f32 %v590_v46 }
 0x141   :  { %v6608_v49 = vpop.eup %6607 }
 0x142   :  { %v592_v50 = vmul.f32 %v6608_v49, %v6604_v22  ;;  %v5504_v22 = vpop.f32.mrb[7].mxu0 }
 0x143   :  { %v6610_v53 = vpop.eup %6609 }
 0x144   :  { %v594_v54 = vmul.f32 %v6610_v53, %v6606_v24  ;;  %v595_v55 = vmul.f32 %v592_v50, %v7025_v37 }
 0x146   :  { %v596_v56 = vmul.f32 %v594_v54, %v7032_v39  ;;  %v597_v59 = vsel %vm288_vm2, %v595_v55, 0.0  ;;  %v88_v54 = vld [vmem:[%s8121_s14 + $0x40] sm:$0xff]  ;;  %v89_v55 = vld [vmem:[%s8121_s14 + $0x48] sm:$0xff] }
 0x147   :  { %v598_v60 = vrot.slane %v597_v59, 4 }
 0x148   :  { %v604_v62 = vsel %vm288_vm2, %v596_v56, 0.0  ;;  %v90_v56 = vld [vmem:[%s8121_s14 + $0x50] sm:$0xff] }
 0x149   :  { %v599_v63 = vadd.f32 %v598_v60, %v597_v59  ;;  %v605_v0 = vrot.slane %v604_v62, 4  ;;  %v7231_v59 = vpack.c.bf16 %v89_v55, %v88_v54  ;;  %v91_v60 = vld [vmem:[%s8121_s14 + $0x58] sm:$0xff] }
 0x14b   :  { %v600_v1 = vrot.slane %v599_v63, 2  ;;  %v606_v2 = vadd.f32 %v605_v0, %v604_v62  ;;  %v7237_v62 = vpack.c.bf16 %v91_v60, %v90_v56  ;;  %v93_v0 = vld [vmem:[%s8121_s14 + $0x68] sm:$0xff] }
 0x14d   :  { %v601_v4 = vadd.f32 %v600_v1, %v599_v63  ;;  %v607_v5 = vrot.slane %v606_v2, 2  ;;  %v92_v63 = vld [vmem:[%s8121_s14 + $0x60] sm:$0xff] }
 0x14e   :  { %v7247_v1 = vpack.c.bf16 %v93_v0, %v92_v63 }
 0x14f   :  { %v602_v8 = vrot.slane %v601_v4, 1  ;;  %v608_v9 = vadd.f32 %v607_v5, %v606_v2  ;;  %v94_v2 = vld [vmem:[%s8121_s14 + $0x70] sm:$0xff] }
 0x151   :  { %v609_v10 = vrot.slane %v608_v9, 1  ;;  %v603_v18 = vadd.f32 %v602_v8, %v601_v4  ;;  %v95_v4 = vld [vmem:[%s8121_s14 + $0x78] sm:$0xff] }
 0x152   :  { %v7257_v5 = vpack.c.bf16 %v95_v4, %v94_v2 }
 0x153   :  { %v610_v19 = vadd.f32 %v609_v10, %v608_v9 }
 0x155   :  { %v615_v20 = vsel %vm614_vm4, %v610_v19, %v603_v18 }
 0x156   :  { %5492 = vmatmul.mubr.msk.f32.vlgmr.msra.gmra.mrb[4].mxu1 %vm288_vm2, %v615_v20 }
 0x157   :  { %6212 = vmatpush3.bf16.msra.mxu1 %v7088_v52  ;;  %5543 = vmatprep.mubr.msk.f32.mxu1 %vm6820_vm0, %v6821_v6 }
 0x158   :  { %6213 = vmatprep.subr.bf16.mxu1 %v6819_v3 }
 0x15b   :  { %6215 = vmatpush3.bf16.msra.mxu1 %v7104_v57 }
 0x15c   :  { %6228 = vmatprep.subr.bf16.mxu1 %v6819_v3 }
 0x229   :  { %v684_v23 = vpop.f32.mrb[4].mxu1 }
 0x22a   :  { %v688_v24 = vadd.f32 %v684_v23, %v7138_v7  ;;  %v5493_v25 = vpop.f32.mrb[5].mxu1 }
 0x22c   :  { %v762_v26 = vadd.f32 %v758_v21, %v688_v24 }
 0x22e   :  { %6611 = vtanh.f32 %v762_v26  ;;  %v5019_v29 = vmul.f32 -1.442695, %v762_v26 }
 0x230   :  { %6613 = vpow2.f32 %v5019_v29 }
 0x238   :  { %v6612_v28 = vpop.eup %6611 }
 0x239   :  { %775 = vrot.lane.b32.xlu0 %v6612_v28, %s6823_s11 }
 0x23a   :  { %v6614_v31 = vpop.eup %6613 }
 0x23b   :  { %v766_v32 = vadd.f32 1.0, %v6614_v31 }
 0x23d   :  { %770 = vrot.lane.b32.xlu0 %v7058_v43, %s6824_s21  ;;  %6615 = vrcp.f32 %v766_v32 }
 0x247   :  { %v6616_v33 = vpop.eup %6615 }
 0x2ab   :  { %v776_v34 = vpop.permute.xlu0 %775 }
 0x2ac   :  { %v778_v36 = vmul.f32 %v6616_v33, %v776_v34 }
 0x2ae   :  { %780 = vrot.lane.b32.xlu1 %v778_v36, %s6824_s21 }
 0x2af   :  { %v771_v7 = vpop.permute.xlu0 %770 }
 0x2b0   :  { %v773_v40 = vmul.f32 %v6616_v33, %v771_v7 }
 0x320   :  { %v781_v44 = vpop.permute.xlu1 %780 }
 0x321   :  { %v7200_v45 = vadd.f32 %v781_v44, %v773_v40 }
 0x323   :  { %6617 = vtanh.f32 %v7200_v45  ;;  %791 = vrot.lane.b32.xlu1 %v7200_v45, %s6825_s1 }
 0x32d   :  { %v6618_v43 = vpop.eup %6617 }
 0x32e   :  { %786 = vrot.lane.b32.xlu0 %v6618_v43, %s6823_s11 }
 0x395   :  { %v792_v46 = vpop.permute.xlu1 %791 }
 0x396   :  { %795 = vst.msk [vmem:[#allocation2] sm:$0x3] %vm794_vm5, %v792_v46  ;;  %5514 = vmatmul.mubr.msk.f32.vlgmr.msra.gmra.mrb[8].mxu0 %vm444_vm3, %v792_v46 }
 0x397   :  { %6200 = vmatpush3.bf16.msra.mxu0 %v7074_v47  ;;  %5532 = vmatprep.mubr.msk.f32.mxu0 %vm6820_vm0, %v6821_v6 }
 0x398   :  { %6201 = vmatprep.subr.bf16.mxu0 %v6819_v3 }
 0x39b   :  { %6203 = vmatpush3.bf16.msra.mxu0 %v7086_v51 }
 0x39c   :  { %6204 = vmatprep.subr.bf16.mxu0 %v6819_v3 }
 0x39f   :  { %6206 = vmatpush3.bf16.msra.mxu0 %v7108_v58 }
 0x3a0   :  { %v787_v49 = vpop.permute.xlu0 %786  ;;  %6207 = vmatprep.subr.bf16.mxu0 %v6819_v3 }
 0x3a1   :  { %v789_v50 = vmul.f32 %v6616_v33, %v787_v49 }
 0x3a3   :  { %1045 = vrot.lane.b32.xlu1 %v789_v50, %s6824_s21  ;;  %6209 = vmatpush3.bf16.msra.mxu0 %v7120_v61 }
 0x3a4   :  { %6216 = vmatprep.subr.bf16.mxu0 %v6819_v3 }
 0x415   :  { %v1046_v53 = vpop.permute.xlu1 %1045 }
 0x416   :  { %5544 = vmatmul.mubr.msk.f32.vlgmr.msra.gmra.mrb[6].mxu1 %vm444_vm3, %v1046_v53 }
 0x417   :  { %5581 = vmatprep.mubr.msk.f32.mxu1 %vm6820_vm0, %v6821_v6  ;;  %6230 = vmatpush3.bf16.msra.mxu1 %v7231_v59 }
 0x418   :  { %6231 = vmatprep.subr.bf16.mxu1 %v6819_v3 }
 0x41b   :  { %6233 = vmatpush3.bf16.msra.mxu1 %v7237_v62 }
 0x41c   :  { %6234 = vmatprep.subr.bf16.mxu1 %v6819_v3 }
 0x41f   :  { %6236 = vmatpush3.bf16.msra.mxu1 %v7247_v1 }
 0x420   :  { %6237 = vmatprep.subr.bf16.mxu1 %v6819_v3 }
 0x423   :  { %6239 = vmatpush3.bf16.msra.mxu1 %v7257_v5 }
 0x424   :  { %6246 = vmatprep.subr.bf16.mxu1 %v6819_v3 }
 0x469   :  { %v864_v8 = vpop.f32.mrb[8].mxu0 }
 0x46a   :  { %v875_v9 = vrot.slane %v864_v8, %v7154_v27  ;;  %v5515_v10 = vpop.f32.mrb[9].mxu0 }
 0x46c   :  { %v876_v18 = vcombine.high %v875_v9, %v875_v9  ;;  %v883_v19 = vrot.slane %v875_v9, %v7154_v27 }
 0x46e   :  { %v890_v20 = vrot.slane %v876_v18, %v7154_v27  ;;  %v894_v21 = vrot.slane %v883_v19, %v7157_v30 }
 0x470   :  { %v898_v22 = vrot.slane %v890_v20, %v7157_v30  ;;  %v901_v23 = vadd.f32 %v894_v21, %v7163_v35 }
 0x472   :  { %v902_v24 = vadd.f32 %v898_v22, %v7167_v41  ;;  %6619 = vtanh.f32 %v901_v23 }
 0x474   :  { %6621 = vtanh.f32 %v902_v24 }
 0x47c   :  { %v6620_v25 = vpop.eup %6619 }
 0x47d   :  { %v905_v26 = vmul.f32 %v6620_v25, %v7175_v48 }
 0x47e   :  { %v6622_v28 = vpop.eup %6621 }
 0x47f   :  { %v906_v29 = vmul.f32 %v6622_v28, %v7175_v48  ;;  %v907_v31 = vsel %vm288_vm2, %v905_v26, -inf }
 0x480   :  { %v908_v32 = vrot.slane %v907_v31, 4 }
 0x481   :  { %v914_v33 = vsel %vm288_vm2, %v906_v29, -inf }
 0x482   :  { %v909_v34 = vmax.f32 %v907_v31, %v908_v32  ;;  %v915_v36 = vrot.slane %v914_v33, 4 }
 0x484   :  { %v910_v7 = vrot.slane %v909_v34, 2  ;;  %v916_v40 = vmax.f32 %v914_v33, %v915_v36 }
 0x486   :  { %v911_v44 = vmax.f32 %v909_v34, %v910_v7  ;;  %v917_v43 = vrot.slane %v916_v40, 2 }
 0x488   :  { %v912_v46 = vrot.slane %v911_v44, 1  ;;  %v918_v49 = vmax.f32 %v916_v40, %v917_v43 }
 0x48a   :  { %v913_v50 = vmax.f32 %v911_v44, %v912_v46  ;;  %v919_v53 = vrot.slane %v918_v49, 1 }
 0x48c   :  { %v920_v54 = vmax.f32 %v918_v49, %v919_v53  ;;  %v921_v55 = vsub.f32 %v905_v26, %v913_v50 }
 0x48e   :  { %v922_v56 = vsub.f32 %v906_v29, %v920_v54  ;;  %v923_v60 = vmul.f32 1.442695, %v921_v55 }
 0x490   :  { %6623 = vpow2.f32 %v923_v60  ;;  %v925_v63 = vmul.f32 1.442695, %v922_v56  ;;  %v80_v60 = vld [vmem:[%s8121_s14] sm:$0xff] }
 0x492   :  { %6625 = vpow2.f32 %v925_v63  ;;  %v81_v63 = vld [vmem:[%s8121_s14 + $0x8] sm:$0xff] }
 0x49a   :  { %v6624_v0 = vpop.eup %6623 }
 0x49b   :  { %v927_v2 = vsel %vm288_vm2, %v6624_v0, 0.0 }
 0x49c   :  { %v6626_v4 = vpop.eup %6625  ;;  %v928_v8 = vrot.slane %v927_v2, 4 }
 0x49d   :  { %v934_v9 = vsel %vm288_vm2, %v6626_v4, 0.0 }
 0x49e   :  { %v929_v10 = vadd.f32 %v928_v8, %v927_v2  ;;  %v935_v18 = vrot.slane %v934_v9, 4  ;;  %v7301_v8 = vpack.c.bf16 %v81_v63, %v80_v60 }
 0x4a0   :  { %v930_v19 = vrot.slane %v929_v10, 2  ;;  %v936_v20 = vadd.f32 %v935_v18, %v934_v9  ;;  %v82_v9 = vld [vmem:[%s8121_s14 + $0x10] sm:$0xff] }
 0x4a2   :  { %v931_v21 = vadd.f32 %v930_v19, %v929_v10  ;;  %v937_v22 = vrot.slane %v936_v20, 2  ;;  %v83_v10 = vld [vmem:[%s8121_s14 + $0x18] sm:$0xff] }
 0x4a3   :  { %v7314_v19 = vpack.c.bf16 %v83_v10, %v82_v9 }
 0x4a4   :  { %v932_v23 = vrot.slane %v931_v21, 1  ;;  %v938_v24 = vadd.f32 %v937_v22, %v936_v20  ;;  %v84_v20 = vld [vmem:[%s8121_s14 + $0x20] sm:$0xff] }
 0x4a6   :  { %v939_v25 = vrot.slane %v938_v24, 1  ;;  %v933_v26 = vadd.f32 %v932_v23, %v931_v21  ;;  %v85_v21 = vld [vmem:[%s8121_s14 + $0x28] sm:$0xff]  ;;  %v86_v23 = vld [vmem:[%s8121_s14 + $0x30] sm:$0xff] }
 0x4a7   :  { %v7326_v22 = vpack.c.bf16 %v85_v21, %v84_v20 }
 0x4a8   :  { %v940_v28 = vadd.f32 %v939_v25, %v938_v24  ;;  %6627 = vrcp.f32 %v933_v26  ;;  %v87_v24 = vld [vmem:[%s8121_s14 + $0x38] sm:$0xff] }
 0x4a9   :  { %v7336_v25 = vpack.c.bf16 %v87_v24, %v86_v23 }
 0x4aa   :  { %6629 = vrcp.f32 %v940_v28 }
 0x4b2   :  { %v6628_v29 = vpop.eup %6627 }
 0x4b3   :  { %v7275_v31 = vmul.f32 %v6628_v29, %v6624_v0 }
 0x4b4   :  { %v6630_v32 = vpop.eup %6629 }
 0x4b5   :  { %v7277_v33 = vmul.f32 %v6630_v32, %v6626_v4  ;;  %v945_v34 = vmul.f32 %v7275_v31, %v7025_v37 }
 0x4b7   :  { %5582 = vmatmul.mubr.msk.f32.vlgmr.msra.gmra.mrb[8].mxu1 %vm288_vm2, %v7277_v33  ;;  %v946_v36 = vmul.f32 %v7277_v33, %v7032_v39  ;;  %v947_v7 = vsel %vm288_vm2, %v945_v34, 0.0 }
 0x4b8   :  { %v948_v40 = vrot.slane %v947_v7, 4  ;;  %6248 = vmatpush3.bf16.msra.mxu1 %v7074_v47  ;;  %5611 = vmatprep.mubr.msk.f32.mxu1 %vm6820_vm0, %v6821_v6 }
 0x4b9   :  { %v954_v44 = vsel %vm288_vm2, %v946_v36, 0.0  ;;  %6249 = vmatprep.subr.bf16.mxu1 %v6819_v3 }
 0x4ba   :  { %v949_v43 = vadd.f32 %v948_v40, %v947_v7  ;;  %v955_v46 = vrot.slane %v954_v44, 4 }
 0x4bc   :  { %v950_v49 = vrot.slane %v949_v43, 2  ;;  %v956_v50 = vadd.f32 %v955_v46, %v954_v44  ;;  %6251 = vmatpush3.bf16.msra.mxu1 %v7086_v51 }
 0x4bd   :  { %6252 = vmatprep.subr.bf16.mxu1 %v6819_v3 }
 0x4be   :  { %v951_v53 = vadd.f32 %v950_v49, %v949_v43  ;;  %v957_v54 = vrot.slane %v956_v50, 2 }
 0x4c0   :  { %v952_v55 = vrot.slane %v951_v53, 1  ;;  %v958_v56 = vadd.f32 %v957_v54, %v956_v50  ;;  %6254 = vmatpush3.bf16.msra.mxu1 %v7108_v58 }
 0x4c1   :  { %6255 = vmatprep.subr.bf16.mxu1 %v6819_v3 }
 0x4c2   :  { %v959_v0 = vrot.slane %v958_v56, 1  ;;  %v953_v2 = vadd.f32 %v952_v55, %v951_v53 }
 0x4c4   :  { %v960_v4 = vadd.f32 %v959_v0, %v958_v56  ;;  %6257 = vmatpush3.bf16.msra.mxu1 %v7120_v61  ;;  %v1130_v0 = vrot.slane %v7200_v45, 6 }
 0x4c5   :  { %6276 = vmatprep.subr.bf16.mxu1 %v6819_v3 }
 0x4c6   :  { %v967_v18 = vsel %vm614_vm4, %v960_v4, %v953_v2 }
 0x4c7   :  { %5533 = vmatmul.mubr.msk.f32.vlgmr.msra.gmra.mrb[10].mxu0 %vm288_vm2, %v967_v18 }
 0x4c8   :  { %6218 = vmatpush3.bf16.msra.mxu0 %v7301_v8  ;;  %5562 = vmatprep.mubr.msk.f32.mxu0 %vm6820_vm0, %v6821_v6 }
 0x4c9   :  { %6219 = vmatprep.subr.bf16.mxu0 %v6819_v3 }
 0x4cc   :  { %6221 = vmatpush3.bf16.msra.mxu0 %v7314_v19 }
 0x4cd   :  { %6222 = vmatprep.subr.bf16.mxu0 %v6819_v3 }
 0x4d0   :  { %6224 = vmatpush3.bf16.msra.mxu0 %v7326_v22 }
 0x4d1   :  { %6225 = vmatprep.subr.bf16.mxu0 %v6819_v3 }
 0x4d4   :  { %6227 = vmatpush3.bf16.msra.mxu0 %v7336_v25 }
 0x4d5   :  { %6240 = vmatprep.subr.bf16.mxu0 %v6819_v3 }
 0x4d7   :  { %5563 = vmatmul.mubr.msk.f32.vlgmr.msra.gmra.mrb[12].mxu0 %vm288_vm2, %v7275_v31 }
 0x4d8   :  { %6242 = vmatpush3.bf16.msra.mxu0 %v7027_v38  ;;  %5592 = vmatprep.mubr.msk.f32.mxu0 %vm6820_vm0, %v6821_v6 }
 0x4d9   :  { %6243 = vmatprep.subr.bf16.mxu0 %v6819_v3 }
 0x4dc   :  { %6245 = vmatpush3.bf16.msra.mxu0 %v7047_v42 }
 0x4dd   :  { %6258 = vmatprep.subr.bf16.mxu0 %v6819_v3 }
 0x4e9   :  { %v1115_v26 = vpop.f32.mrb[6].mxu1 }
 0x4ea   :  { %v5545_v28 = vpop.f32.mrb[7].mxu1  ;;  %v1120_v40 = vrot.slane %v1115_v26, 6 }
 0x58a   :  { %v7349_v29 = vpop.f32.mrb[8].mxu1 }
 0x58b   :  { %v5583_v32 = vpop.f32.mrb[9].mxu1 }
 0x59a   :  { %v1036_v34 = vpop.f32.mrb[10].mxu0 }
 0x59b   :  { %v1041_v36 = vrot.slane %v1036_v34, 6  ;;  %v5534_v7 = vpop.f32.mrb[11].mxu0 }
 0x59d   :  { %v1043_v44 = vadd.f32 %v1041_v36, %v7142_v12 }
 0x59f   :  { %v1122_v43 = vadd.f32 %v1120_v40, %v1043_v44 }
 0x5a1   :  { %6631 = vtanh.f32 %v1122_v43  ;;  %v5023_v53 = vmul.f32 -1.442695, %v1122_v43 }
 0x5a3   :  { %6633 = vpow2.f32 %v5023_v53 }
 0x5aa   :  { %v1224_v46 = vpop.f32.mrb[12].mxu0 }
 0x5ab   :  { %v6632_v49 = vpop.eup %6631  ;;  %v5564_v50 = vpop.f32.mrb[13].mxu0 }
 0x5ac   :  { %1134 = vrot.lane.b32.xlu0 %v6632_v49, %s6823_s11 }
 0x5ad   :  { %v6634_v54 = vpop.eup %6633 }
 0x5ae   :  { %v1126_v55 = vadd.f32 1.0, %v6634_v54 }
 0x5b0   :  { %6635 = vrcp.f32 %v1126_v55 }
 0x5ba   :  { %v6636_v56 = vpop.eup %6635 }
 0x5bb   :  { %v1132_v12 = vmul.f32 %v6636_v56, %v1130_v0 }
 0x61e   :  { %v1135_v60 = vpop.permute.xlu0 %1134 }
 0x61f   :  { %v1137_v63 = vmul.f32 %v6636_v56, %v1135_v60 }
 0x621   :  { %1139 = vrot.lane.b32.xlu1 %v1137_v63, %s6824_s21 }
 0x693   :  { %v1140_v2 = vpop.permute.xlu1 %1139 }
 0x694   :  { %v7355_v4 = vadd.f32 %v1140_v2, %v1132_v12 }
 0x696   :  { %6637 = vtanh.f32 %v7355_v4  ;;  %v1301_v9 = vrot.slane %v7355_v4, 2 }
 0x698   :  { %1302 = vrot.lane.b32.xlu0 %v1301_v9, %s6825_s1 }
 0x6a0   :  { %v6638_v10 = vpop.eup %6637 }
 0x6a1   :  { %1145 = vrot.lane.b32.xlu1 %v6638_v10, %s6823_s11 }
 0x70a   :  { %v1303_v18 = vpop.permute.xlu0 %1302 }
 0x70b   :  { %5593 = vmatmul.mubr.msk.f32.vlgmr.msra.gmra.mrb[14].mxu0 %vm444_vm3, %v1303_v18 }
 0x70c   :  { %6260 = vmatpush3.bf16.msra.mxu0 %v7088_v52  ;;  %5622 = vmatprep.mubr.msk.f32.mxu0 %vm6820_vm0, %v6821_v6 }
 0x70d   :  { %6261 = vmatprep.subr.bf16.mxu0 %v6819_v3 }
 0x710   :  { %6263 = vmatpush3.bf16.msra.mxu0 %v7104_v57 }
 0x711   :  { %6264 = vmatprep.subr.bf16.mxu0 %v6819_v3 }
 0x713   :  { %v1146_v45 = vpop.permute.xlu1 %1145 }
 0x714   :  { %v1148_v20 = vmul.f32 %v6636_v56, %v1146_v45 }
 0x716   :  { %v1563_v21 = vrot.slane %v1148_v20, 2 }
 0x718   :  { %1564 = vrot.lane.b32.xlu0 %v1563_v21, %s6824_s21 }
 0x78a   :  { %v1565_v23 = vpop.permute.xlu0 %1564 }
 0x78b   :  { %5623 = vmatmul.mubr.msk.f32.vlgmr.msra.gmra.mrb[16].mxu0 %vm444_vm3, %v1565_v23 }
 0x78c   :  { %6266 = vmatpush3.bf16.msra.mxu0 %v7301_v8  ;;  %5641 = vmatprep.mubr.msk.f32.mxu0 %vm6820_vm0, %v6821_v6 }
 0x78d   :  { %6267 = vmatprep.subr.bf16.mxu0 %v6819_v3 }
 0x790   :  { %6269 = vmatpush3.bf16.msra.mxu0 %v7314_v19 }
 0x791   :  { %6270 = vmatprep.subr.bf16.mxu0 %v6819_v3 }
 0x794   :  { %6272 = vmatpush3.bf16.msra.mxu0 %v7326_v22 }
 0x795   :  { %6273 = vmatprep.subr.bf16.mxu0 %v6819_v3 }
 0x798   :  { %6275 = vmatpush3.bf16.msra.mxu0 %v7336_v25 }
 0x799   :  { %6288 = vmatprep.subr.bf16.mxu0 %v6819_v3 }
 0x7de   :  { %v1372_v24 = vpop.f32.mrb[14].mxu0 }
 0x7df   :  { %v1383_v26 = vrot.slane %v1372_v24, %v7154_v27  ;;  %v5594_v28 = vpop.f32.mrb[15].mxu0 }
 0x7e1   :  { %v1384_v32 = vcombine.high %v1383_v26, %v1383_v26  ;;  %v1391_v34 = vrot.slane %v1383_v26, %v7154_v27 }
 0x7e3   :  { %v1398_v36 = vrot.slane %v1384_v32, %v7154_v27  ;;  %v1402_v7 = vrot.slane %v1391_v34, %v7157_v30 }
 0x7e5   :  { %v1406_v40 = vrot.slane %v1398_v36, %v7157_v30  ;;  %v1409_v44 = vadd.f32 %v1402_v7, %v7163_v35 }
 0x7e7   :  { %v1410_v43 = vadd.f32 %v1406_v40, %v7167_v41  ;;  %v1411_v49 = vadd.f32 %v1409_v44, %v1224_v46 }
 0x7e9   :  { %v1412_v50 = vadd.f32 %v1410_v43, %v7349_v29  ;;  %6639 = vtanh.f32 %v1411_v49 }
 0x7eb   :  { %6641 = vtanh.f32 %v1412_v50 }
 0x7f3   :  { %v6640_v53 = vpop.eup %6639 }
 0x7f4   :  { %v1415_v54 = vmul.f32 %v6640_v53, %v7175_v48 }
 0x7f5   :  { %v6642_v55 = vpop.eup %6641 }
 0x7f6   :  { %v1416_v56 = vmul.f32 %v6642_v55, %v7175_v48  ;;  %v1417_v60 = vsel %vm288_vm2, %v1415_v54, -inf }
 0x7f7   :  { %v1418_v63 = vrot.slane %v1417_v60, 4 }
 0x7f8   :  { %v1424_v0 = vsel %vm288_vm2, %v1416_v56, -inf }
 0x7f9   :  { %v1419_v12 = vmax.f32 %v1417_v60, %v1418_v63  ;;  %v1425_v2 = vrot.slane %v1424_v0, 4 }
 0x7fb   :  { %v1420_v9 = vrot.slane %v1419_v12, 2  ;;  %v1426_v10 = vmax.f32 %v1424_v0, %v1425_v2 }
 0x7fd   :  { %v1421_v46 = vmax.f32 %v1419_v12, %v1420_v9  ;;  %v1427_v18 = vrot.slane %v1426_v10, 2 }
 0x7ff   :  { %v1422_v29 = vrot.slane %v1421_v46, 1  ;;  %v1428_v45 = vmax.f32 %v1426_v10, %v1427_v18 }
 0x801   :  { %v1423_v20 = vmax.f32 %v1421_v46, %v1422_v29  ;;  %v1429_v21 = vrot.slane %v1428_v45, 1 }
 0x803   :  { %v1430_v23 = vmax.f32 %v1428_v45, %v1429_v21  ;;  %v1431_v24 = vsub.f32 %v1415_v54, %v1423_v20 }
 0x805   :  { %v1432_v26 = vsub.f32 %v1416_v56, %v1430_v23  ;;  %v1433_v28 = vmul.f32 1.442695, %v1431_v24 }
 0x807   :  { %6643 = vpow2.f32 %v1433_v28  ;;  %v1435_v32 = vmul.f32 1.442695, %v1432_v26 }
 0x809   :  { %6645 = vpow2.f32 %v1435_v32 }
 0x811   :  { %v6644_v34 = vpop.eup %6643 }
 0x812   :  { %v1437_v36 = vsel %vm288_vm2, %v6644_v34, 0.0 }
 0x813   :  { %v6646_v7 = vpop.eup %6645  ;;  %v1438_v40 = vrot.slane %v1437_v36, 4 }
 0x814   :  { %v1444_v44 = vsel %vm288_vm2, %v6646_v7, 0.0 }
 0x815   :  { %v1445_v43 = vrot.slane %v1444_v44, 4  ;;  %v1439_v49 = vadd.f32 %v1438_v40, %v1437_v36 }
 0x817   :  { %v1446_v50 = vadd.f32 %v1445_v43, %v1444_v44  ;;  %v1440_v53 = vrot.slane %v1439_v49, 2 }
 0x819   :  { %v1441_v55 = vadd.f32 %v1440_v53, %v1439_v49  ;;  %v1447_v60 = vrot.slane %v1446_v50, 2 }
 0x81b   :  { %v1442_v63 = vrot.slane %v1441_v55, 1  ;;  %v1448_v54 = vadd.f32 %v1447_v60, %v1446_v50 }
 0x81d   :  { %v1443_v56 = vadd.f32 %v1442_v63, %v1441_v55  ;;  %v1449_v0 = vrot.slane %v1448_v54, 1 }
 0x81f   :  { %6647 = vrcp.f32 %v1443_v56  ;;  %v1450_v12 = vadd.f32 %v1449_v0, %v1448_v54 }
 0x821   :  { %6649 = vrcp.f32 %v1450_v12 }
 0x829   :  { %v6648_v2 = vpop.eup %6647 }
 0x82a   :  { %v7394_v9 = vmul.f32 %v6648_v2, %v6644_v34 }
 0x82b   :  { %v6650_v10 = vpop.eup %6649 }
 0x82c   :  { %v7398_v46 = vadd.f32 %v7394_v9, %v7275_v31  ;;  %v7400_v18 = vmul.f32 %v6650_v10, %v6646_v7  ;;  %v1455_v29 = vmul.f32 %v7394_v9, %v7025_v37 }
 0x82e   :  { %5642 = vmatmul.mubr.msk.f32.vlgmr.msra.gmra.mrb[18].mxu0 %vm288_vm2, %v7398_v46  ;;  %v1456_v45 = vmul.f32 %v7400_v18, %v7032_v39  ;;  %v1457_v20 = vsel %vm288_vm2, %v1455_v29, 0.0  ;;  %v7430_v49 = vadd.f32 %v7400_v18, %v7277_v33 }
 0x82f   :  { %v1458_v21 = vrot.slane %v1457_v20, 4  ;;  %6290 = vmatpush3.bf16.msra.mxu0 %v7027_v38  ;;  %5671 = vmatprep.mubr.msk.f32.mxu0 %vm6820_vm0, %v6821_v6 }
 0x830   :  { %v1464_v23 = vsel %vm288_vm2, %v1456_v45, 0.0  ;;  %6291 = vmatprep.subr.bf16.mxu0 %v6819_v3 }
 0x831   :  { %v1459_v24 = vadd.f32 %v1458_v21, %v1457_v20  ;;  %v1465_v37 = vrot.slane %v1464_v23, 4 }
 0x833   :  { %v1460_v26 = vrot.slane %v1459_v24, 2  ;;  %v1466_v28 = vadd.f32 %v1465_v37, %v1464_v23  ;;  %6293 = vmatpush3.bf16.msra.mxu0 %v7047_v42 }
 0x834   :  { %6306 = vmatprep.subr.bf16.mxu0 %v6819_v3 }
 0x835   :  { %v1461_v39 = vadd.f32 %v1460_v26, %v1459_v24  ;;  %v1467_v32 = vrot.slane %v1466_v28, 2 }
 0x837   :  { %v1462_v34 = vrot.slane %v1461_v39, 1  ;;  %v1468_v36 = vadd.f32 %v1467_v32, %v1466_v28  ;;  %v1649_v28 = vrot.slane %v7355_v4, 6 }
 0x839   :  { %v1469_v7 = vrot.slane %v1468_v36, 1  ;;  %v1463_v40 = vadd.f32 %v1462_v34, %v1461_v39 }
 0x83b   :  { %v1470_v44 = vadd.f32 %v1469_v7, %v1468_v36 }
 0x83d   :  { %v1479_v43 = vsel %vm614_vm4, %v1470_v44, %v1463_v40 }
 0x83e   :  { %1482 = vst.msk [vmem:[#allocation3] sm:$0x3] %vm1481_vm6, %v1479_v43  ;;  %5612 = vmatmul.mubr.msk.f32.vlgmr.msra.gmra.mrb[10].mxu1 %vm288_vm2, %v1479_v43 }
 0x83f   :  { %6278 = vmatpush3.bf16.msra.mxu1 %v7231_v59  ;;  %5660 = vmatprep.mubr.msk.f32.mxu1 %vm6820_vm0, %v6821_v6 }
 0x840   :  { %6279 = vmatprep.subr.bf16.mxu1 %v6819_v3 }
 0x843   :  { %6281 = vmatpush3.bf16.msra.mxu1 %v7237_v62 }
 0x844   :  { %6282 = vmatprep.subr.bf16.mxu1 %v6819_v3 }
 0x847   :  { %6284 = vmatpush3.bf16.msra.mxu1 %v7247_v1 }
 0x848   :  { %6285 = vmatprep.subr.bf16.mxu1 %v6819_v3 }
 0x84b   :  { %6287 = vmatpush3.bf16.msra.mxu1 %v7257_v5 }
 0x84c   :  { %6294 = vmatprep.subr.bf16.mxu1 %v6819_v3 }
 0x84e   :  { %5661 = vmatmul.mubr.msk.f32.vlgmr.msra.gmra.mrb[12].mxu1 %vm288_vm2, %v7430_v49 }
 0x84f   :  { %6296 = vmatpush3.bf16.msra.mxu1 %v7074_v47  ;;  %5690 = vmatprep.mubr.msk.f32.mxu1 %vm6820_vm0, %v6821_v6 }
 0x850   :  { %6297 = vmatprep.subr.bf16.mxu1 %v6819_v3 }
 0x853   :  { %6299 = vmatpush3.bf16.msra.mxu1 %v7086_v51 }
 0x854   :  { %6300 = vmatprep.subr.bf16.mxu1 %v6819_v3 }
 0x857   :  { %6302 = vmatpush3.bf16.msra.mxu1 %v7108_v58 }
 0x858   :  { %6303 = vmatprep.subr.bf16.mxu1 %v6819_v3 }
 0x85b   :  { %6305 = vmatpush3.bf16.msra.mxu1 %v7120_v61 }
 0x85c   :  { %6324 = vmatprep.subr.bf16.mxu1 %v6819_v3 }
 0x85e   :  { %v1634_v50 = vpop.f32.mrb[16].mxu0 }
 0x85f   :  { %v5624_v53 = vpop.f32.mrb[17].mxu0  ;;  %v1639_v0 = vrot.slane %v1634_v50, 4 }
 0x901   :  { %v7445_v55 = vpop.f32.mrb[18].mxu0 }
 0x902   :  { %v5643_v60 = vpop.f32.mrb[19].mxu0 }
 0x911   :  { %v1554_v63 = vpop.f32.mrb[10].mxu1 }
 0x912   :  { %v1559_v54 = vrot.slane %v1554_v63, 4  ;;  %v5613_v56 = vpop.f32.mrb[11].mxu1 }
 0x914   :  { %v1561_v12 = vadd.f32 %v1559_v54, %v7144_v13 }
 0x916   :  { %v1641_v2 = vadd.f32 %v1639_v0, %v1561_v12 }
 0x918   :  { %6651 = vtanh.f32 %v1641_v2  ;;  %v5029_v20 = vmul.f32 -1.442695, %v1641_v2 }
 0x91a   :  { %6653 = vpow2.f32 %v5029_v20 }
 0x921   :  { %v1816_v10 = vpop.f32.mrb[12].mxu1 }
 0x922   :  { %v6652_v29 = vpop.eup %6651  ;;  %v5662_v45 = vpop.f32.mrb[13].mxu1 }
 0x923   :  { %1653 = vrot.lane.b32.xlu1 %v6652_v29, %s6823_s11 }
 0x924   :  { %v6654_v21 = vpop.eup %6653 }
 0x925   :  { %v1645_v23 = vadd.f32 1.0, %v6654_v21 }
 0x927   :  { %6655 = vrcp.f32 %v1645_v23 }
 0x931   :  { %v6656_v24 = vpop.eup %6655 }
 0x932   :  { %v1651_v13 = vmul.f32 %v6656_v24, %v1649_v28 }
 0x995   :  { %v1654_v37 = vpop.permute.xlu1 %1653 }
 0x996   :  { %v1656_v26 = vmul.f32 %v6656_v24, %v1654_v37 }
 0x998   :  { %1658 = vrot.lane.b32.xlu0 %v1656_v26, %s6824_s21 }
 0xa0a   :  { %v1659_v39 = vpop.permute.xlu0 %1658 }
 0xa0b   :  { %v7451_v32 = vadd.f32 %v1659_v39, %v1651_v13 }
 0xa0d   :  { %6657 = vtanh.f32 %v7451_v32  ;;  %v1820_v34 = vrot.slane %v7451_v32, 4 }
 0xa0f   :  { %1821 = vrot.lane.b32.xlu1 %v1820_v34, %s6825_s1 }
 0xa17   :  { %v6658_v36 = vpop.eup %6657 }
 0xa18   :  { %1664 = vrot.lane.b32.xlu0 %v6658_v36, %s6823_s11 }
 0xa81   :  { %v1822_v7 = vpop.permute.xlu1 %1821 }
 0xa82   :  { %5672 = vmatmul.mubr.msk.f32.vlgmr.msra.gmra.mrb[20].mxu0 %vm444_vm3, %v1822_v7 }
 0xa83   :  { %6308 = vmatpush3.bf16.msra.mxu0 %v7088_v52  ;;  %5701 = vmatprep.mubr.msk.f32.mxu0 %vm6820_vm0, %v6821_v6 }
 0xa84   :  { %6309 = vmatprep.subr.bf16.mxu0 %v6819_v3 }
 0xa87   :  { %6311 = vmatpush3.bf16.msra.mxu0 %v7104_v57 }
 0xa88   :  { %6312 = vmatprep.subr.bf16.mxu0 %v6819_v3 }
 0xa8a   :  { %v1665_v40 = vpop.permute.xlu0 %1664 }
 0xa8b   :  { %v1667_v44 = vmul.f32 %v6656_v24, %v1665_v40 }
 0xa8d   :  { %v2081_v43 = vrot.slane %v1667_v44, 4 }
 0xa8f   :  { %2082 = vrot.lane.b32.xlu1 %v2081_v43, %s6824_s21 }
 0xb01   :  { %v2083_v50 = vpop.permute.xlu1 %2082 }
 0xb02   :  { %5702 = vmatmul.mubr.msk.f32.vlgmr.msra.gmra.mrb[22].mxu0 %vm444_vm3, %v2083_v50 }
 0xb03   :  { %6314 = vmatpush3.bf16.msra.mxu0 %v7301_v8  ;;  %5720 = vmatprep.mubr.msk.f32.mxu0 %vm6820_vm0, %v6821_v6 }
 0xb04   :  { %6315 = vmatprep.subr.bf16.mxu0 %v6819_v3 }
 0xb07   :  { %6317 = vmatpush3.bf16.msra.mxu0 %v7314_v19 }
 0xb08   :  { %6318 = vmatprep.subr.bf16.mxu0 %v6819_v3 }
 0xb0b   :  { %6320 = vmatpush3.bf16.msra.mxu0 %v7326_v22 }
 0xb0c   :  { %6321 = vmatprep.subr.bf16.mxu0 %v6819_v3 }
 0xb0f   :  { %6323 = vmatpush3.bf16.msra.mxu0 %v7336_v25 }
 0xb10   :  { %6336 = vmatprep.subr.bf16.mxu0 %v6819_v3 }
 0xb55   :  { %v1891_v53 = vpop.f32.mrb[20].mxu0 }
 0xb56   :  { %v1902_v60 = vrot.slane %v1891_v53, %v7154_v27  ;;  %v5673_v63 = vpop.f32.mrb[21].mxu0 }
 0xb58   :  { %v1903_v54 = vcombine.high %v1902_v60, %v1902_v60  ;;  %v1910_v56 = vrot.slane %v1902_v60, %v7154_v27 }
 0xb5a   :  { %v1917_v0 = vrot.slane %v1903_v54, %v7154_v27  ;;  %v1921_v12 = vrot.slane %v1910_v56, %v7157_v30 }
 0xb5c   :  { %v1925_v2 = vrot.slane %v1917_v0, %v7157_v30  ;;  %v1928_v29 = vadd.f32 %v1921_v12, %v7163_v35 }
 0xb5e   :  { %v1929_v45 = vadd.f32 %v1925_v2, %v7167_v41  ;;  %v1930_v20 = vadd.f32 %v1928_v29, %v7445_v55 }
 0xb60   :  { %v1931_v21 = vadd.f32 %v1929_v45, %v1816_v10  ;;  %6659 = vtanh.f32 %v1930_v20 }
 0xb62   :  { %6661 = vtanh.f32 %v1931_v21 }
 0xb6a   :  { %v6660_v23 = vpop.eup %6659 }
 0xb6b   :  { %v1934_v24 = vmul.f32 %v6660_v23, %v7175_v48 }
 0xb6c   :  { %v6662_v37 = vpop.eup %6661 }
 0xb6d   :  { %v1935_v26 = vmul.f32 %v6662_v37, %v7175_v48  ;;  %v1936_v28 = vsel %vm288_vm2, %v1934_v24, -inf }
 0xb6e   :  { %v1937_v13 = vrot.slane %v1936_v28, 4 }
 0xb6f   :  { %v1943_v39 = vsel %vm288_vm2, %v1935_v26, -inf }
 0xb70   :  { %v1938_v34 = vmax.f32 %v1936_v28, %v1937_v13  ;;  %v1944_v36 = vrot.slane %v1943_v39, 4 }
 0xb72   :  { %v1939_v7 = vrot.slane %v1938_v34, 2  ;;  %v1945_v40 = vmax.f32 %v1943_v39, %v1944_v36 }
 0xb74   :  { %v1940_v44 = vmax.f32 %v1938_v34, %v1939_v7  ;;  %v1946_v55 = vrot.slane %v1945_v40, 2 }
 0xb76   :  { %v1941_v10 = vrot.slane %v1940_v44, 1  ;;  %v1947_v43 = vmax.f32 %v1945_v40, %v1946_v55  ;;  %v1473_v40 = vmin.f32 %v7398_v46, %v7394_v9 }
 0xb78   :  { %v1942_v50 = vmax.f32 %v1940_v44, %v1941_v10  ;;  %v1948_v53 = vrot.slane %v1947_v43, 1  ;;  %v1474_v10 = vmin.f32 %v7430_v49, %v7400_v18 }
 0xb7a   :  { %v1949_v60 = vmax.f32 %v1947_v43, %v1948_v53  ;;  %v1950_v63 = vsub.f32 %v1934_v24, %v1942_v50  ;;  %v7500_v53 = vld [vmem:[%s8111_s4] sm:$0xff] }
 0xb7c   :  { %v1951_v54 = vsub.f32 %v1935_v26, %v1949_v60  ;;  %v1952_v56 = vmul.f32 1.442695, %v1950_v63  ;;  %v1475_v63 = vadd.f32 %v1473_v40, %v7275_v31  ;;  %v1476_v31 = vadd.f32 %v1474_v10, %v7277_v33 }
 0xb7e   :  { %6663 = vpow2.f32 %v1952_v56  ;;  %v1954_v48 = vmul.f32 1.442695, %v1951_v54 }
 0xb80   :  { %6665 = vpow2.f32 %v1954_v48 }
 0xb88   :  { %v6664_v0 = vpop.eup %6663 }
 0xb89   :  { %v1956_v12 = vsel %vm288_vm2, %v6664_v0, 0.0 }
 0xb8a   :  { %v6666_v2 = vpop.eup %6665  ;;  %v1957_v29 = vrot.slane %v1956_v12, 4 }
 0xb8b   :  { %v1963_v45 = vsel %vm288_vm2, %v6666_v2, 0.0 }
 0xb8c   :  { %v1964_v20 = vrot.slane %v1963_v45, 4  ;;  %v1958_v21 = vadd.f32 %v1957_v29, %v1956_v12 }
 0xb8e   :  { %v1965_v23 = vadd.f32 %v1964_v20, %v1963_v45  ;;  %v1959_v37 = vrot.slane %v1958_v21, 2 }
 0xb90   :  { %v1960_v28 = vadd.f32 %v1959_v37, %v1958_v21  ;;  %v1966_v13 = vrot.slane %v1965_v23, 2 }
 0xb92   :  { %v1961_v39 = vrot.slane %v1960_v28, 1  ;;  %v1967_v24 = vadd.f32 %v1966_v13, %v1965_v23 }
 0xb94   :  { %v1962_v26 = vadd.f32 %v1961_v39, %v1960_v28  ;;  %v1968_v34 = vrot.slane %v1967_v24, 1 }
 0xb96   :  { %6667 = vrcp.f32 %v1962_v26  ;;  %v1969_v36 = vadd.f32 %v1968_v34, %v1967_v24 }
 0xb98   :  { %6669 = vrcp.f32 %v1969_v36 }
 0xba0   :  { %v6668_v7 = vpop.eup %6667 }
 0xba1   :  { %v1971_v44 = vmul.f32 %v6668_v7, %v6664_v0 }
 0xba2   :  { %v6670_v55 = vpop.eup %6669 }
 0xba3   :  { %v7495_v43 = vadd.f32 %v1971_v44, %v7398_v46  ;;  %v1973_v50 = vmul.f32 %v6670_v55, %v6666_v2  ;;  %v1974_v60 = vmul.f32 %v7500_v53, %v1971_v44  ;;  %v7510_v46 = vld [vmem:[%s8111_s4 + $0x8] sm:$0xff] }
 0xba5   :  { %v1992_v9 = vmin.f32 %v7495_v43, %v1971_v44  ;;  %5721 = vmatmul.mubr.msk.f32.vlgmr.msra.gmra.mrb[24].mxu0 %vm288_vm2, %v7495_v43  ;;  %v1975_v18 = vmul.f32 %v7510_v46, %v1973_v50  ;;  %v1976_v54 = vsel %vm288_vm2, %v1974_v60, 0.0  ;;  %v7515_v56 = vadd.f32 %v1973_v50, %v7430_v49 }
 0xba6   :  { %v1977_v48 = vrot.slane %v1976_v54, 4  ;;  %6338 = vmatpush3.bf16.msra.mxu0 %v7027_v38  ;;  %5750 = vmatprep.mubr.msk.f32.mxu0 %vm6820_vm0, %v6821_v6 }
 0xba7   :  { %v7521_v0 = vadd.f32 %v1992_v9, %v1475_v63  ;;  %v1983_v12 = vsel %vm288_vm2, %v1975_v18, 0.0  ;;  %v1993_v2 = vmin.f32 %v7515_v56, %v1973_v50  ;;  %6339 = vmatprep.subr.bf16.mxu0 %v6819_v3 }
 0xba8   :  { %v1978_v29 = vadd.f32 %v1977_v48, %v1976_v54  ;;  %v1984_v45 = vrot.slane %v1983_v12, 4 }
 0xba9   :  { %v7526_v49 = vadd.f32 %v1993_v2, %v1476_v31 }
 0xbaa   :  { %v1979_v20 = vrot.slane %v1978_v29, 2  ;;  %v1985_v21 = vadd.f32 %v1984_v45, %v1983_v12  ;;  %6341 = vmatpush3.bf16.msra.mxu0 %v7047_v42 }
 0xbab   :  { %6360 = vmatprep.subr.bf16.mxu0 %v6819_v3 }
 0xbac   :  { %v1980_v23 = vadd.f32 %v1979_v20, %v1978_v29  ;;  %v1986_v33 = vrot.slane %v1985_v21, 2  ;;  %v2167_v20 = vrot.slane %v7451_v32, 6 }
 0xbae   :  { %v1981_v37 = vrot.slane %v1980_v23, 1  ;;  %v1987_v28 = vadd.f32 %v1986_v33, %v1985_v21 }
 0xbb0   :  { %v1988_v13 = vrot.slane %v1987_v28, 1  ;;  %v1982_v39 = vadd.f32 %v1981_v37, %v1980_v23 }
 0xbb2   :  { %v1989_v24 = vadd.f32 %v1988_v13, %v1987_v28 }
 0xbb4   :  { %v1998_v26 = vsel %vm614_vm4, %v1989_v24, %v1982_v39 }
 0xbb5   :  { %2000 = vst.msk [vmem:[#allocation3 + $0x2] sm:$0x3] %vm1481_vm6, %v1998_v26  ;;  %5691 = vmatmul.mubr.msk.f32.vlgmr.msra.gmra.mrb[14].mxu1 %vm288_vm2, %v1998_v26 }
 0xbb6   :  { %6326 = vmatpush3.bf16.msra.mxu1 %v7231_v59  ;;  %5739 = vmatprep.mubr.msk.f32.mxu1 %vm6820_vm0, %v6821_v6 }
 0xbb7   :  { %6327 = vmatprep.subr.bf16.mxu1 %v6819_v3 }
 0xbba   :  { %6329 = vmatpush3.bf16.msra.mxu1 %v7237_v62 }
 0xbbb   :  { %6330 = vmatprep.subr.bf16.mxu1 %v6819_v3 }
 0xbbe   :  { %6332 = vmatpush3.bf16.msra.mxu1 %v7247_v1 }
 0xbbf   :  { %6333 = vmatprep.subr.bf16.mxu1 %v6819_v3 }
 0xbc2   :  { %6335 = vmatpush3.bf16.msra.mxu1 %v7257_v5 }
 0xbc3   :  { %6342 = vmatprep.subr.bf16.mxu1 %v6819_v3 }
 0xbc5   :  { %5740 = vmatmul.mubr.msk.f32.vlgmr.msra.gmra.mrb[16].mxu1 %vm288_vm2, %v7515_v56 }
 0xbc6   :  { %6344 = vmatpush3.bf16.msra.mxu1 %v7074_v47  ;;  %5769 = vmatprep.mubr.msk.f32.mxu1 %vm6820_vm0, %v6821_v6 }
 0xbc7   :  { %6345 = vmatprep.subr.bf16.mxu1 %v6819_v3 }
 0xbca   :  { %6347 = vmatpush3.bf16.msra.mxu1 %v7086_v51 }
 0xbcb   :  { %6348 = vmatprep.subr.bf16.mxu1 %v6819_v3 }
 0xbce   :  { %6350 = vmatpush3.bf16.msra.mxu1 %v7108_v58 }
 0xbcf   :  { %6351 = vmatprep.subr.bf16.mxu1 %v6819_v3 }
 0xbd2   :  { %6353 = vmatpush3.bf16.msra.mxu1 %v7120_v61 }
 0xbd3   :  { %6354 = vmatprep.subr.bf16.mxu1 %v6819_v3 }
 0xbd5   :  { %v2152_v34 = vpop.f32.mrb[22].mxu0 }
 0xbd6   :  { %v5703_v36 = vpop.f32.mrb[23].mxu0  ;;  %v2157_v50 = vrot.slane %v2152_v34, 2 }
 0xc78   :  { %v2261_v7 = vpop.f32.mrb[24].mxu0 }
 0xc79   :  { %v5722_v40 = vpop.f32.mrb[25].mxu0 }
 0xc88   :  { %v2072_v44 = vpop.f32.mrb[14].mxu1 }
 0xc89   :  { %v2077_v55 = vrot.slane %v2072_v44, 2  ;;  %v5692_v10 = vpop.f32.mrb[15].mxu1 }
 0xc8b   :  { %v2079_v60 = vadd.f32 %v2077_v55, %v7146_v14 }
 0xc8d   :  { %v2159_v63 = vadd.f32 %v2157_v50, %v2079_v60 }
 0xc8f   :  { %6671 = vtanh.f32 %v2159_v63  ;;  %v5035_v48 = vmul.f32 -1.442695, %v2159_v63 }
 0xc91   :  { %6673 = vpow2.f32 %v5035_v48 }
 0xc98   :  { %v2334_v9 = vpop.f32.mrb[16].mxu1 }
 0xc99   :  { %v6672_v18 = vpop.eup %6671  ;;  %v5741_v54 = vpop.f32.mrb[17].mxu1 }
 0xc9a   :  { %2171 = vrot.lane.b32.xlu0 %v6672_v18, %s6823_s11 }
 0xc9b   :  { %v6674_v31 = vpop.eup %6673 }
 0xc9c   :  { %v2163_v12 = vadd.f32 1.0, %v6674_v31  ;;  %v7589_v31 = vld [vmem:[%s8120_s13] ss:$0 sm:$0xff] }
 0xc9e   :  { %6675 = vrcp.f32 %v2163_v12 }
 0xca8   :  { %v6676_v2 = vpop.eup %6675 }
 0xca9   :  { %v2169_v14 = vmul.f32 %v6676_v2, %v2167_v20 }
 0xd0c   :  { %v2172_v29 = vpop.permute.xlu0 %2171 }
 0xd0d   :  { %v2174_v45 = vmul.f32 %v6676_v2, %v2172_v29 }
 0xd0f   :  { %2176 = vrot.lane.b32.xlu1 %v2174_v45, %s6824_s21 }
 0xd81   :  { %v2177_v21 = vpop.permute.xlu1 %2176 }
 0xd82   :  { %v7559_v23 = vadd.f32 %v2177_v21, %v2169_v14 }
 0xd84   :  { %6677 = vtanh.f32 %v7559_v23  ;;  %v2338_v33 = vrot.slane %v7559_v23, 6 }
 0xd86   :  { %2339 = vrot.lane.b32.xlu0 %v2338_v33, %s6825_s1 }
 0xd8e   :  { %v6678_v37 = vpop.eup %6677 }
 0xd8f   :  { %2182 = vrot.lane.b32.xlu1 %v6678_v37, %s6823_s11 }
 0xdf8   :  { %v2340_v28 = vpop.permute.xlu0 %2339 }
 0xdf9   :  { %5751 = vmatmul.mubr.msk.f32.vlgmr.msra.gmra.mrb[26].mxu0 %vm444_vm3, %v2340_v28 }
 0xdfa   :  { %6362 = vmatpush3.bf16.msra.mxu0 %v7301_v8  ;;  %5799 = vmatprep.mubr.msk.f32.mxu0 %vm6820_vm0, %v6821_v6 }
 0xdfb   :  { %6363 = vmatprep.subr.bf16.mxu0 %v6819_v3 }
 0xdfe   :  { %6365 = vmatpush3.bf16.msra.mxu0 %v7314_v19 }
 0xdff   :  { %6366 = vmatprep.subr.bf16.mxu0 %v6819_v3 }
 0xe01   :  { %v2183_v13 = vpop.permute.xlu1 %2182 }
 0xe02   :  { %v2185_v39 = vmul.f32 %v6676_v2, %v2183_v13  ;;  %6368 = vmatpush3.bf16.msra.mxu0 %v7326_v22 }
 0xe03   :  { %6369 = vmatprep.subr.bf16.mxu0 %v6819_v3 }
 0xe04   :  { %v2594_v24 = vrot.slane %v2185_v39, 6 }
 0xe06   :  { %2595 = vrot.lane.b32.xlu0 %v2594_v24, %s6824_s21  ;;  %6371 = vmatpush3.bf16.msra.mxu0 %v7336_v25 }
 0xe07   :  { %6372 = vmatprep.subr.bf16.mxu0 %v6819_v3 }
 0xecc   :  { %v2409_v26 = vpop.f32.mrb[26].mxu0 }
 0xecd   :  { %v2420_v34 = vrot.slane %v2409_v26, %v7154_v27  ;;  %v5752_v36 = vpop.f32.mrb[27].mxu0 }
 0xecf   :  { %v2421_v40 = vcombine.high %v2420_v34, %v2420_v34  ;;  %v2428_v44 = vrot.slane %v2420_v34, %v7154_v27 }
 0xed1   :  { %v2435_v55 = vrot.slane %v2421_v40, %v7154_v27  ;;  %v2439_v10 = vrot.slane %v2428_v44, %v7157_v30 }
 0xed3   :  { %v2443_v50 = vrot.slane %v2435_v55, %v7157_v30  ;;  %v2446_v60 = vadd.f32 %v2439_v10, %v7163_v35 }
 0xed5   :  { %v2447_v63 = vadd.f32 %v2443_v50, %v7167_v41  ;;  %v2448_v18 = vadd.f32 %v2446_v60, %v2261_v7 }
 0xed7   :  { %v2449_v54 = vadd.f32 %v2447_v63, %v2334_v9  ;;  %6679 = vtanh.f32 %v2448_v18 }
 0xed9   :  { %6681 = vtanh.f32 %v2449_v54 }
 0xee1   :  { %v6680_v48 = vpop.eup %6679 }
 0xee2   :  { %v2452_v12 = vmul.f32 %v7589_v31, %v6680_v48 }
 0xee3   :  { %v6682_v2 = vpop.eup %6681 }
 0xee4   :  { %v2453_v29 = vmul.f32 %v7589_v31, %v6682_v2  ;;  %v2454_v45 = vsel %vm288_vm2, %v2452_v12, -inf }
 0xee5   :  { %v2455_v20 = vrot.slane %v2454_v45, 4 }
 0xee6   :  { %v2461_v14 = vsel %vm288_vm2, %v2453_v29, -inf }
 0xee7   :  { %v2456_v7 = vmax.f32 %v2454_v45, %v2455_v20  ;;  %v2462_v9 = vrot.slane %v2461_v14, 4 }
 0xee9   :  { %v2457_v21 = vrot.slane %v2456_v7, 2  ;;  %v2463_v37 = vmax.f32 %v2461_v14, %v2462_v9 }
 0xeeb   :  { %v2458_v28 = vmax.f32 %v2456_v7, %v2457_v21  ;;  %v2464_v13 = vrot.slane %v2463_v37, 2 }
 0xeed   :  { %v2459_v39 = vrot.slane %v2458_v28, 1  ;;  %v2465_v24 = vmax.f32 %v2463_v37, %v2464_v13 }
 0xeef   :  { %v2460_v26 = vmax.f32 %v2458_v28, %v2459_v39  ;;  %v2466_v34 = vrot.slane %v2465_v24, 1 }
 0xef1   :  { %v2467_v36 = vmax.f32 %v2465_v24, %v2466_v34  ;;  %v2468_v40 = vsub.f32 %v2452_v12, %v2460_v26 }
 0xef3   :  { %v2469_v44 = vsub.f32 %v2453_v29, %v2467_v36  ;;  %v2470_v55 = vmul.f32 1.442695, %v2468_v40 }
 0xef5   :  { %6683 = vpow2.f32 %v2470_v55  ;;  %v2472_v10 = vmul.f32 1.442695, %v2469_v44 }
 0xef7   :  { %6685 = vpow2.f32 %v2472_v10 }
 0xeff   :  { %v6684_v50 = vpop.eup %6683 }
 0xf00   :  { %v2474_v60 = vsel %vm288_vm2, %v6684_v50, 0.0 }
 0xf01   :  { %v6686_v63 = vpop.eup %6685  ;;  %v2475_v18 = vrot.slane %v2474_v60, 4 }
 0xf02   :  { %v2481_v54 = vsel %vm288_vm2, %v6686_v63, 0.0 }
 0xf03   :  { %v2476_v48 = vadd.f32 %v2475_v18, %v2474_v60  ;;  %v2482_v2 = vrot.slane %v2481_v54, 4 }
 0xf05   :  { %v2477_v45 = vrot.slane %v2476_v48, 2  ;;  %v2483_v20 = vadd.f32 %v2482_v2, %v2481_v54 }
 0xf07   :  { %v2478_v14 = vadd.f32 %v2477_v45, %v2476_v48  ;;  %v2484_v7 = vrot.slane %v2483_v20, 2 }
 0xf09   :  { %v2479_v9 = vrot.slane %v2478_v14, 1  ;;  %v2485_v12 = vadd.f32 %v2484_v7, %v2483_v20 }
 0xf0b   :  { %v2480_v29 = vadd.f32 %v2479_v9, %v2478_v14  ;;  %v2486_v21 = vrot.slane %v2485_v12, 1 }
 0xf0d   :  { %6687 = vrcp.f32 %v2480_v29  ;;  %v2487_v37 = vadd.f32 %v2486_v21, %v2485_v12  ;;  %v2596_v12 = vpop.permute.xlu0 %2595 }
 0xf0f   :  { %6689 = vrcp.f32 %v2487_v37 }
 0xf17   :  { %v6688_v28 = vpop.eup %6687 }
 0xf18   :  { %v2489_v13 = vmul.f32 %v6688_v28, %v6684_v50 }
 0xf19   :  { %v6690_v39 = vpop.eup %6689 }
 0xf1a   :  { %v7598_v24 = vadd.f32 %v2489_v13, %v7495_v43  ;;  %v2491_v26 = vmul.f32 %v6690_v39, %v6686_v63  ;;  %v2492_v34 = vmul.f32 %v7500_v53, %v2489_v13 }
 0xf1c   :  { %v2510_v36 = vmin.f32 %v7598_v24, %v2489_v13  ;;  %5800 = vmatmul.mubr.msk.f32.vlgmr.msra.gmra.mrb[28].mxu0 %vm288_vm2, %v7598_v24  ;;  %v7605_v40 = vadd.f32 %v2491_v26, %v7515_v56  ;;  %v2493_v44 = vmul.f32 %v7510_v46, %v2491_v26  ;;  %v2494_v55 = vsel %vm288_vm2, %v2492_v34, 0.0 }
 0xf1d   :  { %6374 = vmatpush3.bf16.msra.mxu0 %v7231_v59  ;;  %5818 = vmatprep.mubr.msk.f32.mxu0 %vm6820_vm0, %v6821_v6  ;;  %v2495_v43 = vrot.slane %v2494_v55, 4 }
 0xf1e   :  { %6375 = vmatprep.subr.bf16.mxu0 %v6819_v3  ;;  %v2511_v10 = vmin.f32 %v7605_v40, %v2491_v26  ;;  %v2501_v50 = vsel %vm288_vm2, %v2493_v44, 0.0  ;;  %v7616_v60 = vadd.f32 %v2510_v36, %v7521_v0 }
 0xf1f   :  { %v2496_v56 = vadd.f32 %v2495_v43, %v2494_v55  ;;  %v2502_v63 = vrot.slane %v2501_v50, 4 }
 0xf20   :  { %v7619_v18 = vadd.f32 %v2511_v10, %v7526_v49 }
 0xf21   :  { %6377 = vmatpush3.bf16.msra.mxu0 %v7237_v62  ;;  %v2497_v54 = vrot.slane %v2496_v56, 2  ;;  %v2503_v48 = vadd.f32 %v2502_v63, %v2501_v50 }
 0xf22   :  { %6378 = vmatprep.subr.bf16.mxu0 %v6819_v3 }
 0xf23   :  { %v2498_v2 = vadd.f32 %v2497_v54, %v2496_v56  ;;  %v2504_v45 = vrot.slane %v2503_v48, 2 }
 0xf25   :  { %6380 = vmatpush3.bf16.msra.mxu0 %v7247_v1  ;;  %v2499_v20 = vrot.slane %v2498_v2, 1  ;;  %v2505_v14 = vadd.f32 %v2504_v45, %v2503_v48 }
 0xf26   :  { %6381 = vmatprep.subr.bf16.mxu0 %v6819_v3 }
 0xf27   :  { %v2506_v0 = vrot.slane %v2505_v14, 1  ;;  %v2500_v7 = vadd.f32 %v2499_v20, %v2498_v2 }
 0xf29   :  { %6383 = vmatpush3.bf16.msra.mxu0 %v7257_v5  ;;  %v2507_v49 = vadd.f32 %v2506_v0, %v2505_v14 }
 0xf2a   :  { %6402 = vmatprep.subr.bf16.mxu0 %v6819_v3 }
 0xf2b   :  { %v2516_v9 = vsel %vm614_vm4, %v2507_v49, %v2500_v7 }
 0xf2c   :  { %5819 = vmatmul.mubr.msk.f32.vlgmr.msra.gmra.mrb[30].mxu0 %vm288_vm2, %v7605_v40  ;;  %2518 = vst.msk [vmem:[#allocation3 + $0x4] sm:$0x3] %vm1481_vm6, %v2516_v9  ;;  %5770 = vmatmul.mubr.msk.f32.vlgmr.msra.gmra.mrb[18].mxu1 %vm288_vm2, %v2516_v9 }
 0xf2d   :  { %6356 = vmatpush3.bf16.msra.mxu1 %v7088_v52  ;;  %5780 = vmatprep.mubr.msk.f32.mxu1 %vm6820_vm0, %v6821_v6 }
 0xf2e   :  { %6357 = vmatprep.subr.bf16.mxu1 %v6819_v3  ;;  %6404 = vmatpush3.bf16.msra.mxu0 %v7088_v52 }
 0xf2f   :  { %6405 = vmatprep.subr.bf16.mxu0 %v6819_v3  ;;  %5859 = vmatprep.mubr.msk.f32.mxu0 %vm6820_vm0, %v6821_v6 }
 0xf31   :  { %6359 = vmatpush3.bf16.msra.mxu1 %v7104_v57 }
 0xf32   :  { %6384 = vmatprep.subr.bf16.mxu1 %v6819_v3  ;;  %6407 = vmatpush3.bf16.msra.mxu0 %v7104_v57 }
 0xf33   :  { %6408 = vmatprep.subr.bf16.mxu0 %v6819_v3 }
 0xf34   :  { %5781 = vmatmul.mubr.msk.f32.vlgmr.msra.gmra.mrb[18].mxu1 %vm444_vm3, %v2596_v12 }
 0xf35   :  { %6386 = vmatpush3.bf16.msra.mxu1 %v7027_v38  ;;  %5829 = vmatprep.mubr.msk.f32.mxu1 %vm6820_vm0, %v6821_v6 }
 0xf36   :  { %6387 = vmatprep.subr.bf16.mxu1 %v6819_v3 }
 0xf39   :  { %6389 = vmatpush3.bf16.msra.mxu1 %v7047_v42 }
 0xf3a   :  { %6390 = vmatprep.subr.bf16.mxu1 %v6819_v3 }
 0xfef   :  { %v2769_v29 = vpop.f32.mrb[28].mxu0 }
 0xff0   :  { %v5801_v21 = vpop.f32.mrb[29].mxu0 }
 0xfff   :  { %v2842_v37 = vpop.f32.mrb[30].mxu0 }
0x1000   :  { %v5820_v28 = vpop.f32.mrb[31].mxu0 }
0x1007   :  { %v2665_v13 = vpop.f32.mrb[18].mxu1 }
0x1008   :  { %v6584_v39 = vadd.f32 %v2665_v13, %v7140_v11  ;;  %v5782_v26 = vpop.f32.mrb[19].mxu1 }
0x100a   :  { %6691 = vtanh.f32 %v6584_v39  ;;  %v5041_v36 = vmul.f32 -1.442695, %v6584_v39 }
0x100c   :  { %6693 = vpow2.f32 %v5041_v36 }
0x1014   :  { %v6692_v34 = vpop.eup %6691 }
0x1015   :  { %2680 = vrot.lane.b32.xlu1 %v6692_v34, %s6823_s11 }
0x1016   :  { %v6694_v44 = vpop.eup %6693 }
0x1017   :  { %v2673_v55 = vadd.f32 1.0, %v6694_v44 }
0x1019   :  { %6695 = vrcp.f32 %v2673_v55 }
0x1023   :  { %v6696_v43 = vpop.eup %6695 }
0x1024   :  { %v2678_v56 = vmul.f32 %v6696_v43, %v2338_v33 }
0x1087   :  { %v2681_v10 = vpop.permute.xlu1 %2680 }
0x1088   :  { %v2683_v50 = vmul.f32 %v6696_v43, %v2681_v10 }
0x108a   :  { %2685 = vrot.lane.b32.xlu0 %v2683_v50, %s6824_s21 }
0x10fc   :  { %v2686_v63 = vpop.permute.xlu0 %2685 }
0x10fd   :  { %v7656_v11 = vadd.f32 %v2686_v63, %v2678_v56 }
0x10ff   :  { %6697 = vtanh.f32 %v7656_v11  ;;  %2696 = vrot.lane.b32.xlu1 %v7656_v11, %s6825_s1 }
0x1109   :  { %v6698_v54 = vpop.eup %6697 }
0x110a   :  { %2691 = vrot.lane.b32.xlu0 %v6698_v54, %s6823_s11 }
0x1171   :  { %v2697_v48 = vpop.permute.xlu1 %2696 }
0x1172   :  { %2699 = vst.msk [vmem:[#allocation2 + $0x8] sm:$0x3] %vm794_vm5, %v2697_v48  ;;  %5830 = vmatmul.mubr.msk.f32.vlgmr.msra.gmra.mrb[20].mxu1 %vm444_vm3, %v2697_v48 }
0x1173   :  { %6392 = vmatpush3.bf16.msra.mxu1 %v7074_v47  ;;  %5848 = vmatprep.mubr.msk.f32.mxu1 %vm6820_vm0, %v6821_v6 }
0x1174   :  { %6393 = vmatprep.subr.bf16.mxu1 %v6819_v3 }
0x1177   :  { %6395 = vmatpush3.bf16.msra.mxu1 %v7086_v51 }
0x1178   :  { %6396 = vmatprep.subr.bf16.mxu1 %v6819_v3 }
0x117b   :  { %6398 = vmatpush3.bf16.msra.mxu1 %v7108_v58 }
0x117c   :  { %v2692_v33 = vpop.permute.xlu0 %2691  ;;  %6399 = vmatprep.subr.bf16.mxu1 %v6819_v3 }
0x117d   :  { %v2694_v2 = vmul.f32 %v6696_v43, %v2692_v33 }
0x117f   :  { %3102 = vrot.lane.b32.xlu1 %v2694_v2, %s6824_s21  ;;  %6401 = vmatpush3.bf16.msra.mxu1 %v7120_v61 }
0x1180   :  { %6420 = vmatprep.subr.bf16.mxu1 %v6819_v3 }
0x11f1   :  { %v3103_v45 = vpop.permute.xlu1 %3102 }
0x11f2   :  { %5860 = vmatmul.mubr.msk.f32.vlgmr.msra.gmra.mrb[32].mxu0 %vm444_vm3, %v3103_v45 }
0x11f3   :  { %6410 = vmatpush3.bf16.msra.mxu0 %v7301_v8  ;;  %5878 = vmatprep.mubr.msk.f32.mxu0 %vm6820_vm0, %v6821_v6 }
0x11f4   :  { %6411 = vmatprep.subr.bf16.mxu0 %v6819_v3 }
0x11f7   :  { %6413 = vmatpush3.bf16.msra.mxu0 %v7314_v19 }
0x11f8   :  { %6414 = vmatprep.subr.bf16.mxu0 %v6819_v3 }
0x11fb   :  { %6416 = vmatpush3.bf16.msra.mxu0 %v7326_v22 }
0x11fc   :  { %6417 = vmatprep.subr.bf16.mxu0 %v6819_v3 }
0x11ff   :  { %6419 = vmatpush3.bf16.msra.mxu0 %v7336_v25 }
0x1200   :  { %6432 = vmatprep.subr.bf16.mxu0 %v6819_v3 }
0x1245   :  { %v2914_v20 = vpop.f32.mrb[20].mxu1 }
0x1246   :  { %v2925_v14 = vrot.slane %v2914_v20, %v7154_v27  ;;  %v5831_v0 = vpop.f32.mrb[21].mxu1 }
0x1248   :  { %v2926_v7 = vcombine.high %v2925_v14, %v2925_v14  ;;  %v2933_v49 = vrot.slane %v2925_v14, %v7154_v27 }
0x124a   :  { %v2940_v9 = vrot.slane %v2926_v7, %v7154_v27  ;;  %v2944_v12 = vrot.slane %v2933_v49, %v7157_v30 }
0x124c   :  { %v2948_v21 = vrot.slane %v2940_v9, %v7157_v30  ;;  %v2951_v28 = vadd.f32 %v2944_v12, %v7163_v35 }
0x124e   :  { %v2952_v13 = vadd.f32 %v2948_v21, %v7167_v41  ;;  %v2953_v39 = vadd.f32 %v2951_v28, %v2769_v29 }
0x1250   :  { %v2954_v26 = vadd.f32 %v2952_v13, %v2842_v37  ;;  %6699 = vtanh.f32 %v2953_v39 }
0x1252   :  { %6701 = vtanh.f32 %v2954_v26 }
0x125a   :  { %v6700_v34 = vpop.eup %6699 }
0x125b   :  { %v2957_v36 = vmul.f32 %v7589_v31, %v6700_v34 }
0x125c   :  { %v6702_v44 = vpop.eup %6701 }
0x125d   :  { %v2958_v55 = vmul.f32 %v7589_v31, %v6702_v44  ;;  %v2959_v43 = vsel %vm288_vm2, %v2957_v36, -inf }
0x125e   :  { %v2960_v10 = vrot.slane %v2959_v43, 4 }
0x125f   :  { %v2966_v50 = vsel %vm288_vm2, %v2958_v55, -inf }
0x1260   :  { %v2961_v56 = vmax.f32 %v2959_v43, %v2960_v10  ;;  %v2967_v63 = vrot.slane %v2966_v50, 4 }
0x1262   :  { %v2962_v54 = vrot.slane %v2961_v56, 2  ;;  %v2968_v48 = vmax.f32 %v2966_v50, %v2967_v63 }
0x1264   :  { %v2963_v33 = vmax.f32 %v2961_v56, %v2962_v54  ;;  %v2969_v29 = vrot.slane %v2968_v48, 2 }
0x1266   :  { %v2964_v37 = vrot.slane %v2963_v33, 1  ;;  %v2970_v2 = vmax.f32 %v2968_v48, %v2969_v29 }
0x1268   :  { %v2965_v45 = vmax.f32 %v2963_v33, %v2964_v37  ;;  %v2971_v20 = vrot.slane %v2970_v2, 1 }
0x126a   :  { %v2972_v14 = vmax.f32 %v2970_v2, %v2971_v20  ;;  %v2973_v0 = vsub.f32 %v2957_v36, %v2965_v45 }
0x126c   :  { %v2974_v7 = vsub.f32 %v2958_v55, %v2972_v14  ;;  %v2975_v49 = vmul.f32 1.442695, %v2973_v0 }
0x126e   :  { %6703 = vpow2.f32 %v2975_v49  ;;  %v2977_v9 = vmul.f32 1.442695, %v2974_v7 }
0x1270   :  { %6705 = vpow2.f32 %v2977_v9 }
0x1278   :  { %v6704_v12 = vpop.eup %6703 }
0x1279   :  { %v2979_v21 = vsel %vm288_vm2, %v6704_v12, 0.0 }
0x127a   :  { %v6706_v28 = vpop.eup %6705  ;;  %v2980_v13 = vrot.slane %v2979_v21, 4 }
0x127b   :  { %v2986_v39 = vsel %vm288_vm2, %v6706_v28, 0.0 }
0x127c   :  { %v2987_v26 = vrot.slane %v2986_v39, 4  ;;  %v2981_v34 = vadd.f32 %v2980_v13, %v2979_v21 }
0x127e   :  { %v2988_v44 = vadd.f32 %v2987_v26, %v2986_v39  ;;  %v2982_v43 = vrot.slane %v2981_v34, 2 }
0x1280   :  { %v2983_v10 = vadd.f32 %v2982_v43, %v2981_v34  ;;  %v2989_v50 = vrot.slane %v2988_v44, 2 }
0x1282   :  { %v2984_v56 = vrot.slane %v2983_v10, 1  ;;  %v2990_v36 = vadd.f32 %v2989_v50, %v2988_v44 }
0x1284   :  { %v2985_v55 = vadd.f32 %v2984_v56, %v2983_v10  ;;  %v2991_v63 = vrot.slane %v2990_v36, 1 }
0x1286   :  { %6707 = vrcp.f32 %v2985_v55  ;;  %v2992_v54 = vadd.f32 %v2991_v63, %v2990_v36 }
0x1288   :  { %6709 = vrcp.f32 %v2992_v54 }
0x1290   :  { %v6708_v48 = vpop.eup %6707 }
0x1291   :  { %v2994_v33 = vmul.f32 %v6708_v48, %v6704_v12 }
0x1292   :  { %v6710_v29 = vpop.eup %6709 }
0x1293   :  { %v7700_v37 = vadd.f32 %v2994_v33, %v7598_v24  ;;  %v2996_v2 = vmul.f32 %v6710_v29, %v6706_v28  ;;  %v2997_v45 = vmul.f32 %v7500_v53, %v2994_v33 }
0x1295   :  { %v3015_v20 = vmin.f32 %v7700_v37, %v2994_v33  ;;  %5879 = vmatmul.mubr.msk.f32.vlgmr.msra.gmra.mrb[34].mxu0 %vm288_vm2, %v7700_v37  ;;  %v2998_v14 = vmul.f32 %v7510_v46, %v2996_v2  ;;  %v2999_v0 = vsel %vm288_vm2, %v2997_v45, 0.0  ;;  %v7709_v7 = vadd.f32 %v2996_v2, %v7605_v40 }
0x1296   :  { %v3000_v49 = vrot.slane %v2999_v0, 4  ;;  %6434 = vmatpush3.bf16.msra.mxu0 %v7027_v38  ;;  %5908 = vmatprep.mubr.msk.f32.mxu0 %vm6820_vm0, %v6821_v6 }
0x1297   :  { %v3006_v24 = vsel %vm288_vm2, %v2998_v14, 0.0  ;;  %v3016_v9 = vmin.f32 %v7709_v7, %v2996_v2  ;;  %6435 = vmatprep.subr.bf16.mxu0 %v6819_v3  ;;  %v7718_v12 = vadd.f32 %v3015_v20, %v7616_v60 }
0x1298   :  { %v3001_v21 = vadd.f32 %v3000_v49, %v2999_v0  ;;  %v3007_v28 = vrot.slane %v3006_v24, 4 }
0x1299   :  { %v7721_v40 = vadd.f32 %v3016_v9, %v7619_v18 }
0x129a   :  { %v3002_v13 = vrot.slane %v3001_v21, 2  ;;  %v3008_v39 = vadd.f32 %v3007_v28, %v3006_v24  ;;  %6437 = vmatpush3.bf16.msra.mxu0 %v7047_v42 }
0x129b   :  { %6450 = vmatprep.subr.bf16.mxu0 %v6819_v3 }
0x129c   :  { %v3003_v26 = vadd.f32 %v3002_v13, %v3001_v21  ;;  %v3009_v34 = vrot.slane %v3008_v39, 2 }
0x129e   :  { %v3004_v44 = vrot.slane %v3003_v26, 1  ;;  %v3010_v43 = vadd.f32 %v3009_v34, %v3008_v39  ;;  %v3187_v39 = vrot.slane %v7656_v11, 6 }
0x12a0   :  { %v3011_v10 = vrot.slane %v3010_v43, 1  ;;  %v3005_v50 = vadd.f32 %v3004_v44, %v3003_v26 }
0x12a2   :  { %v3012_v56 = vadd.f32 %v3011_v10, %v3010_v43 }
0x12a4   :  { %v3021_v60 = vsel %vm614_vm4, %v3012_v56, %v3005_v50 }
0x12a5   :  { %3023 = vst.msk [vmem:[#allocation3 + $0x6] sm:$0x3] %vm1481_vm6, %v3021_v60  ;;  %5849 = vmatmul.mubr.msk.f32.vlgmr.msra.gmra.mrb[22].mxu1 %vm288_vm2, %v3021_v60 }
0x12a6   :  { %6422 = vmatpush3.bf16.msra.mxu1 %v7231_v59  ;;  %5897 = vmatprep.mubr.msk.f32.mxu1 %vm6820_vm0, %v6821_v6 }
0x12a7   :  { %6423 = vmatprep.subr.bf16.mxu1 %v6819_v3 }
0x12aa   :  { %6425 = vmatpush3.bf16.msra.mxu1 %v7237_v62 }
0x12ab   :  { %6426 = vmatprep.subr.bf16.mxu1 %v6819_v3 }
0x12ae   :  { %6428 = vmatpush3.bf16.msra.mxu1 %v7247_v1 }
0x12af   :  { %6429 = vmatprep.subr.bf16.mxu1 %v6819_v3 }
0x12b2   :  { %6431 = vmatpush3.bf16.msra.mxu1 %v7257_v5 }
0x12b3   :  { %6438 = vmatprep.subr.bf16.mxu1 %v6819_v3 }
0x12b5   :  { %5898 = vmatmul.mubr.msk.f32.vlgmr.msra.gmra.mrb[24].mxu1 %vm288_vm2, %v7709_v7 }
0x12b6   :  { %6440 = vmatpush3.bf16.msra.mxu1 %v7074_v47  ;;  %5927 = vmatprep.mubr.msk.f32.mxu1 %vm6820_vm0, %v6821_v6 }
0x12b7   :  { %6441 = vmatprep.subr.bf16.mxu1 %v6819_v3 }
0x12ba   :  { %6443 = vmatpush3.bf16.msra.mxu1 %v7086_v51 }
0x12bb   :  { %6444 = vmatprep.subr.bf16.mxu1 %v6819_v3 }
0x12be   :  { %6446 = vmatpush3.bf16.msra.mxu1 %v7108_v58 }
0x12bf   :  { %6447 = vmatprep.subr.bf16.mxu1 %v6819_v3 }
0x12c2   :  { %6449 = vmatpush3.bf16.msra.mxu1 %v7120_v61 }
0x12c3   :  { %6468 = vmatprep.subr.bf16.mxu1 %v6819_v3 }
0x12c5   :  { %v3172_v18 = vpop.f32.mrb[32].mxu0 }
0x12c6   :  { %v5861_v36 = vpop.f32.mrb[33].mxu0  ;;  %v3177_v29 = vrot.slane %v3172_v18, 6 }
0x1368   :  { %v7750_v55 = vpop.f32.mrb[34].mxu0 }
0x1369   :  { %v5880_v63 = vpop.f32.mrb[35].mxu0 }
0x1378   :  { %v3093_v54 = vpop.f32.mrb[22].mxu1 }
0x1379   :  { %v3098_v48 = vrot.slane %v3093_v54, 6  ;;  %v5850_v33 = vpop.f32.mrb[23].mxu1 }
0x137b   :  { %v3100_v2 = vadd.f32 %v3098_v48, %v7148_v15 }
0x137d   :  { %v3179_v45 = vadd.f32 %v3177_v29, %v3100_v2 }
0x137f   :  { %6711 = vtanh.f32 %v3179_v45  ;;  %v5047_v49 = vmul.f32 -1.442695, %v3179_v45 }
0x1381   :  { %6713 = vpow2.f32 %v5047_v49 }
0x1388   :  { %v3353_v20 = vpop.f32.mrb[24].mxu1 }
0x1389   :  { %v6712_v14 = vpop.eup %6711  ;;  %v5899_v0 = vpop.f32.mrb[25].mxu1 }
0x138a   :  { %3191 = vrot.lane.b32.xlu0 %v6712_v14, %s6823_s11 }
0x138b   :  { %v6714_v24 = vpop.eup %6713 }
0x138c   :  { %v3183_v9 = vadd.f32 1.0, %v6714_v24 }
0x138e   :  { %6715 = vrcp.f32 %v3183_v9 }
0x1398   :  { %v6716_v21 = vpop.eup %6715 }
0x1399   :  { %v3189_v15 = vmul.f32 %v6716_v21, %v3187_v39 }
0x13fc   :  { %v3192_v28 = vpop.permute.xlu0 %3191 }
0x13fd   :  { %v3194_v13 = vmul.f32 %v6716_v21, %v3192_v28 }
0x13ff   :  { %3196 = vrot.lane.b32.xlu1 %v3194_v13, %s6824_s21 }
0x1471   :  { %v3197_v26 = vpop.permute.xlu1 %3196 }
0x1472   :  { %v7756_v34 = vadd.f32 %v3197_v26, %v3189_v15 }
0x1474   :  { %6717 = vtanh.f32 %v7756_v34  ;;  %v3357_v44 = vrot.slane %v7756_v34, 2 }
0x1476   :  { %3358 = vrot.lane.b32.xlu0 %v3357_v44, %s6825_s1 }
0x147e   :  { %v6718_v43 = vpop.eup %6717 }
0x147f   :  { %3202 = vrot.lane.b32.xlu1 %v6718_v43, %s6823_s11 }
0x14e8   :  { %v3359_v10 = vpop.permute.xlu0 %3358 }
0x14e9   :  { %5909 = vmatmul.mubr.msk.f32.vlgmr.msra.gmra.mrb[36].mxu0 %vm444_vm3, %v3359_v10 }
0x14ea   :  { %6452 = vmatpush3.bf16.msra.mxu0 %v7088_v52  ;;  %5938 = vmatprep.mubr.msk.f32.mxu0 %vm6820_vm0, %v6821_v6 }
0x14eb   :  { %6453 = vmatprep.subr.bf16.mxu0 %v6819_v3 }
0x14ee   :  { %6455 = vmatpush3.bf16.msra.mxu0 %v7104_v57 }
0x14ef   :  { %6456 = vmatprep.subr.bf16.mxu0 %v6819_v3 }
0x14f1   :  { %v3203_v11 = vpop.permute.xlu1 %3202 }
0x14f2   :  { %v3205_v50 = vmul.f32 %v6716_v21, %v3203_v11 }
0x14f4   :  { %v3616_v56 = vrot.slane %v3205_v50, 2 }
0x14f6   :  { %3617 = vrot.lane.b32.xlu0 %v3616_v56, %s6824_s21 }
0x1568   :  { %v3618_v60 = vpop.permute.xlu0 %3617 }
0x1569   :  { %5939 = vmatmul.mubr.msk.f32.vlgmr.msra.gmra.mrb[38].mxu0 %vm444_vm3, %v3618_v60 }
0x156a   :  { %6458 = vmatpush3.bf16.msra.mxu0 %v7301_v8  ;;  %5957 = vmatprep.mubr.msk.f32.mxu0 %vm6820_vm0, %v6821_v6 }
0x156b   :  { %6459 = vmatprep.subr.bf16.mxu0 %v6819_v3 }
0x156e   :  { %6461 = vmatpush3.bf16.msra.mxu0 %v7314_v19 }
0x156f   :  { %6462 = vmatprep.subr.bf16.mxu0 %v6819_v3 }
0x1572   :  { %6464 = vmatpush3.bf16.msra.mxu0 %v7326_v22 }
0x1573   :  { %6465 = vmatprep.subr.bf16.mxu0 %v6819_v3 }
0x1576   :  { %6467 = vmatpush3.bf16.msra.mxu0 %v7336_v25 }
0x1577   :  { %6480 = vmatprep.subr.bf16.mxu0 %v6819_v3 }
0x15bc   :  { %v3428_v18 = vpop.f32.mrb[36].mxu0 }
0x15bd   :  { %v3439_v36 = vrot.slane %v3428_v18, %v7154_v27  ;;  %v5910_v63 = vpop.f32.mrb[37].mxu0 }
0x15bf   :  { %v3440_v54 = vcombine.high %v3439_v36, %v3439_v36  ;;  %v3447_v48 = vrot.slane %v3439_v36, %v7154_v27 }
0x15c1   :  { %v3454_v33 = vrot.slane %v3440_v54, %v7154_v27  ;;  %v3458_v29 = vrot.slane %v3447_v48, %v7157_v30 }
0x15c3   :  { %v3462_v2 = vrot.slane %v3454_v33, %v7157_v30  ;;  %v3465_v45 = vadd.f32 %v3458_v29, %v7163_v35 }
0x15c5   :  { %v3466_v14 = vadd.f32 %v3462_v2, %v7167_v41  ;;  %v3467_v0 = vadd.f32 %v3465_v45, %v7750_v55 }
0x15c7   :  { %v3468_v49 = vadd.f32 %v3466_v14, %v3353_v20  ;;  %6719 = vtanh.f32 %v3467_v0 }
0x15c9   :  { %6721 = vtanh.f32 %v3468_v49 }
0x15d1   :  { %v6720_v24 = vpop.eup %6719 }
0x15d2   :  { %v3471_v9 = vmul.f32 %v7589_v31, %v6720_v24 }
0x15d3   :  { %v6722_v21 = vpop.eup %6721 }
0x15d4   :  { %v3472_v28 = vmul.f32 %v7589_v31, %v6722_v21  ;;  %v3473_v13 = vsel %vm288_vm2, %v3471_v9, -inf }
0x15d5   :  { %v3474_v39 = vrot.slane %v3473_v13, 4 }
0x15d6   :  { %v3480_v15 = vsel %vm288_vm2, %v3472_v28, -inf }
0x15d7   :  { %v3475_v26 = vmax.f32 %v3473_v13, %v3474_v39  ;;  %v3481_v44 = vrot.slane %v3480_v15, 4 }
0x15d9   :  { %v3476_v43 = vrot.slane %v3475_v26, 2  ;;  %v3482_v10 = vmax.f32 %v3480_v15, %v3481_v44 }
0x15db   :  { %v3477_v11 = vmax.f32 %v3475_v26, %v3476_v43  ;;  %v3483_v55 = vrot.slane %v3482_v10, 2 }
0x15dd   :  { %v3478_v20 = vrot.slane %v3477_v11, 1  ;;  %v3484_v50 = vmax.f32 %v3482_v10, %v3483_v55 }
0x15df   :  { %v3479_v56 = vmax.f32 %v3477_v11, %v3478_v20  ;;  %v3485_v60 = vrot.slane %v3484_v50, 1 }
0x15e1   :  { %v3486_v18 = vmax.f32 %v3484_v50, %v3485_v60  ;;  %v3487_v36 = vsub.f32 %v3471_v9, %v3479_v56 }
0x15e3   :  { %v3488_v63 = vsub.f32 %v3472_v28, %v3486_v18  ;;  %v3489_v54 = vmul.f32 1.442695, %v3487_v36 }
0x15e5   :  { %6723 = vpow2.f32 %v3489_v54  ;;  %v3491_v48 = vmul.f32 1.442695, %v3488_v63 }
0x15e7   :  { %6725 = vpow2.f32 %v3491_v48 }
0x15ef   :  { %v6724_v33 = vpop.eup %6723 }
0x15f0   :  { %v3493_v29 = vsel %vm288_vm2, %v6724_v33, 0.0 }
0x15f1   :  { %v6726_v2 = vpop.eup %6725  ;;  %v3494_v45 = vrot.slane %v3493_v29, 4 }
0x15f2   :  { %v3500_v14 = vsel %vm288_vm2, %v6726_v2, 0.0 }
0x15f3   :  { %v3501_v0 = vrot.slane %v3500_v14, 4  ;;  %v3495_v49 = vadd.f32 %v3494_v45, %v3493_v29 }
0x15f5   :  { %v3502_v24 = vadd.f32 %v3501_v0, %v3500_v14  ;;  %v3496_v21 = vrot.slane %v3495_v49, 2 }
0x15f7   :  { %v3497_v13 = vadd.f32 %v3496_v21, %v3495_v49  ;;  %v3503_v39 = vrot.slane %v3502_v24, 2 }
0x15f9   :  { %v3498_v15 = vrot.slane %v3497_v13, 1  ;;  %v3504_v9 = vadd.f32 %v3503_v39, %v3502_v24 }
0x15fb   :  { %v3499_v28 = vadd.f32 %v3498_v15, %v3497_v13  ;;  %v3505_v26 = vrot.slane %v3504_v9, 1 }
0x15fd   :  { %6727 = vrcp.f32 %v3499_v28  ;;  %v3506_v44 = vadd.f32 %v3505_v26, %v3504_v9 }
0x15ff   :  { %6729 = vrcp.f32 %v3506_v44 }
0x1607   :  { %v6728_v43 = vpop.eup %6727 }
0x1608   :  { %v3508_v10 = vmul.f32 %v6728_v43, %v6724_v33 }
0x1609   :  { %v6730_v11 = vpop.eup %6729 }
0x160a   :  { %v7796_v55 = vadd.f32 %v3508_v10, %v7700_v37  ;;  %v3510_v20 = vmul.f32 %v6730_v11, %v6726_v2  ;;  %v3511_v50 = vmul.f32 %v7500_v53, %v3508_v10 }
0x160c   :  { %5958 = vmatmul.mubr.msk.f32.vlgmr.msra.gmra.mrb[40].mxu0 %vm288_vm2, %v7796_v55  ;;  %v3512_v56 = vmul.f32 %v7510_v46, %v3510_v20  ;;  %v3513_v60 = vsel %vm288_vm2, %v3511_v50, 0.0  ;;  %v7804_v18 = vadd.f32 %v3510_v20, %v7709_v7  ;;  %v3529_v36 = vmin.f32 %v7796_v55, %v3508_v10 }
0x160d   :  { %v3514_v63 = vrot.slane %v3513_v60, 4  ;;  %6482 = vmatpush3.bf16.msra.mxu0 %v7027_v38  ;;  %5987 = vmatprep.mubr.msk.f32.mxu0 %vm6820_vm0, %v6821_v6 }
0x160e   :  { %v3520_v53 = vsel %vm288_vm2, %v3512_v56, 0.0  ;;  %6483 = vmatprep.subr.bf16.mxu0 %v6819_v3  ;;  %v3530_v37 = vmin.f32 %v7804_v18, %v3510_v20  ;;  %v7814_v46 = vadd.f32 %v3529_v36, %v7718_v12  ;;  %v3702_v36 = vrot.slane %v7756_v34, 6 }
0x160f   :  { %v3515_v54 = vadd.f32 %v3514_v63, %v3513_v60  ;;  %v3521_v7 = vrot.slane %v3520_v53, 4 }
0x1610   :  { %v7817_v48 = vadd.f32 %v3530_v37, %v7721_v40 }
0x1611   :  { %v3516_v33 = vrot.slane %v3515_v54, 2  ;;  %v3522_v29 = vadd.f32 %v3521_v7, %v3520_v53  ;;  %6485 = vmatpush3.bf16.msra.mxu0 %v7047_v42 }
0x1612   :  { %6498 = vmatprep.subr.bf16.mxu0 %v6819_v3 }
0x1613   :  { %v3517_v2 = vadd.f32 %v3516_v33, %v3515_v54  ;;  %v3523_v45 = vrot.slane %v3522_v29, 2 }
0x1615   :  { %v3518_v14 = vrot.slane %v3517_v2, 1  ;;  %v3524_v0 = vadd.f32 %v3523_v45, %v3522_v29 }
0x1617   :  { %v3525_v49 = vrot.slane %v3524_v0, 1  ;;  %v3519_v24 = vadd.f32 %v3518_v14, %v3517_v2 }
0x1619   :  { %v3526_v21 = vadd.f32 %v3525_v49, %v3524_v0 }
0x161b   :  { %v3535_v12 = vsel %vm614_vm4, %v3526_v21, %v3519_v24 }
0x161c   :  { %3537 = vst.msk [vmem:[#allocation3 + $0x8] sm:$0x3] %vm1481_vm6, %v3535_v12  ;;  %5928 = vmatmul.mubr.msk.f32.vlgmr.msra.gmra.mrb[26].mxu1 %vm288_vm2, %v3535_v12 }
0x161d   :  { %6470 = vmatpush3.bf16.msra.mxu1 %v7231_v59  ;;  %5976 = vmatprep.mubr.msk.f32.mxu1 %vm6820_vm0, %v6821_v6 }
0x161e   :  { %6471 = vmatprep.subr.bf16.mxu1 %v6819_v3 }
0x1621   :  { %6473 = vmatpush3.bf16.msra.mxu1 %v7237_v62 }
0x1622   :  { %6474 = vmatprep.subr.bf16.mxu1 %v6819_v3 }
0x1625   :  { %6476 = vmatpush3.bf16.msra.mxu1 %v7247_v1 }
0x1626   :  { %6477 = vmatprep.subr.bf16.mxu1 %v6819_v3 }
0x1629   :  { %6479 = vmatpush3.bf16.msra.mxu1 %v7257_v5 }
0x162a   :  { %6486 = vmatprep.subr.bf16.mxu1 %v6819_v3 }
0x162c   :  { %5977 = vmatmul.mubr.msk.f32.vlgmr.msra.gmra.mrb[28].mxu1 %vm288_vm2, %v7804_v18 }
0x162d   :  { %6488 = vmatpush3.bf16.msra.mxu1 %v7074_v47  ;;  %6006 = vmatprep.mubr.msk.f32.mxu1 %vm6820_vm0, %v6821_v6 }
0x162e   :  { %6489 = vmatprep.subr.bf16.mxu1 %v6819_v3 }
0x1631   :  { %6491 = vmatpush3.bf16.msra.mxu1 %v7086_v51 }
0x1632   :  { %6492 = vmatprep.subr.bf16.mxu1 %v6819_v3 }
0x1635   :  { %6494 = vmatpush3.bf16.msra.mxu1 %v7108_v58 }
0x1636   :  { %6495 = vmatprep.subr.bf16.mxu1 %v6819_v3 }
0x1639   :  { %6497 = vmatpush3.bf16.msra.mxu1 %v7120_v61 }
0x163a   :  { %6516 = vmatprep.subr.bf16.mxu1 %v6819_v3 }
0x163c   :  { %v3687_v40 = vpop.f32.mrb[38].mxu0 }
0x163d   :  { %v5940_v13 = vpop.f32.mrb[39].mxu0  ;;  %v3692_v26 = vrot.slane %v3687_v40, 4 }
0x16df   :  { %v7846_v47 = vpop.f32.mrb[40].mxu0 }
0x16e0   :  { %v5959_v39 = vpop.f32.mrb[41].mxu0 }
0x16ef   :  { %v3607_v15 = vpop.f32.mrb[26].mxu1 }
0x16f0   :  { %v3612_v9 = vrot.slane %v3607_v15, 4  ;;  %v5929_v28 = vpop.f32.mrb[27].mxu1 }
0x16f2   :  { %v3614_v51 = vadd.f32 %v3612_v9, %v7150_v16 }
0x16f4   :  { %v3694_v44 = vadd.f32 %v3692_v26, %v3614_v51 }
0x16f6   :  { %6731 = vtanh.f32 %v3694_v44  ;;  %v5053_v61 = vmul.f32 -1.442695, %v3694_v44 }
0x16f8   :  { %6733 = vpow2.f32 %v5053_v61 }
0x16ff   :  { %v3868_v58 = vpop.f32.mrb[28].mxu1 }
0x1700   :  { %v6732_v43 = vpop.eup %6731  ;;  %v5978_v10 = vpop.f32.mrb[29].mxu1 }
0x1701   :  { %3706 = vrot.lane.b32.xlu1 %v6732_v43, %s6823_s11 }
0x1702   :  { %v6734_v11 = vpop.eup %6733 }
0x1703   :  { %v3698_v20 = vadd.f32 1.0, %v6734_v11 }
0x1705   :  { %6735 = vrcp.f32 %v3698_v20 }
0x170f   :  { %v6736_v50 = vpop.eup %6735 }
0x1710   :  { %v3704_v16 = vmul.f32 %v6736_v50, %v3702_v36 }
0x1773   :  { %v3707_v56 = vpop.permute.xlu1 %3706 }
0x1774   :  { %v3709_v60 = vmul.f32 %v6736_v50, %v3707_v56 }
0x1776   :  { %3711 = vrot.lane.b32.xlu0 %v3709_v60, %s6824_s21 }
0x17e8   :  { %v3712_v63 = vpop.permute.xlu0 %3711 }
0x17e9   :  { %v7852_v53 = vadd.f32 %v3712_v63, %v3704_v16 }
0x17eb   :  { %6737 = vtanh.f32 %v7852_v53  ;;  %v3872_v37 = vrot.slane %v7852_v53, 4 }
0x17ed   :  { %3873 = vrot.lane.b32.xlu1 %v3872_v37, %s6825_s1 }
0x17f5   :  { %v6738_v54 = vpop.eup %6737 }
0x17f6   :  { %3717 = vrot.lane.b32.xlu0 %v6738_v54, %s6823_s11 }
0x185f   :  { %v3874_v7 = vpop.permute.xlu1 %3873 }
0x1860   :  { %5988 = vmatmul.mubr.msk.f32.vlgmr.msra.gmra.mrb[42].mxu0 %vm444_vm3, %v3874_v7 }
0x1861   :  { %6500 = vmatpush3.bf16.msra.mxu0 %v7088_v52  ;;  %6017 = vmatprep.mubr.msk.f32.mxu0 %vm6820_vm0, %v6821_v6 }
0x1862   :  { %6501 = vmatprep.subr.bf16.mxu0 %v6819_v3 }
0x1865   :  { %6503 = vmatpush3.bf16.msra.mxu0 %v7104_v57 }
0x1866   :  { %6504 = vmatprep.subr.bf16.mxu0 %v6819_v3 }
0x1868   :  { %v3718_v33 = vpop.permute.xlu0 %3717 }
0x1869   :  { %v3720_v29 = vmul.f32 %v6736_v50, %v3718_v33 }
0x186b   :  { %v4131_v2 = vrot.slane %v3720_v29, 4 }
0x186d   :  { %4132 = vrot.lane.b32.xlu1 %v4131_v2, %s6824_s21 }
0x18df   :  { %v4133_v45 = vpop.permute.xlu1 %4132 }
0x18e0   :  { %6018 = vmatmul.mubr.msk.f32.vlgmr.msra.gmra.mrb[44].mxu0 %vm444_vm3, %v4133_v45 }
0x18e1   :  { %6506 = vmatpush3.bf16.msra.mxu0 %v7301_v8  ;;  %6036 = vmatprep.mubr.msk.f32.mxu0 %vm6820_vm0, %v6821_v6 }
0x18e2   :  { %6507 = vmatprep.subr.bf16.mxu0 %v6819_v3 }
0x18e5   :  { %6509 = vmatpush3.bf16.msra.mxu0 %v7314_v19 }
0x18e6   :  { %6510 = vmatprep.subr.bf16.mxu0 %v6819_v3 }
0x18e9   :  { %6512 = vmatpush3.bf16.msra.mxu0 %v7326_v22 }
0x18ea   :  { %6513 = vmatprep.subr.bf16.mxu0 %v6819_v3 }
0x18ed   :  { %6515 = vmatpush3.bf16.msra.mxu0 %v7336_v25 }
0x18ee   :  { %6528 = vmatprep.subr.bf16.mxu0 %v6819_v3 }
0x1933   :  { %v3943_v52 = vpop.f32.mrb[42].mxu0 }
0x1934   :  { %v3954_v57 = vrot.slane %v3943_v52, %v7154_v27  ;;  %v5989_v14 = vpop.f32.mrb[43].mxu0 }
0x1936   :  { %v3955_v0 = vcombine.high %v3954_v57, %v3954_v57  ;;  %v3962_v49 = vrot.slane %v3954_v57, %v7154_v27 }
0x1938   :  { %v3969_v24 = vrot.slane %v3955_v0, %v7154_v27  ;;  %v3973_v21 = vrot.slane %v3962_v49, %v7157_v30 }
0x193a   :  { %v3977_v12 = vrot.slane %v3969_v24, %v7157_v30  ;;  %v3980_v40 = vadd.f32 %v3973_v21, %v7163_v35 }
0x193c   :  { %v3981_v13 = vadd.f32 %v3977_v12, %v7167_v41  ;;  %v3982_v39 = vadd.f32 %v3980_v40, %v7846_v47 }
0x193e   :  { %v3983_v15 = vadd.f32 %v3981_v13, %v3868_v58  ;;  %6739 = vtanh.f32 %v3982_v39 }
0x1940   :  { %6741 = vtanh.f32 %v3983_v15 }
0x1948   :  { %v6740_v9 = vpop.eup %6739 }
0x1949   :  { %v3986_v28 = vmul.f32 %v7589_v31, %v6740_v9 }
0x194a   :  { %v6742_v26 = vpop.eup %6741 }
0x194b   :  { %v3987_v51 = vmul.f32 %v7589_v31, %v6742_v26  ;;  %v3988_v44 = vsel %vm288_vm2, %v3986_v28, -inf }
0x194c   :  { %v3989_v43 = vrot.slane %v3988_v44, 4 }
0x194d   :  { %v3995_v10 = vsel %vm288_vm2, %v3987_v51, -inf }
0x194e   :  { %v3990_v61 = vmax.f32 %v3988_v44, %v3989_v43  ;;  %v3996_v11 = vrot.slane %v3995_v10, 4  ;;  %v7897_v43 = vld [vmem:[%s8111_s4] sm:$0xff] }
0x1950   :  { %v3991_v20 = vrot.slane %v3990_v61, 2  ;;  %v3997_v50 = vmax.f32 %v3995_v10, %v3996_v11 }
0x1952   :  { %v3992_v56 = vmax.f32 %v3990_v61, %v3991_v20  ;;  %v3998_v47 = vrot.slane %v3997_v50, 2  ;;  %v7905_v61 = vld [vmem:[%s8111_s4 + $0x8] sm:$0xff] }
0x1954   :  { %v3993_v58 = vrot.slane %v3992_v56, 1  ;;  %v3999_v60 = vmax.f32 %v3997_v50, %v3998_v47 }
0x1956   :  { %v3994_v36 = vmax.f32 %v3992_v56, %v3993_v58  ;;  %v4000_v16 = vrot.slane %v3999_v60, 1 }
0x1958   :  { %v4001_v63 = vmax.f32 %v3999_v60, %v4000_v16  ;;  %v4002_v37 = vsub.f32 %v3986_v28, %v3994_v36 }
0x195a   :  { %v4003_v54 = vsub.f32 %v3987_v51, %v4001_v63  ;;  %v4004_v7 = vmul.f32 1.442695, %v4002_v37 }
0x195c   :  { %6743 = vpow2.f32 %v4004_v7  ;;  %v4006_v31 = vmul.f32 1.442695, %v4003_v54 }
0x195e   :  { %6745 = vpow2.f32 %v4006_v31 }
0x1966   :  { %v6744_v33 = vpop.eup %6743 }
0x1967   :  { %v4008_v29 = vsel %vm288_vm2, %v6744_v33, 0.0 }
0x1968   :  { %v6746_v2 = vpop.eup %6745  ;;  %v4009_v45 = vrot.slane %v4008_v29, 4 }
0x1969   :  { %v4015_v52 = vsel %vm288_vm2, %v6746_v2, 0.0 }
0x196a   :  { %v4016_v57 = vrot.slane %v4015_v52, 4  ;;  %v4010_v14 = vadd.f32 %v4009_v45, %v4008_v29 }
0x196c   :  { %v4017_v0 = vadd.f32 %v4016_v57, %v4015_v52  ;;  %v4011_v49 = vrot.slane %v4010_v14, 2 }
0x196e   :  { %v4012_v24 = vadd.f32 %v4011_v49, %v4010_v14  ;;  %v4018_v21 = vrot.slane %v4017_v0, 2 }
0x1970   :  { %v4013_v12 = vrot.slane %v4012_v24, 1  ;;  %v4019_v40 = vadd.f32 %v4018_v21, %v4017_v0 }
0x1972   :  { %v4014_v13 = vadd.f32 %v4013_v12, %v4012_v24  ;;  %v4020_v39 = vrot.slane %v4019_v40, 1 }
0x1974   :  { %6747 = vrcp.f32 %v4014_v13  ;;  %v4021_v15 = vadd.f32 %v4020_v39, %v4019_v40 }
0x1976   :  { %6749 = vrcp.f32 %v4021_v15 }
0x197e   :  { %v6748_v9 = vpop.eup %6747 }
0x197f   :  { %v4023_v28 = vmul.f32 %v6748_v9, %v6744_v33 }
0x1980   :  { %v6750_v26 = vpop.eup %6749 }
0x1981   :  { %v7892_v51 = vadd.f32 %v4023_v28, %v7796_v55  ;;  %v4025_v44 = vmul.f32 %v6750_v26, %v6746_v2  ;;  %v4026_v10 = vmul.f32 %v7897_v43, %v4023_v28 }
0x1983   :  { %6037 = vmatmul.mubr.msk.f32.vlgmr.msra.gmra.mrb[46].mxu0 %vm288_vm2, %v7892_v51  ;;  %v4027_v11 = vmul.f32 %v7905_v61, %v4025_v44  ;;  %v4028_v55 = vsel %vm288_vm2, %v4026_v10, 0.0  ;;  %v7910_v20 = vadd.f32 %v4025_v44, %v7804_v18  ;;  %v4044_v50 = vmin.f32 %v7892_v51, %v4023_v28 }
0x1984   :  { %v4029_v56 = vrot.slane %v4028_v55, 4  ;;  %6530 = vmatpush3.bf16.msra.mxu0 %v7027_v38  ;;  %6066 = vmatprep.mubr.msk.f32.mxu0 %vm6820_vm0, %v6821_v6 }
0x1985   :  { %v4035_v47 = vsel %vm288_vm2, %v4027_v11, 0.0  ;;  %6531 = vmatprep.subr.bf16.mxu0 %v6819_v3  ;;  %v4045_v58 = vmin.f32 %v7910_v20, %v4025_v44  ;;  %v7920_v60 = vadd.f32 %v4044_v50, %v7814_v46 }
0x1986   :  { %v4030_v36 = vadd.f32 %v4029_v56, %v4028_v55  ;;  %v4036_v18 = vrot.slane %v4035_v47, 4 }
0x1987   :  { %v7923_v16 = vadd.f32 %v4045_v58, %v7817_v48 }
0x1988   :  { %v4031_v63 = vrot.slane %v4030_v36, 2  ;;  %v4037_v37 = vadd.f32 %v4036_v18, %v4035_v47  ;;  %6533 = vmatpush3.bf16.msra.mxu0 %v7047_v42 }
0x1989   :  { %6546 = vmatprep.subr.bf16.mxu0 %v6819_v3 }
0x198a   :  { %v4032_v38 = vadd.f32 %v4031_v63, %v4030_v36  ;;  %v4038_v54 = vrot.slane %v4037_v37, 2 }
0x198c   :  { %v4033_v7 = vrot.slane %v4032_v38, 1  ;;  %v4039_v31 = vadd.f32 %v4038_v54, %v4037_v37 }
0x198e   :  { %v4040_v33 = vrot.slane %v4039_v31, 1  ;;  %v4034_v29 = vadd.f32 %v4033_v7, %v4032_v38 }
0x1990   :  { %v4041_v2 = vadd.f32 %v4040_v33, %v4039_v31 }
0x1992   :  { %v4050_v46 = vsel %vm614_vm4, %v4041_v2, %v4034_v29 }
0x1993   :  { %4052 = vst.msk [vmem:[#allocation3 + $0xa] sm:$0x3] %vm1481_vm6, %v4050_v46  ;;  %6007 = vmatmul.mubr.msk.f32.vlgmr.msra.gmra.mrb[30].mxu1 %vm288_vm2, %v4050_v46 }
0x1994   :  { %6518 = vmatpush3.bf16.msra.mxu1 %v7231_v59  ;;  %6055 = vmatprep.mubr.msk.f32.mxu1 %vm6820_vm0, %v6821_v6 }
0x1995   :  { %6519 = vmatprep.subr.bf16.mxu1 %v6819_v3 }
0x1998   :  { %6521 = vmatpush3.bf16.msra.mxu1 %v7237_v62 }
0x1999   :  { %6522 = vmatprep.subr.bf16.mxu1 %v6819_v3 }
0x199c   :  { %6524 = vmatpush3.bf16.msra.mxu1 %v7247_v1 }
0x199d   :  { %6525 = vmatprep.subr.bf16.mxu1 %v6819_v3 }
0x19a0   :  { %6527 = vmatpush3.bf16.msra.mxu1 %v7257_v5 }
0x19a1   :  { %6534 = vmatprep.subr.bf16.mxu1 %v6819_v3 }
0x19a3   :  { %6056 = vmatmul.mubr.msk.f32.vlgmr.msra.gmra.mrb[32].mxu1 %vm288_vm2, %v7910_v20 }
0x19a4   :  { %6536 = vmatpush3.bf16.msra.mxu1 %v7301_v8  ;;  %6085 = vmatprep.mubr.msk.f32.mxu1 %vm6820_vm0, %v6821_v6 }
0x19a5   :  { %6537 = vmatprep.subr.bf16.mxu1 %v6819_v3 }
0x19a8   :  { %6539 = vmatpush3.bf16.msra.mxu1 %v7314_v19 }
0x19a9   :  { %6540 = vmatprep.subr.bf16.mxu1 %v6819_v3 }
0x19ac   :  { %6542 = vmatpush3.bf16.msra.mxu1 %v7326_v22 }
0x19ad   :  { %6543 = vmatprep.subr.bf16.mxu1 %v6819_v3 }
0x19b0   :  { %6545 = vmatpush3.bf16.msra.mxu1 %v7336_v25 }
0x19b3   :  { %v4202_v42 = vpop.f32.mrb[44].mxu0 }
0x19b4   :  { %v6019_v48 = vpop.f32.mrb[45].mxu0  ;;  %v4207_v0 = vrot.slane %v4202_v42, 2 }
0x1a56   :  { %v7951_v45 = vpop.f32.mrb[46].mxu0 }
0x1a57   :  { %v6038_v8 = vpop.f32.mrb[47].mxu0 }
0x1a66   :  { %v4122_v52 = vpop.f32.mrb[30].mxu1 }
0x1a67   :  { %v4127_v57 = vrot.slane %v4122_v52, 2  ;;  %v6008_v14 = vpop.f32.mrb[31].mxu1 }
0x1a69   :  { %v4129_v49 = vadd.f32 %v4127_v57, %v7152_v17  ;;  %v4217_v17 = vrot.slane %v7852_v53, 6 }
0x1a6b   :  { %v4209_v19 = vadd.f32 %v4207_v0, %v4129_v49 }
0x1a6d   :  { %6751 = vtanh.f32 %v4209_v19  ;;  %v5059_v12 = vmul.f32 -1.442695, %v4209_v19 }
0x1a6f   :  { %6753 = vpow2.f32 %v5059_v12 }
0x1a76   :  { %v4377_v24 = vpop.f32.mrb[32].mxu1 }
0x1a77   :  { %v6752_v21 = vpop.eup %6751  ;;  %v6057_v22 = vpop.f32.mrb[33].mxu1 }
0x1a78   :  { %4221 = vrot.lane.b32.xlu0 %v6752_v21, %s6823_s11 }
0x1a79   :  { %v6754_v25 = vpop.eup %6753 }
0x1a7a   :  { %v4213_v40 = vadd.f32 1.0, %v6754_v25 }
0x1a7c   :  { %6755 = vrcp.f32 %v4213_v40 }
0x1a86   :  { %v6756_v13 = vpop.eup %6755 }
0x1a87   :  { %v4219_v9 = vmul.f32 %v6756_v13, %v4217_v17 }
0x1aea   :  { %v4222_v39 = vpop.permute.xlu0 %4221 }
0x1aeb   :  { %v4224_v15 = vmul.f32 %v6756_v13, %v4222_v39 }
0x1aed   :  { %4226 = vrot.lane.b32.xlu1 %v4224_v15, %s6824_s21 }
0x1af1   :  { %1150 = vrot.lane.b32.xlu1 %v7355_v4, %s6825_s1 }
0x1af5   :  { %2187 = vrot.lane.b32.xlu1 %v7559_v23, %s6825_s1 }
0x1af9   :  { %3722 = vrot.lane.b32.xlu1 %v7852_v53, %s6825_s1 }
0x1b5f   :  { %v4227_v28 = vpop.permute.xlu1 %4226 }
0x1b60   :  { %v4229_v26 = vadd.f32 %v4227_v28, %v4219_v9 }
0x1b62   :  { %v4381_v44 = vrot.slane %v4229_v26, 6 }
0x1b63   :  { %v1151_v10 = vpop.permute.xlu1 %1150 }
0x1b64   :  { %1154 = vst.msk [vmem:[#allocation2] sm:$0xc] %vm1153_vm7, %v1151_v10  ;;  %4382 = vrot.lane.b32.xlu0 %v4381_v44, %s6825_s1 }
0x1b67   :  { %v2188_v4 = vpop.permute.xlu1 %2187 }
0x1b68   :  { %2191 = vst.msk [vmem:[#allocation2] sm:$0xc0] %vm2190_vm8, %v2188_v4  ;;  %1669 = vrot.lane.b32.xlu0 %v7451_v32, %s6825_s1 }
0x1b6b   :  { %v3723_v23 = vpop.permute.xlu1 %3722 }
0x1b6c   :  { %3725 = vst.msk [vmem:[#allocation2 + $0x8] sm:$0x30] %vm1672_vm9, %v3723_v23  ;;  %3207 = vrot.lane.b32.xlu0 %v7756_v34, %s6825_s1 }
0x1b70   :  { %4231 = vrot.lane.b32.xlu0 %v4229_v26, %s6825_s1 }
0x1bd6   :  { %v4383_v53 = vpop.permute.xlu0 %4382 }
0x1bd7   :  { %6067 = vmatmul.mubr.msk.f32.vlgmr.msra.gmra.mrb[48].mxu0 %vm444_vm3, %v4383_v53 }
0x1bd8   :  { %6548 = vmatpush3.bf16.msra.mxu0 %v7231_v59  ;;  %6104 = vmatprep.mubr.msk.f32.mxu0 %vm6820_vm0, %v6821_v6 }
0x1bd9   :  { %6549 = vmatprep.subr.bf16.mxu0 %v6819_v3 }
0x1bda   :  { %v1670_v11 = vpop.permute.xlu0 %1669 }
0x1bdb   :  { %1673 = vst.msk [vmem:[#allocation2] sm:$0x30] %vm1672_vm9, %v1670_v11 }
0x1bdc   :  { %6551 = vmatpush3.bf16.msra.mxu0 %v7237_v62 }
0x1bdd   :  { %6552 = vmatprep.subr.bf16.mxu0 %v6819_v3 }
0x1bde   :  { %v3208_v32 = vpop.permute.xlu0 %3207 }
0x1bdf   :  { %3210 = vst.msk [vmem:[#allocation2 + $0x8] sm:$0xc] %vm1153_vm7, %v3208_v32 }
0x1be0   :  { %6554 = vmatpush3.bf16.msra.mxu0 %v7247_v1 }
0x1be1   :  { %6555 = vmatprep.subr.bf16.mxu0 %v6819_v3 }
0x1be2   :  { %v4232_v34 = vpop.permute.xlu0 %4231 }
0x1be3   :  { %4234 = vst.msk [vmem:[#allocation2 + $0x8] sm:$0xc0] %vm2190_vm8, %v4232_v34 }
0x1be4   :  { %6557 = vmatpush3.bf16.msra.mxu0 %v7257_v5 }
0x1caa   :  { %v4452_v6 = vpop.f32.mrb[48].mxu0 }
0x1cab   :  { %v4463_v59 = vrot.slane %v4452_v6, %v7154_v27  ;;  %v6068_v55 = vpop.f32.mrb[49].mxu0  ;;  %v4779_v6 = vld [vmem:[#allocation3] sm:$0xff] }
0x1cad   :  { %v4464_v50 = vcombine.high %v4463_v59, %v4463_v59  ;;  %v4471_v62 = vrot.slane %v4463_v59, %v7154_v27 }
0x1caf   :  { %v4478_v56 = vrot.slane %v4464_v50, %v7154_v27  ;;  %v4482_v47 = vrot.slane %v4471_v62, %v7157_v30  ;;  %v8000_v27 = vld [vmem:[%s8120_s13] ss:$0 sm:$0xff] }
0x1cb1   :  { %v4486_v1 = vrot.slane %v4478_v56, %v7157_v30  ;;  %v7989_v3 = vadd.f32 %v4482_v47, %v7163_v35 }
0x1cb3   :  { %v7992_v58 = vadd.f32 %v4486_v1, %v7167_v41  ;;  %v4491_v5 = vadd.f32 %v7989_v3, %v7951_v45 }
0x1cb5   :  { %v4492_v36 = vadd.f32 %v7992_v58, %v4377_v24  ;;  %6757 = vtanh.f32 %v4491_v5 }
0x1cb7   :  { %6759 = vtanh.f32 %v4492_v36 }
0x1cbf   :  { %v6758_v18 = vpop.eup %6757 }
0x1cc0   :  { %v4495_v30 = vmul.f32 %v8000_v27, %v6758_v18 }
0x1cc1   :  { %v6760_v35 = vpop.eup %6759 }
0x1cc2   :  { %v4496_v63 = vmul.f32 %v8000_v27, %v6760_v35  ;;  %v4497_v41 = vsel %vm288_vm2, %v4495_v30, -inf }
0x1cc3   :  { %v4498_v37 = vrot.slane %v4497_v41, 4 }
0x1cc4   :  { %v4504_v38 = vsel %vm288_vm2, %v4496_v63, -inf }
0x1cc5   :  { %v4499_v54 = vmax.f32 %v4497_v41, %v4498_v37  ;;  %v4505_v7 = vrot.slane %v4504_v38, 4 }
0x1cc7   :  { %v4500_v31 = vrot.slane %v4499_v54, 2  ;;  %v4506_v33 = vmax.f32 %v4504_v38, %v4505_v7 }
0x1cc9   :  { %v4501_v29 = vmax.f32 %v4499_v54, %v4500_v31  ;;  %v4507_v2 = vrot.slane %v4506_v33, 2 }
0x1ccb   :  { %v4502_v46 = vrot.slane %v4501_v29, 1  ;;  %v4508_v42 = vmax.f32 %v4506_v33, %v4507_v2  ;;  %v4783_v33 = vld [vmem:[%s8123_s16 + $0x10] sm:$0xff] }
0x1ccd   :  { %v4503_v48 = vmax.f32 %v4501_v29, %v4502_v46  ;;  %v4509_v45 = vrot.slane %v4508_v42, 1  ;;  %v4784_v29 = vld [vmem:[%s8123_s16 + $0x18] sm:$0xff]  ;;  %v4785_v46 = vld [vmem:[%s8123_s16 + $0x20] sm:$0xff] }
0x1cce   :  { %v6562_v2 = vpack.c.bf16 %v4784_v29, %v4783_v33 }
0x1ccf   :  { %v4510_v8 = vmax.f32 %v4508_v42, %v4509_v45  ;;  %v4511_v52 = vsub.f32 %v4495_v30, %v4503_v48  ;;  %v4786_v42 = vld [vmem:[%s8123_s16 + $0x28] sm:$0xff]  ;;  %v4787_v48 = vld [vmem:[%s8123_s16 + $0x30] sm:$0xff] }
0x1cd0   :  { %v6566_v45 = vpack.c.bf16 %v4786_v42, %v4785_v46 }
0x1cd1   :  { %v4512_v57 = vsub.f32 %v4496_v63, %v4510_v8  ;;  %v4513_v14 = vmul.f32 1.442695, %v4511_v52  ;;  %v4788_v8 = vld [vmem:[%s8123_s16 + $0x38] sm:$0xff] }
0x1cd2   :  { %v6570_v52 = vpack.c.bf16 %v4788_v8, %v4787_v48 }
0x1cd3   :  { %6761 = vpow2.f32 %v4513_v14  ;;  %v4515_v0 = vmul.f32 1.442695, %v4512_v57  ;;  %v4775_v57 = vld [vmem:[%s8122_s15] sm:$0xff]  ;;  %v4776_v14 = vld [vmem:[%s8122_s15 + $0x8] sm:$0xff] }
0x1cd5   :  { %6763 = vpow2.f32 %v4515_v0  ;;  %v8053_v0 = vpack.c.bf16 %v4776_v14, %v4775_v57 }
0x1cdd   :  { %v6762_v49 = vpop.eup %6761 }
0x1cde   :  { %v4517_v19 = vsel %vm288_vm2, %v6762_v49, 0.0 }
0x1cdf   :  { %v6764_v24 = vpop.eup %6763  ;;  %v4518_v21 = vrot.slane %v4517_v19, 4 }
0x1ce0   :  { %v4524_v22 = vsel %vm288_vm2, %v6764_v24, 0.0 }
0x1ce1   :  { %v4519_v12 = vadd.f32 %v4518_v21, %v4517_v19  ;;  %v4525_v25 = vrot.slane %v4524_v22, 4 }
0x1ce3   :  { %v4520_v40 = vrot.slane %v4519_v12, 2  ;;  %v4526_v13 = vadd.f32 %v4525_v25, %v4524_v22 }
0x1ce5   :  { %v4521_v39 = vadd.f32 %v4520_v40, %v4519_v12  ;;  %v4527_v15 = vrot.slane %v4526_v13, 2 }
0x1ce7   :  { %v4522_v17 = vrot.slane %v4521_v39, 1  ;;  %v4528_v9 = vadd.f32 %v4527_v15, %v4526_v13 }
0x1ce9   :  { %v4523_v28 = vadd.f32 %v4522_v17, %v4521_v39  ;;  %v4529_v26 = vrot.slane %v4528_v9, 1 }
0x1ceb   :  { %6765 = vrcp.f32 %v4523_v28  ;;  %v4530_v44 = vadd.f32 %v4529_v26, %v4528_v9 }
0x1ced   :  { %6767 = vrcp.f32 %v4530_v44 }
0x1cf5   :  { %v6766_v10 = vpop.eup %6765 }
0x1cf6   :  { %v4532_v4 = vmul.f32 %v6766_v10, %v6762_v49 }
0x1cf7   :  { %v6768_v23 = vpop.eup %6767 }
0x1cf8   :  { %v4535_v53 = vmul.f32 %v7897_v43, %v4532_v4  ;;  %v4551_v11 = vadd.f32 %v4532_v4, %v7892_v51  ;;  %v4534_v32 = vmul.f32 %v6768_v23, %v6764_v24 }
0x1cfa   :  { %v4537_v34 = vsel %vm288_vm2, %v4535_v53, 0.0  ;;  %6086 = vmatmul.mubr.msk.f32.vlgmr.msra.gmra.mrb[34].mxu1 %vm288_vm2, %v4551_v11  ;;  %v4536_v59 = vmul.f32 %v7905_v61, %v4534_v32  ;;  %v4552_v55 = vadd.f32 %v4534_v32, %v7910_v20  ;;  %v4553_v50 = vmin.f32 %v4551_v11, %v4532_v4 }
0x1cfb   :  { %v4538_v62 = vrot.slane %v4537_v34, 4  ;;  %6123 = vmatprep.mubr.msk.f32.mxu1 %vm288_vm2, %v4779_v6 }
0x1cfc   :  { %v4544_v56 = vsel %vm288_vm2, %v4536_v59, 0.0  ;;  %6105 = vmatmul.mubr.msk.f32.vlgmr.msra.gmra.mrb[50].mxu0 %vm288_vm2, %v4552_v55  ;;  %v4554_v47 = vmin.f32 %v4552_v55, %v4534_v32  ;;  %v4555_v51 = vadd.f32 %v4553_v50, %v7920_v60  ;;  %v4781_v60 = vld [vmem:[%s8123_s16] sm:$0xff] }
0x1cfd   :  { %v4539_v1 = vadd.f32 %v4538_v62, %v4537_v34  ;;  %v4545_v5 = vrot.slane %v4544_v56, 4 }
0x1cfe   :  { %v4556_v36 = vadd.f32 %v4554_v47, %v7923_v16  ;;  %4986 = vst.msk [vmem:[#allocation4] sm:$0xff] %vm288_vm2, %v4555_v51  ;;  %v4782_v16 = vld [vmem:[%s8123_s16 + $0x8] sm:$0xff] }
0x1cff   :  { %v4540_v18 = vrot.slane %v4539_v1, 2  ;;  %v4546_v30 = vadd.f32 %v4545_v5, %v4544_v56  ;;  %v6558_v31 = vpack.c.bf16 %v4782_v16, %v4781_v60 }
0x1d00   :  { %4987 = vst.msk [vmem:[#allocation4 + $0x8] sm:$0xff] %vm288_vm2, %v4556_v36 }
0x1d01   :  { %v4541_v20 = vadd.f32 %v4540_v18, %v4539_v1  ;;  %v4547_v35 = vrot.slane %v4546_v30, 2  ;;  %6559 = vmatprep.subr.bf16.mxu1 %v6558_v31 }
0x1d02   :  { %6561 = vmatpush3.bf16.msra.mxu1 %v6558_v31 }
0x1d03   :  { %v4542_v63 = vrot.slane %v4541_v20, 1  ;;  %v4548_v41 = vadd.f32 %v4547_v35, %v4546_v30  ;;  %6563 = vmatprep.subr.bf16.mxu1 %v6562_v2 }
0x1d05   :  { %v4549_v37 = vrot.slane %v4548_v41, 1  ;;  %v4543_v38 = vadd.f32 %v4542_v63, %v4541_v20 }
0x1d06   :  { %6565 = vmatpush3.bf16.msra.mxu1 %v6562_v2 }
0x1d07   :  { %v4550_v54 = vadd.f32 %v4549_v37, %v4548_v41  ;;  %6567 = vmatprep.subr.bf16.mxu1 %v6566_v45 }
0x1d09   :  { %v4559_v7 = vsel %vm614_vm4, %v4550_v54, %v4543_v38 }
0x1d0a   :  { %4561 = vst.msk [vmem:[#allocation3 + $0xc] sm:$0x3] %vm1481_vm6, %v4559_v7  ;;  %6569 = vmatpush3.bf16.msra.mxu1 %v6566_v45 }
0x1d0b   :  { %6571 = vmatprep.subr.bf16.mxu1 %v6570_v52 }
0x1d0e   :  { %6573 = vmatpush3.bf16.msra.mxu1 %v6570_v52 }
0x1d0f   :  { %6575 = vmatprep.subr.bf16.mxu1 %v8053_v0 }
0x1dcd   :  { %v4631_v49 = vpop.f32.mrb[34].mxu1 }
0x1dce   :  { %v4708_v19 = vadd.f32 %v4631_v49, %v7989_v3  ;;  %v6087_v24 = vpop.f32.mrb[35].mxu1 }
0x1dcf   :  { %v4704_v21 = vpop.f32.mrb[50].mxu0 }
0x1dd0   :  { %6769 = vtanh.f32 %v4708_v19  ;;  %v4709_v22 = vadd.f32 %v4704_v21, %v7992_v58  ;;  %v6106_v12 = vpop.f32.mrb[51].mxu0  ;;  %v4778_v21 = vld [vmem:[%s8122_s15 + $0x18] sm:$0xff] }
0x1dd2   :  { %6771 = vtanh.f32 %v4709_v22 }
0x1dda   :  { %v6770_v25 = vpop.eup %6769 }
0x1ddb   :  { %v4712_v40 = vmul.f32 %v8000_v27, %v6770_v25  ;;  %v4773_v25 = vld [vmem:[#allocation2] sm:$0xff] }
0x1ddc   :  { %v6772_v13 = vpop.eup %6771 }
0x1ddd   :  { %v4714_v39 = vsel %vm288_vm2, %v4712_v40, -inf  ;;  %v4713_v15 = vmul.f32 %v8000_v27, %v6772_v13  ;;  %v5069_v13 = vld [vmem:[%s8124_s17] ss:$0 sm:$0xff] }
0x1dde   :  { %v4715_v17 = vrot.slane %v4714_v39, 4 }
0x1ddf   :  { %v4721_v9 = vsel %vm288_vm2, %v4713_v15, -inf }
0x1de0   :  { %v4716_v28 = vmax.f32 %v4714_v39, %v4715_v17  ;;  %v4722_v3 = vrot.slane %v4721_v9, 4 }
0x1de2   :  { %v4717_v26 = vrot.slane %v4716_v28, 2  ;;  %v4723_v44 = vmax.f32 %v4721_v9, %v4722_v3 }
0x1de4   :  { %v4718_v10 = vmax.f32 %v4716_v28, %v4717_v26  ;;  %v4724_v4 = vrot.slane %v4723_v44, 2 }
0x1de6   :  { %v4719_v58 = vrot.slane %v4718_v10, 1  ;;  %v4725_v23 = vmax.f32 %v4723_v44, %v4724_v4 }
0x1de8   :  { %v4720_v53 = vmax.f32 %v4718_v10, %v4719_v58  ;;  %v4726_v11 = vrot.slane %v4725_v23, 1 }
0x1dea   :  { %v4728_v32 = vsub.f32 %v4712_v40, %v4720_v53  ;;  %v4727_v34 = vmax.f32 %v4725_v23, %v4726_v11  ;;  %v4774_v40 = vld [vmem:[#allocation2 + $0x8] sm:$0xff] }
0x1dec   :  { %v4730_v6 = vmul.f32 1.442695, %v4728_v32  ;;  %v4729_v59 = vsub.f32 %v4713_v15, %v4727_v34 }
0x1dee   :  { %6773 = vpow2.f32 %v4730_v6  ;;  %v4732_v55 = vmul.f32 1.442695, %v4729_v59 }
0x1df0   :  { %6775 = vpow2.f32 %v4732_v55 }
0x1df8   :  { %v6774_v27 = vpop.eup %6773 }
0x1df9   :  { %v4734_v50 = vsel %vm288_vm2, %v6774_v27, 0.0 }
0x1dfa   :  { %v6776_v62 = vpop.eup %6775  ;;  %v4735_v56 = vrot.slane %v4734_v50, 4 }
0x1dfb   :  { %v4741_v47 = vsel %vm288_vm2, %v6776_v62, 0.0 }
0x1dfc   :  { %v4736_v51 = vadd.f32 %v4735_v56, %v4734_v50  ;;  %v4742_v1 = vrot.slane %v4741_v47, 4 }
0x1dfe   :  { %v4737_v5 = vrot.slane %v4736_v51, 2  ;;  %v4743_v36 = vadd.f32 %v4742_v1, %v4741_v47 }
0x1e00   :  { %v4738_v18 = vadd.f32 %v4737_v5, %v4736_v51  ;;  %v4744_v30 = vrot.slane %v4743_v36, 2 }
0x1e02   :  { %v4739_v20 = vrot.slane %v4738_v18, 1  ;;  %v4745_v35 = vadd.f32 %v4744_v30, %v4743_v36 }
0x1e04   :  { %v4740_v63 = vadd.f32 %v4739_v20, %v4738_v18  ;;  %v4746_v41 = vrot.slane %v4745_v35, 1 }
0x1e06   :  { %6777 = vrcp.f32 %v4740_v63  ;;  %v4747_v37 = vadd.f32 %v4746_v41, %v4745_v35 }
0x1e08   :  { %6779 = vrcp.f32 %v4747_v37 }
0x1e10   :  { %v6778_v38 = vpop.eup %6777 }
0x1e11   :  { %v4749_v54 = vmul.f32 %v6778_v38, %v6774_v27 }
0x1e12   :  { %v6780_v7 = vpop.eup %6779 }
0x1e13   :  { %v4752_v60 = vmul.f32 %v7897_v43, %v4749_v54  ;;  %v4751_v16 = vmul.f32 %v6780_v7, %v6776_v62 }
0x1e15   :  { %v4754_v31 = vsel %vm288_vm2, %v4752_v60, 0.0  ;;  %v4753_v33 = vmul.f32 %v7905_v61, %v4751_v16  ;;  %v4777_v61 = vld [vmem:[%s8122_s15 + $0x10] sm:$0xff]  ;;  %s6826_s15 = smov [#allocation4]  }
0x1e16   :  { %v4755_v29 = vrot.slane %v4754_v31, 4  ;;  %v6578_v22 = vpack.c.bf16 %v4778_v21, %v4777_v61  ;;  %s4995_s17 = sshll.u32 %s6826_s15, 4  ;;  %s4996_s17 = int_to_ptr.vmem [resolvable:$true] %s4995_s17 }
0x1e17   :  { %v4761_v2 = vsel %vm288_vm2, %v4753_v33, 0.0  ;;  %s6795_s11 = scalar_lea.vmem %s4996_s17, 256  ;;  %p6800_p1 = scmp.lt.s32.totalorder %s4996_s17, %s4996_s17 }
0x1e18   :  { %v4756_v46 = vadd.f32 %v4755_v29, %v4754_v31  ;;  %v4762_v42 = vrot.slane %v4761_v2, 4  ;;  %p6796_p0 = scmp.ne.s32.totalorder %s4996_s17, %s6795_s11  ;;  %p6801_p2 = scmp.lt.s32.totalorder %s6795_s11, %s6795_s11 }
0x1e1a   :  { %v4757_v48 = vrot.slane %v4756_v46, 2  ;;  %v4763_v45 = vadd.f32 %v4762_v42, %v4761_v2  ;;  %p6802_p3 = por %p6801_p2, %p6800_p1 }
0x1e1c   :  { %v4758_v8 = vadd.f32 %v4757_v48, %v4756_v46  ;;  %v4764_v52 = vrot.slane %v4763_v45, 2  ;;  %p6803_p4 = pnand %p6802_p3, %p6796_p0 }
0x1e1e   :  { %v4759_v57 = vrot.slane %v4758_v8, 1  ;;  %v4765_v14 = vadd.f32 %v4764_v52, %v4763_v45 }
0x1e20   :  { %v4766_v49 = vrot.slane %v4765_v14, 1  ;;  %v4760_v19 = vadd.f32 %v4759_v57, %v4758_v8 }
0x1e22   :  { %v4767_v24 = vadd.f32 %v4766_v49, %v4765_v14 }
0x1e24   :  { %v4770_v43 = vsel %vm614_vm4, %v4767_v24, %v4760_v19 }
0x1e25   :  { %4772 = vst.msk [vmem:[#allocation3 + $0xe] sm:$0x3] %vm1481_vm6, %v4770_v43 }
0x1e2c   :  { %v4780_v12 = vld [vmem:[#allocation3 + $0x8] sm:$0xff] }
0x1e2d   :  { %6124 = vmatmul.mubr.msk.f32.vlgmr.msra.gmra.mrb[36].mxu1 %vm288_vm2, %v4780_v12 }
0x1e2e   :  { %6577 = vmatpush3.bf16.msra.mxu1 %v8053_v0  ;;  %6134 = vmatprep.mubr.msk.f32.mxu1 %vm444_vm3, %v4773_v25 }
0x1e2f   :  { %6579 = vmatprep.subr.bf16.mxu1 %v6578_v22 }
0x1e32   :  { %6581 = vmatpush3.bf16.msra.mxu1 %v6578_v22 }
0x1e35   :  { %6135 = vmatmul.mubr.msk.f32.vlgmr.msra.gmra.mrb[36].mxu1 %vm444_vm3, %v4774_v40 }
0x1f08   :  { %v6136_v39 = vpop.f32.mrb[36].mxu1 }
0x1f09   :  { %v4959_v15 = vadd.f32 %v6136_v39, %v5069_v13  ;;  %v4942_v17 = vpop.f32.mrb[37].mxu1 }
0x1f0a   :  { %v4958_v9 = vadd.f32 %v5069_v13, %v4942_v17 }
0x1f0b   :  { %v4963_v28 = vsel %vm288_vm2, %v4959_v15, -inf }
0x1f0c   :  { %4964 = vmax.xlane.f32.xlu0 %v4963_v28  ;;  %v4960_v0 = vsel %vm288_vm2, %v4958_v9, -inf }
0x1f0d   :  { %4961 = vmax.xlane.f32.xlu1 %v4960_v0 }
0x1f99   :  { %v4965_v3 = vpop.xlane.xlu0 %4964 }
0x1f9a   :  { %v4967_v26 = vsub.f32 %v4959_v15, %v4965_v3  ;;  %v4962_v44 = vpop.xlane.xlu1 %4961 }
0x1f9b   :  { %v4966_v10 = vsub.f32 %v4958_v9, %v4962_v44 }
0x1f9c   :  { %v4970_v4 = vmul.f32 1.442695, %v4967_v26 }
0x1f9d   :  { %v4968_v58 = vmul.f32 1.442695, %v4966_v10 }
0x1f9e   :  { %6781 = vpow2.f32 %v4970_v4 }
0x1f9f   :  { %6783 = vpow2.f32 %v4968_v58 }
0x1fa8   :  { %v6782_v23 = vpop.eup %6781 }
0x1fa9   :  { %v6784_v53 = vpop.eup %6783  ;;  %v4975_v11 = vsel %vm288_vm2, %v6782_v23, 0.0 }
0x1faa   :  { %4976 = vadd.xlane.f32.xlu1 %v4975_v11  ;;  %v4972_v32 = vsel %vm288_vm2, %v6784_v53, 0.0 }
0x1fab   :  { %4973 = vadd.xlane.f32.xlu0 %v4972_v32 }
0x1fac   :  { %6806 = shalt.err (!%p6803_p4)
}
0x1fad   :  { %s6807_s1 = scalar_lea.hbm %s8126_s19, 256 }
0x1fae   :  { %p6808_p5 = scmp.ne.s32.totalorder %s8126_s19, %s6807_s1  ;;  %p6811_p6 = scmp.lt.u32.totalorder %s6807_s1, %s8126_s19 }
0x1fb0   :  { %p6813_p7 = pnand %p6811_p6, %p6808_p5 }
0x1fb2   :  { %6816 = shalt.err (!%p6813_p7)
}
0x1fb3   :  { %s6827_s25 = smov 128   ;;  %s6828_s3 = smov 8  }
0x1fb4   :  { %5001 = dma.vmem_to_hbm [thread:$0]  %s4996_s17, 256, %s8126_s19, [#allocation5], %s6827_s25, %s6827_s25, %s6828_s3  }
0x2037   :  { %v4977_v34 = vpop.xlane.xlu1 %4976 }
0x2038   :  { %6785 = vlog2.f32 %v4977_v34  ;;  %v4974_v6 = vpop.xlane.xlu0 %4973 }
0x2039   :  { %6787 = vlog2.f32 %v4974_v6 }
0x2042   :  { %v6786_v59 = vpop.eup %6785 }
0x2043   :  { %v6788_v55 = vpop.eup %6787  ;;  %v4981_v27 = vmul.f32 0.6931472, %v6786_v59 }
0x2044   :  { %v4979_v50 = vmul.f32 0.6931472, %v6788_v55 }
0x2045   :  { %v4983_v62 = vsub.f32 %v4967_v26, %v4981_v27 }
0x2046   :  { %v4982_v56 = vsub.f32 %v4966_v10, %v4979_v50 }
0x2047   :  { %4985 = vst.msk [vmem:[%s8125_s18 + $0x8] sm:$0xff] %vm288_vm2, %v4983_v62 }
0x2048   :  { %4984 = vst.msk [vmem:[%s8125_s18] sm:$0xff] %vm288_vm2, %v4982_v56 }
0x2049   :  { %6817 = dma.done.wait [#allocation5], 256  }
0x204a   :  { %6818 = vsyncadd [#allocation5], 4294967040 }
0x204b   :  { %5007 = vsyncpa [#allocation5], 1 }

</bundles_post_ra>
